<compile_context>
chip_gen: v7x
topology: tpu7x:2x2x1
jax: 0.10.0
libtpu: 0.0.40
codegen_flags: <defaults>
</compile_context>

<pallas_src>
import math

import numpy as np
import jax
import jax.numpy as jnp
from jax.experimental import pallas as pl
from jax.experimental.pallas import tpu as pltpu

# ---------------- synthetic config (stands in for configs/config_base.yaml) -------------
K_OBS = 2
NUM_HEADS = 2
ACTION_DIM = 5
FOV_SIZE = (5, 5)
HIDDEN_CHANNELS = 8
HIDDEN_DIM = 32                      # stored by the torch module, unused in forward
NUM_AGENTS = 4
OBS_R = (FOV_SIZE[0] // 2, FOV_SIZE[1] // 2)
EMBED = 32 * NUM_HEADS               # nn.MultiheadAttention embed dim in MHABlock
HEAD_DIM = EMBED // NUM_HEADS        # == 32
FOV_H, FOV_W = FOV_SIZE
PIX = FOV_H * FOV_W                  # 25 spatial positions


# ====================================  fused kernel  ====================================
def fused_critic_kernel(x0_ref, act_ref, mask_ref,
                        m0_ref, b0_ref, resw_ref, resb_ref, c1w_ref, c1b_ref,
                        obsw_ref, obsb_ref, actw_ref, actb_ref, pool_ref,
                        qkvw_ref, qkvb_ref, foldw_ref, foldb_ref, vaw_ref, vab_ref,
                        q_ref, lat_ref):
    f32 = jnp.float32
    dot = lambda a, b: jnp.dot(a, b, preferred_element_type=f32)

    # ---- fov_encoder: every conv layer is one dense matmul on HWC-flattened pixels ----
    x = jnp.maximum(dot(x0_ref[...], m0_ref[...]) + b0_ref[...], 0.0)          # (A*K, 200)
    for r in range(3):                                                         # 3 ResBlocks
        h = jnp.maximum(dot(x, resw_ref[2 * r]) + resb_ref[2 * r], 0.0)
        x = jnp.maximum(dot(h, resw_ref[2 * r + 1]) + resb_ref[2 * r + 1] + x, 0.0)
    feat = jnp.maximum(dot(x, c1w_ref[...]) + c1b_ref[...], 0.0)               # (A*K, 400)

    # ---- obs encoder (K_obs mean folded in as a pooling matmul; obs_w rows pre-permuted) ----
    pooled = dot(pool_ref[...], feat)                                          # (A, 400)
    o = dot(pooled, obsw_ref[...]) + obsb_ref[...]                             # (A, 16)

    # ---- action encoder (one_hot built in-kernel from a 2D iota) ----
    onehot = (jax.lax.broadcasted_iota(jnp.int32, (NUM_AGENTS, ACTION_DIM), 1)
              == act_ref[...]).astype(f32)                                     # (A, action_dim)
    a = dot(onehot, actw_ref[...]) + actb_ref[...]                             # (A, 16)

    # ---- fused QKV projection: c = [o | a] handled as two row-blocks of the QKV weight ----
    qkv = dot(o, qkvw_ref[0:16, :]) + dot(a, qkvw_ref[16:32, :]) + qkvb_ref[...]   # (A, 3E)

    mask = mask_ref[...]                                                       # (A, A) 0/1
    foldb = foldb_ref[...]                                                     # (1, 32)

    # per-head scores (computed ONCE) and W_O-projected values
    scores, pvals = [], []
    for hh in range(NUM_HEADS):
        lo = hh * HEAD_DIM
        qh = qkv[:, lo:lo + HEAD_DIM]
        kh = qkv[:, EMBED + lo:EMBED + lo + HEAD_DIM]
        vh = qkv[:, 2 * EMBED + lo:2 * EMBED + lo + HEAD_DIM]
        # 1/sqrt(head_dim) is already folded into the q columns of the QKV weight.
        scores.append(jax.lax.dot_general(qh, kh, (((1,), (1,)), ((), ())),
                                          preferred_element_type=f32))        # (A, A)
        pvals.append(dot(vh, foldw_ref[lo:lo + HEAD_DIM, :]))                  # (A, 32)

    # ---- masked attention per agent, summed over its observed queries (unrolled, A small) ----
    for i in range(NUM_AGENTS):
        mrow = mask[i:i + 1, :]                                                # (1, A) = S_i
        count_i = jnp.sum(mrow, axis=-1, keepdims=True)                        # |S_i|
        # out_proj bias is applied per query BEFORE the sum in torch -> scaled by |S_i|.
        row = count_i * foldb                                                  # (1, 32)
        for hh in range(NUM_HEADS):
            s = jnp.where(mrow > 0.5, scores[hh], -1e30)                       # mask keys not in S_i
            p = jnp.exp(s - jnp.max(s, axis=-1, keepdims=True))
            p = p * pl.reciprocal(jnp.sum(p, axis=-1, keepdims=True), approx=True)
            wrow = dot(mrow, p)                                                # sum over queries in S_i
            row = row + dot(wrow, pvals[hh])                                   # (1, 32)
        lat_ref[i:i + 1, :] = row

    # ---- dueling head: fused [value | advantage] matmul, Q = V + A - mean(A) ----
    va = dot(lat_ref[...], vaw_ref[...]) + vab_ref[...]                        # (A, 1 + action_dim)
    v = va[:, 0:1]
    adv = va[:, 1:1 + ACTION_DIM]
    q_ref[...] = v + adv - jnp.mean(adv, axis=-1, keepdims=True)


# ===============================  host-side weight folding  =============================
def conv3x3_matrix(w_oihw, H, W, in_chw):
    """Dense M s.t. y_flat = x_flat @ M reproduces Conv2d(k=3, padding=1) on a fixed HxW grid.
    Output features are HWC-flattened; input features are CHW- or HWC-flattened."""
    cout, cin = w_oihw.shape[:2]
    M = np.zeros((H * W * cin, H * W * cout), np.float32)
    for h in range(H):
        for w in range(W):
            j0 = (h * W + w) * cout
            for dy in (-1, 0, 1):
                for dx in (-1, 0, 1):
                    hs, ws = h + dy, w + dx
                    if 0 <= hs < H and 0 <= ws < W:
                        tap = w_oihw[:, :, dy + 1, dx + 1]          # (cout, cin)
                        for ci in range(cin):
                            i = (ci * H * W + hs * W + ws) if in_chw else ((hs * W + ws) * cin + ci)
                            M[i, j0:j0 + cout] += tap[:, ci]
    return M


def init_params(key):
    keys = iter(jax.random.split(key, 64))

    def rnd(shape, scale=0.1):
        return np.asarray(scale * jax.random.normal(next(keys), shape), dtype=np.float32)

    H, W, HC = FOV_H, FOV_W, HIDDEN_CHANNELS

    # fov_encoder (torch layouts), folded into dense per-image matrices
    conv0_w = rnd((HC, 3, 3, 3)); conv0_b = rnd((HC,))
    m0 = conv3x3_matrix(conv0_w, H, W, in_chw=True)          # input rows are CHW-flat obs
    b0 = np.tile(conv0_b, H * W)[None, :]

    res_w = np.zeros((6, PIX * HC, PIX * HC), np.float32)
    res_b = np.zeros((6, 1, PIX * HC), np.float32)
    for r in range(3):
        for c in range(2):
            wct = rnd((HC, HC, 3, 3)); bct = rnd((HC,))
            res_w[2 * r + c] = conv3x3_matrix(wct, H, W, in_chw=False)
            res_b[2 * r + c] = np.tile(bct, H * W)[None, :]

    c1_wt = rnd((16, HC)); c1_bt = rnd((16,))                # 1x1 conv == per-pixel channel linear
    c1_w = np.zeros((PIX * HC, PIX * 16), np.float32)
    for p in range(PIX):
        c1_w[p * HC:(p + 1) * HC, p * 16:(p + 1) * 16] = c1_wt.T
    c1_b = np.tile(c1_bt, H * W)[None, :]

    # obs encoder: permute input rows from torch's C-major Flatten(0) to our HWC flatten
    obs_wt = rnd((16, 16 * PIX)); obs_bt = rnd((16,))
    perm = np.array([c * PIX + p for p in range(PIX) for c in range(16)])
    obs_w = obs_wt.T[perm]                                   # (400, 16)
    obs_b = obs_bt[None, :]

    act_wt = rnd((16, ACTION_DIM)); act_bt = rnd((16,))
    act_w = act_wt.T; act_b = act_bt[None, :]

    # K_obs mean-pooling matrix over (agent-major, k-minor) rows
    pool = np.zeros((NUM_AGENTS, NUM_AGENTS * K_OBS), np.float32)
    for i in range(NUM_AGENTS):
        pool[i, i * K_OBS:(i + 1) * K_OBS] = 1.0 / K_OBS

    # MHABlock: fold W_Q/K/V with mha in_proj; fold out_proj with W_O; fold softmax scale into q
    wq = rnd((EMBED, 32)); bq = rnd((EMBED,))
    wk = rnd((EMBED, 32)); bk = rnd((EMBED,))
    wv = rnd((EMBED, 32)); bv = rnd((EMBED,))
    in_w = rnd((3 * EMBED, EMBED)); in_b = rnd((3 * EMBED,))
    out_w = rnd((EMBED, EMBED)); out_b = rnd((EMBED,))
    wo = rnd((32, EMBED))                                    # W_O, bias=False

    def fold(wt, bt, iw, ib):                                # (x @ wt.T + bt) @ iw.T + ib
        return wt.T @ iw.T, bt @ iw.T + ib

    wq_e, bq_e = fold(wq, bq, in_w[:EMBED], in_b[:EMBED])
    wk_e, bk_e = fold(wk, bk, in_w[EMBED:2 * EMBED], in_b[EMBED:2 * EMBED])
    wv_e, bv_e = fold(wv, bv, in_w[2 * EMBED:], in_b[2 * EMBED:])
    scale = 1.0 / math.sqrt(HEAD_DIM)
    qkv_w = np.concatenate([wq_e * scale, wk_e, wv_e], axis=1)        # (32, 3E)
    qkv_b = np.concatenate([bq_e * scale, bk_e, bv_e])[None, :]       # (1, 3E)

    fold_w = out_w.T @ wo.T                                  # (E, 32)  out_proj folded with W_O
    fold_b = (out_b @ wo.T)[None, :]                         # (1, 32)

    val_w = rnd((1, 32)); val_b = rnd((1,))
    adv_w = rnd((ACTION_DIM, 32)); adv_b = rnd((ACTION_DIM,))
    va_w = np.concatenate([val_w.T, adv_w.T], axis=1)        # (32, 1 + action_dim)
    va_b = np.concatenate([val_b, adv_b])[None, :]

    raw = dict(m0=m0, b0=b0, res_w=res_w, res_b=res_b, c1_w=c1_w, c1_b=c1_b,
               obs_w=obs_w, obs_b=obs_b, act_w=act_w, act_b=act_b, pool=pool,
               qkv_w=qkv_w, qkv_b=qkv_b, fold_w=fold_w, fold_b=fold_b,
               va_w=va_w, va_b=va_b)
    return {k: jnp.asarray(v, jnp.float32) for k, v in raw.items()}


# ================================  forward pass wrapper  ================================
def build_observed_mask(state):
    # host-side reproduction of _get_observed_agents_from_states (i plus j>i within obs_r)
    n = len(state)
    m = np.zeros((n, n), dtype=np.float32)
    for i in range(n):
        m[i, i] = 1.0
        for j in range(i + 1, n):
            if (abs(state[i][0] - state[j][0]) <= OBS_R[0]
                    and abs(state[i][1] - state[j][1]) <= OBS_R[1]):
                m[i, j] = 1.0
    return m


@jax.jit
def attention_critic_forward(params, obs, action, mask):
    A, K, C, H, W = obs.shape
    x0 = obs.reshape(A * K, C * H * W)              # free reshape: CHW-flat rows feed conv0 matrix
    act = action.reshape(A, 1).astype(jnp.int32)
    return pl.pallas_call(
        fused_critic_kernel,
        out_shape=jax.ShapeDtypeStruct((A, ACTION_DIM), jnp.float32),
        scratch_shapes=[pltpu.VMEM((NUM_AGENTS, 32), jnp.float32)],
    )(x0, act, mask.astype(jnp.float32),
      params['m0'], params['b0'], params['res_w'], params['res_b'],
      params['c1_w'], params['c1_b'], params['obs_w'], params['obs_b'],
      params['act_w'], params['act_b'], params['pool'],
      params['qkv_w'], params['qkv_b'], params['fold_w'], params['fold_b'],
      params['va_w'], params['va_b'])


# =======================================  demo  =========================================
if __name__ == "__main__":
    key = jax.random.PRNGKey(0)
    pkey, okey, akey = jax.random.split(key, 3)

    params = init_params(pkey)
    obs = jax.random.normal(
        okey, (NUM_AGENTS, K_OBS, 3, FOV_H, FOV_W), dtype=jnp.float32)
    action = jax.random.randint(akey, (NUM_AGENTS,), 0, ACTION_DIM)
    state = [(0, 0), (1, 1), (5, 5), (6, 4)]            # agent (x, y) grid positions
    mask = jnp.asarray(build_observed_mask(state))      # (A, A) observed-agents mask

    q_n = attention_critic_forward(params, obs, action, mask)
    jax.block_until_ready(q_n)
    assert q_n.shape == (NUM_AGENTS, ACTION_DIM)
    assert bool(jnp.all(jnp.isfinite(q_n)))
    print("KERNEL_OK")
</pallas_src>

<mosaic_0001>
module attributes {stable_mosaic.version = 11 : i64} {
  func.func @fused_critic_kernel(%arg0: memref<8x75xf32, #tpu.memory_space<vmem>>, %arg1: memref<4x1xi32, #tpu.memory_space<vmem>>, %arg2: memref<4x4xf32, #tpu.memory_space<vmem>>, %arg3: memref<75x200xf32, #tpu.memory_space<vmem>>, %arg4: memref<1x200xf32, #tpu.memory_space<vmem>>, %arg5: memref<6x200x200xf32, #tpu.memory_space<vmem>>, %arg6: memref<6x1x200xf32, #tpu.memory_space<vmem>>, %arg7: memref<200x400xf32, #tpu.memory_space<vmem>>, %arg8: memref<1x400xf32, #tpu.memory_space<vmem>>, %arg9: memref<400x16xf32, #tpu.memory_space<vmem>>, %arg10: memref<1x16xf32, #tpu.memory_space<vmem>>, %arg11: memref<5x16xf32, #tpu.memory_space<vmem>>, %arg12: memref<1x16xf32, #tpu.memory_space<vmem>>, %arg13: memref<4x8xf32, #tpu.memory_space<vmem>>, %arg14: memref<32x192xf32, #tpu.memory_space<vmem>>, %arg15: memref<1x192xf32, #tpu.memory_space<vmem>>, %arg16: memref<64x32xf32, #tpu.memory_space<vmem>>, %arg17: memref<1x32xf32, #tpu.memory_space<vmem>>, %arg18: memref<32x6xf32, #tpu.memory_space<vmem>>, %arg19: memref<1x6xf32, #tpu.memory_space<vmem>>, %arg20: memref<4x5xf32, #tpu.memory_space<vmem>>, %arg21: memref<4x32xf32, #tpu.memory_space<vmem>>) attributes {dimension_semantics = [], scalar_prefetch = 0 : i64, scratch_operands = 1 : i64, tpu.core_type = #tpu.core_type<tc>} {
    %c0 = arith.constant 0 : index
    %c0_0 = arith.constant 0 : index
    %0 = vector.load %arg0[%c0, %c0_0] : memref<8x75xf32, #tpu.memory_space<vmem>>, vector<8x75xf32>
    %c0_1 = arith.constant 0 : index
    %c0_2 = arith.constant 0 : index
    %1 = vector.load %arg3[%c0_1, %c0_2] : memref<75x200xf32, #tpu.memory_space<vmem>>, vector<75x200xf32>
    %cst = arith.constant dense<0.000000e+00> : vector<8x200xf32>
    %2 = tpu.matmul %0, %1, %cst {dimension_numbers = #tpu.dot_dimension_numbers<[1], [0], [0], [1], [0, 0, 1, 1], [], []>} : vector<8x75xf32>, vector<75x200xf32>, vector<8x200xf32> -> vector<8x200xf32>
    %c0_3 = arith.constant 0 : index
    %c0_4 = arith.constant 0 : index
    %3 = vector.load %arg4[%c0_3, %c0_4] : memref<1x200xf32, #tpu.memory_space<vmem>>, vector<1x200xf32>
    %4 = vector.broadcast %3 : vector<1x200xf32> to vector<8x200xf32>
    %5 = arith.addf %2, %4 : vector<8x200xf32>
    %cst_5 = arith.constant 0.000000e+00 : f32
    %6 = vector.broadcast %cst_5 : f32 to vector<8x200xf32>
    %7 = arith.maximumf %5, %6 : vector<8x200xf32>
    %c0_6 = arith.constant 0 : index
    %c0_7 = arith.constant 0 : index
    %c0_8 = arith.constant 0 : index
    %8 = vector.load %arg5[%c0_6, %c0_7, %c0_8] : memref<6x200x200xf32, #tpu.memory_space<vmem>>, vector<1x200x200xf32>
    %9 = vector.shape_cast %8 : vector<1x200x200xf32> to vector<200x200xf32>
    %cst_9 = arith.constant dense<0.000000e+00> : vector<8x200xf32>
    %10 = tpu.matmul %7, %9, %cst_9 {dimension_numbers = #tpu.dot_dimension_numbers<[1], [0], [0], [1], [0, 0, 1, 1], [], []>} : vector<8x200xf32>, vector<200x200xf32>, vector<8x200xf32> -> vector<8x200xf32>
    %c0_10 = arith.constant 0 : index
    %c0_11 = arith.constant 0 : index
    %c0_12 = arith.constant 0 : index
    %11 = vector.load %arg6[%c0_10, %c0_11, %c0_12] : memref<6x1x200xf32, #tpu.memory_space<vmem>>, vector<1x1x200xf32>
    %12 = vector.shape_cast %11 : vector<1x1x200xf32> to vector<1x200xf32>
    %13 = vector.broadcast %12 : vector<1x200xf32> to vector<8x200xf32>
    %14 = arith.addf %10, %13 : vector<8x200xf32>
    %cst_13 = arith.constant 0.000000e+00 : f32
    %15 = vector.broadcast %cst_13 : f32 to vector<8x200xf32>
    %16 = arith.maximumf %14, %15 : vector<8x200xf32>
    %c1 = arith.constant 1 : index
    %c0_14 = arith.constant 0 : index
    %c0_15 = arith.constant 0 : index
    %17 = vector.load %arg5[%c1, %c0_14, %c0_15] : memref<6x200x200xf32, #tpu.memory_space<vmem>>, vector<1x200x200xf32>
    %18 = vector.shape_cast %17 : vector<1x200x200xf32> to vector<200x200xf32>
    %cst_16 = arith.constant dense<0.000000e+00> : vector<8x200xf32>
    %19 = tpu.matmul %16, %18, %cst_16 {dimension_numbers = #tpu.dot_dimension_numbers<[1], [0], [0], [1], [0, 0, 1, 1], [], []>} : vector<8x200xf32>, vector<200x200xf32>, vector<8x200xf32> -> vector<8x200xf32>
    %c1_17 = arith.constant 1 : index
    %c0_18 = arith.constant 0 : index
    %c0_19 = arith.constant 0 : index
    %20 = vector.load %arg6[%c1_17, %c0_18, %c0_19] : memref<6x1x200xf32, #tpu.memory_space<vmem>>, vector<1x1x200xf32>
    %21 = vector.shape_cast %20 : vector<1x1x200xf32> to vector<1x200xf32>
    %22 = vector.broadcast %21 : vector<1x200xf32> to vector<8x200xf32>
    %23 = arith.addf %19, %22 : vector<8x200xf32>
    %24 = arith.addf %23, %7 : vector<8x200xf32>
    %cst_20 = arith.constant 0.000000e+00 : f32
    %25 = vector.broadcast %cst_20 : f32 to vector<8x200xf32>
    %26 = arith.maximumf %24, %25 : vector<8x200xf32>
    %c2 = arith.constant 2 : index
    %c0_21 = arith.constant 0 : index
    %c0_22 = arith.constant 0 : index
    %27 = vector.load %arg5[%c2, %c0_21, %c0_22] : memref<6x200x200xf32, #tpu.memory_space<vmem>>, vector<1x200x200xf32>
    %28 = vector.shape_cast %27 : vector<1x200x200xf32> to vector<200x200xf32>
    %cst_23 = arith.constant dense<0.000000e+00> : vector<8x200xf32>
    %29 = tpu.matmul %26, %28, %cst_23 {dimension_numbers = #tpu.dot_dimension_numbers<[1], [0], [0], [1], [0, 0, 1, 1], [], []>} : vector<8x200xf32>, vector<200x200xf32>, vector<8x200xf32> -> vector<8x200xf32>
    %c2_24 = arith.constant 2 : index
    %c0_25 = arith.constant 0 : index
    %c0_26 = arith.constant 0 : index
    %30 = vector.load %arg6[%c2_24, %c0_25, %c0_26] : memref<6x1x200xf32, #tpu.memory_space<vmem>>, vector<1x1x200xf32>
    %31 = vector.shape_cast %30 : vector<1x1x200xf32> to vector<1x200xf32>
    %32 = vector.broadcast %31 : vector<1x200xf32> to vector<8x200xf32>
    %33 = arith.addf %29, %32 : vector<8x200xf32>
    %cst_27 = arith.constant 0.000000e+00 : f32
    %34 = vector.broadcast %cst_27 : f32 to vector<8x200xf32>
    %35 = arith.maximumf %33, %34 : vector<8x200xf32>
    %c3 = arith.constant 3 : index
    %c0_28 = arith.constant 0 : index
    %c0_29 = arith.constant 0 : index
    %36 = vector.load %arg5[%c3, %c0_28, %c0_29] : memref<6x200x200xf32, #tpu.memory_space<vmem>>, vector<1x200x200xf32>
    %37 = vector.shape_cast %36 : vector<1x200x200xf32> to vector<200x200xf32>
    %cst_30 = arith.constant dense<0.000000e+00> : vector<8x200xf32>
    %38 = tpu.matmul %35, %37, %cst_30 {dimension_numbers = #tpu.dot_dimension_numbers<[1], [0], [0], [1], [0, 0, 1, 1], [], []>} : vector<8x200xf32>, vector<200x200xf32>, vector<8x200xf32> -> vector<8x200xf32>
    %c3_31 = arith.constant 3 : index
    %c0_32 = arith.constant 0 : index
    %c0_33 = arith.constant 0 : index
    %39 = vector.load %arg6[%c3_31, %c0_32, %c0_33] : memref<6x1x200xf32, #tpu.memory_space<vmem>>, vector<1x1x200xf32>
    %40 = vector.shape_cast %39 : vector<1x1x200xf32> to vector<1x200xf32>
    %41 = vector.broadcast %40 : vector<1x200xf32> to vector<8x200xf32>
    %42 = arith.addf %38, %41 : vector<8x200xf32>
    %43 = arith.addf %42, %26 : vector<8x200xf32>
    %cst_34 = arith.constant 0.000000e+00 : f32
    %44 = vector.broadcast %cst_34 : f32 to vector<8x200xf32>
    %45 = arith.maximumf %43, %44 : vector<8x200xf32>
    %c4 = arith.constant 4 : index
    %c0_35 = arith.constant 0 : index
    %c0_36 = arith.constant 0 : index
    %46 = vector.load %arg5[%c4, %c0_35, %c0_36] : memref<6x200x200xf32, #tpu.memory_space<vmem>>, vector<1x200x200xf32>
    %47 = vector.shape_cast %46 : vector<1x200x200xf32> to vector<200x200xf32>
    %cst_37 = arith.constant dense<0.000000e+00> : vector<8x200xf32>
    %48 = tpu.matmul %45, %47, %cst_37 {dimension_numbers = #tpu.dot_dimension_numbers<[1], [0], [0], [1], [0, 0, 1, 1], [], []>} : vector<8x200xf32>, vector<200x200xf32>, vector<8x200xf32> -> vector<8x200xf32>
    %c4_38 = arith.constant 4 : index
    %c0_39 = arith.constant 0 : index
    %c0_40 = arith.constant 0 : index
    %49 = vector.load %arg6[%c4_38, %c0_39, %c0_40] : memref<6x1x200xf32, #tpu.memory_space<vmem>>, vector<1x1x200xf32>
    %50 = vector.shape_cast %49 : vector<1x1x200xf32> to vector<1x200xf32>
    %51 = vector.broadcast %50 : vector<1x200xf32> to vector<8x200xf32>
    %52 = arith.addf %48, %51 : vector<8x200xf32>
    %cst_41 = arith.constant 0.000000e+00 : f32
    %53 = vector.broadcast %cst_41 : f32 to vector<8x200xf32>
    %54 = arith.maximumf %52, %53 : vector<8x200xf32>
    %c5 = arith.constant 5 : index
    %c0_42 = arith.constant 0 : index
    %c0_43 = arith.constant 0 : index
    %55 = vector.load %arg5[%c5, %c0_42, %c0_43] : memref<6x200x200xf32, #tpu.memory_space<vmem>>, vector<1x200x200xf32>
    %56 = vector.shape_cast %55 : vector<1x200x200xf32> to vector<200x200xf32>
    %cst_44 = arith.constant dense<0.000000e+00> : vector<8x200xf32>
    %57 = tpu.matmul %54, %56, %cst_44 {dimension_numbers = #tpu.dot_dimension_numbers<[1], [0], [0], [1], [0, 0, 1, 1], [], []>} : vector<8x200xf32>, vector<200x200xf32>, vector<8x200xf32> -> vector<8x200xf32>
    %c5_45 = arith.constant 5 : index
    %c0_46 = arith.constant 0 : index
    %c0_47 = arith.constant 0 : index
    %58 = vector.load %arg6[%c5_45, %c0_46, %c0_47] : memref<6x1x200xf32, #tpu.memory_space<vmem>>, vector<1x1x200xf32>
    %59 = vector.shape_cast %58 : vector<1x1x200xf32> to vector<1x200xf32>
    %60 = vector.broadcast %59 : vector<1x200xf32> to vector<8x200xf32>
    %61 = arith.addf %57, %60 : vector<8x200xf32>
    %62 = arith.addf %61, %45 : vector<8x200xf32>
    %cst_48 = arith.constant 0.000000e+00 : f32
    %63 = vector.broadcast %cst_48 : f32 to vector<8x200xf32>
    %64 = arith.maximumf %62, %63 : vector<8x200xf32>
    %c0_49 = arith.constant 0 : index
    %c0_50 = arith.constant 0 : index
    %65 = vector.load %arg7[%c0_49, %c0_50] : memref<200x400xf32, #tpu.memory_space<vmem>>, vector<200x400xf32>
    %cst_51 = arith.constant dense<0.000000e+00> : vector<8x400xf32>
    %66 = tpu.matmul %64, %65, %cst_51 {dimension_numbers = #tpu.dot_dimension_numbers<[1], [0], [0], [1], [0, 0, 1, 1], [], []>} : vector<8x200xf32>, vector<200x400xf32>, vector<8x400xf32> -> vector<8x400xf32>
    %c0_52 = arith.constant 0 : index
    %c0_53 = arith.constant 0 : index
    %67 = vector.load %arg8[%c0_52, %c0_53] : memref<1x400xf32, #tpu.memory_space<vmem>>, vector<1x400xf32>
    %68 = vector.broadcast %67 : vector<1x400xf32> to vector<8x400xf32>
    %69 = arith.addf %66, %68 : vector<8x400xf32>
    %cst_54 = arith.constant 0.000000e+00 : f32
    %70 = vector.broadcast %cst_54 : f32 to vector<8x400xf32>
    %71 = arith.maximumf %69, %70 : vector<8x400xf32>
    %c0_55 = arith.constant 0 : index
    %c0_56 = arith.constant 0 : index
    %72 = vector.load %arg13[%c0_55, %c0_56] : memref<4x8xf32, #tpu.memory_space<vmem>>, vector<4x8xf32>
    %cst_57 = arith.constant dense<0.000000e+00> : vector<4x400xf32>
    %73 = tpu.matmul %72, %71, %cst_57 {dimension_numbers = #tpu.dot_dimension_numbers<[1], [0], [0], [1], [0, 0, 1, 1], [], []>} : vector<4x8xf32>, vector<8x400xf32>, vector<4x400xf32> -> vector<4x400xf32>
    %c0_58 = arith.constant 0 : index
    %c0_59 = arith.constant 0 : index
    %74 = vector.load %arg9[%c0_58, %c0_59] : memref<400x16xf32, #tpu.memory_space<vmem>>, vector<400x16xf32>
    %cst_60 = arith.constant dense<0.000000e+00> : vector<4x16xf32>
    %75 = tpu.matmul %73, %74, %cst_60 {dimension_numbers = #tpu.dot_dimension_numbers<[1], [0], [0], [1], [0, 0, 1, 1], [], []>} : vector<4x400xf32>, vector<400x16xf32>, vector<4x16xf32> -> vector<4x16xf32>
    %c0_61 = arith.constant 0 : index
    %c0_62 = arith.constant 0 : index
    %76 = vector.load %arg10[%c0_61, %c0_62] : memref<1x16xf32, #tpu.memory_space<vmem>>, vector<1x16xf32>
    %77 = vector.broadcast %76 : vector<1x16xf32> to vector<4x16xf32>
    %78 = arith.addf %75, %77 : vector<4x16xf32>
    %79 = tpu.iota {dimensions = array<i32: 1>} : vector<4x5xi32>
    %c0_63 = arith.constant 0 : index
    %c0_64 = arith.constant 0 : index
    %80 = vector.load %arg1[%c0_63, %c0_64] : memref<4x1xi32, #tpu.memory_space<vmem>>, vector<4x1xi32>
    %81 = vector.broadcast %80 : vector<4x1xi32> to vector<4x5xi32>
    %82 = arith.cmpi eq, %79, %81 : vector<4x5xi32>
    %83 = arith.extui %82 : vector<4x5xi1> to vector<4x5xi32>
    %84 = arith.sitofp %83 : vector<4x5xi32> to vector<4x5xf32>
    %c0_65 = arith.constant 0 : index
    %c0_66 = arith.constant 0 : index
    %85 = vector.load %arg11[%c0_65, %c0_66] : memref<5x16xf32, #tpu.memory_space<vmem>>, vector<5x16xf32>
    %cst_67 = arith.constant dense<0.000000e+00> : vector<4x16xf32>
    %86 = tpu.matmul %84, %85, %cst_67 {dimension_numbers = #tpu.dot_dimension_numbers<[1], [0], [0], [1], [0, 0, 1, 1], [], []>} : vector<4x5xf32>, vector<5x16xf32>, vector<4x16xf32> -> vector<4x16xf32>
    %c0_68 = arith.constant 0 : index
    %c0_69 = arith.constant 0 : index
    %87 = vector.load %arg12[%c0_68, %c0_69] : memref<1x16xf32, #tpu.memory_space<vmem>>, vector<1x16xf32>
    %88 = vector.broadcast %87 : vector<1x16xf32> to vector<4x16xf32>
    %89 = arith.addf %86, %88 : vector<4x16xf32>
    %c0_70 = arith.constant 0 : index
    %c0_71 = arith.constant 0 : index
    %90 = vector.load %arg14[%c0_70, %c0_71] : memref<32x192xf32, #tpu.memory_space<vmem>>, vector<16x192xf32>
    %cst_72 = arith.constant dense<0.000000e+00> : vector<4x192xf32>
    %91 = tpu.matmul %78, %90, %cst_72 {dimension_numbers = #tpu.dot_dimension_numbers<[1], [0], [0], [1], [0, 0, 1, 1], [], []>} : vector<4x16xf32>, vector<16x192xf32>, vector<4x192xf32> -> vector<4x192xf32>
    %c16 = arith.constant 16 : index
    %c0_73 = arith.constant 0 : index
    %92 = vector.load %arg14[%c16, %c0_73] : memref<32x192xf32, #tpu.memory_space<vmem>>, vector<16x192xf32>
    %cst_74 = arith.constant dense<0.000000e+00> : vector<4x192xf32>
    %93 = tpu.matmul %89, %92, %cst_74 {dimension_numbers = #tpu.dot_dimension_numbers<[1], [0], [0], [1], [0, 0, 1, 1], [], []>} : vector<4x16xf32>, vector<16x192xf32>, vector<4x192xf32> -> vector<4x192xf32>
    %94 = arith.addf %91, %93 : vector<4x192xf32>
    %c0_75 = arith.constant 0 : index
    %c0_76 = arith.constant 0 : index
    %95 = vector.load %arg15[%c0_75, %c0_76] : memref<1x192xf32, #tpu.memory_space<vmem>>, vector<1x192xf32>
    %96 = vector.broadcast %95 : vector<1x192xf32> to vector<4x192xf32>
    %97 = arith.addf %94, %96 : vector<4x192xf32>
    %c0_77 = arith.constant 0 : index
    %c0_78 = arith.constant 0 : index
    %98 = vector.load %arg2[%c0_77, %c0_78] : memref<4x4xf32, #tpu.memory_space<vmem>>, vector<4x4xf32>
    %c0_79 = arith.constant 0 : index
    %c0_80 = arith.constant 0 : index
    %99 = vector.load %arg17[%c0_79, %c0_80] : memref<1x32xf32, #tpu.memory_space<vmem>>, vector<1x32xf32>
    %100 = vector.extract_strided_slice %97 {offsets = [0, 0], sizes = [4, 32], strides = [1, 1]} : vector<4x192xf32> to vector<4x32xf32>
    %101 = vector.extract_strided_slice %97 {offsets = [0, 64], sizes = [4, 32], strides = [1, 1]} : vector<4x192xf32> to vector<4x32xf32>
    %102 = vector.extract_strided_slice %97 {offsets = [0, 128], sizes = [4, 32], strides = [1, 1]} : vector<4x192xf32> to vector<4x32xf32>
    %cst_81 = arith.constant dense<0.000000e+00> : vector<4x4xf32>
    %103 = tpu.matmul %100, %101, %cst_81 {dimension_numbers = #tpu.dot_dimension_numbers<[1], [1], [0], [0], [0, 0, 1, 0], [], []>} : vector<4x32xf32>, vector<4x32xf32>, vector<4x4xf32> -> vector<4x4xf32>
    %c0_82 = arith.constant 0 : index
    %c0_83 = arith.constant 0 : index
    %104 = vector.load %arg16[%c0_82, %c0_83] : memref<64x32xf32, #tpu.memory_space<vmem>>, vector<32x32xf32>
    %cst_84 = arith.constant dense<0.000000e+00> : vector<4x32xf32>
    %105 = tpu.matmul %102, %104, %cst_84 {dimension_numbers = #tpu.dot_dimension_numbers<[1], [0], [0], [1], [0, 0, 1, 1], [], []>} : vector<4x32xf32>, vector<32x32xf32>, vector<4x32xf32> -> vector<4x32xf32>
    %106 = vector.extract_strided_slice %97 {offsets = [0, 32], sizes = [4, 32], strides = [1, 1]} : vector<4x192xf32> to vector<4x32xf32>
    %107 = vector.extract_strided_slice %97 {offsets = [0, 96], sizes = [4, 32], strides = [1, 1]} : vector<4x192xf32> to vector<4x32xf32>
    %108 = vector.extract_strided_slice %97 {offsets = [0, 160], sizes = [4, 32], strides = [1, 1]} : vector<4x192xf32> to vector<4x32xf32>
    %cst_85 = arith.constant dense<0.000000e+00> : vector<4x4xf32>
    %109 = tpu.matmul %106, %107, %cst_85 {dimension_numbers = #tpu.dot_dimension_numbers<[1], [1], [0], [0], [0, 0, 1, 0], [], []>} : vector<4x32xf32>, vector<4x32xf32>, vector<4x4xf32> -> vector<4x4xf32>
    %c32 = arith.constant 32 : index
    %c0_86 = arith.constant 0 : index
    %110 = vector.load %arg16[%c32, %c0_86] : memref<64x32xf32, #tpu.memory_space<vmem>>, vector<32x32xf32>
    %cst_87 = arith.constant dense<0.000000e+00> : vector<4x32xf32>
    %111 = tpu.matmul %108, %110, %cst_87 {dimension_numbers = #tpu.dot_dimension_numbers<[1], [0], [0], [1], [0, 0, 1, 1], [], []>} : vector<4x32xf32>, vector<32x32xf32>, vector<4x32xf32> -> vector<4x32xf32>
    %112 = vector.extract_strided_slice %98 {offsets = [0, 0], sizes = [1, 4], strides = [1, 1]} : vector<4x4xf32> to vector<1x4xf32>
    %cst_88 = arith.constant dense<0.000000e+00> : vector<1xf32>
    %113 = vector.multi_reduction <add>, %112, %cst_88 [1] : vector<1x4xf32> to vector<1xf32>
    %114 = vector.shape_cast %113 : vector<1xf32> to vector<1x1xf32>
    %115 = vector.broadcast %114 : vector<1x1xf32> to vector<1x32xf32>
    %116 = arith.mulf %115, %99 : vector<1x32xf32>
    %cst_89 = arith.constant 5.000000e-01 : f32
    %117 = vector.broadcast %cst_89 : f32 to vector<1x4xf32>
    %118 = arith.cmpf ogt, %112, %117 : vector<1x4xf32>
    %cst_90 = arith.constant -1.000000e+30 : f32
    %119 = vector.shape_cast %118 : vector<1x4xi1> to vector<1x4xi1>
    %120 = vector.broadcast %119 : vector<1x4xi1> to vector<4x4xi1>
    %121 = vector.broadcast %cst_90 : f32 to vector<4x4xf32>
    %122 = arith.select %120, %103, %121 : vector<4x4xi1>, vector<4x4xf32>
    %cst_91 = arith.constant dense<0xFF800000> : vector<4xf32>
    %123 = vector.multi_reduction <maximumf>, %122, %cst_91 [1] : vector<4x4xf32> to vector<4xf32>
    %124 = vector.shape_cast %123 : vector<4xf32> to vector<4x1xf32>
    %125 = vector.broadcast %124 : vector<4x1xf32> to vector<4x4xf32>
    %126 = arith.subf %122, %125 : vector<4x4xf32>
    %127 = math.exp %126 : vector<4x4xf32>
    %cst_92 = arith.constant dense<0.000000e+00> : vector<4xf32>
    %128 = vector.multi_reduction <add>, %127, %cst_92 [1] : vector<4x4xf32> to vector<4xf32>
    %129 = vector.shape_cast %128 : vector<4xf32> to vector<4x1xf32>
    %130 = tpu.reciprocal %129 {approx = true} : vector<4x1xf32> -> vector<4x1xf32>
    %131 = vector.broadcast %130 : vector<4x1xf32> to vector<4x4xf32>
    %132 = arith.mulf %127, %131 : vector<4x4xf32>
    %cst_93 = arith.constant dense<0.000000e+00> : vector<1x4xf32>
    %133 = tpu.matmul %112, %132, %cst_93 {dimension_numbers = #tpu.dot_dimension_numbers<[1], [0], [0], [1], [0, 0, 1, 1], [], []>} : vector<1x4xf32>, vector<4x4xf32>, vector<1x4xf32> -> vector<1x4xf32>
    %cst_94 = arith.constant dense<0.000000e+00> : vector<1x32xf32>
    %134 = tpu.matmul %133, %105, %cst_94 {dimension_numbers = #tpu.dot_dimension_numbers<[1], [0], [0], [1], [0, 0, 1, 1], [], []>} : vector<1x4xf32>, vector<4x32xf32>, vector<1x32xf32> -> vector<1x32xf32>
    %135 = arith.addf %116, %134 : vector<1x32xf32>
    %cst_95 = arith.constant 5.000000e-01 : f32
    %136 = vector.broadcast %cst_95 : f32 to vector<1x4xf32>
    %137 = arith.cmpf ogt, %112, %136 : vector<1x4xf32>
    %cst_96 = arith.constant -1.000000e+30 : f32
    %138 = vector.shape_cast %137 : vector<1x4xi1> to vector<1x4xi1>
    %139 = vector.broadcast %138 : vector<1x4xi1> to vector<4x4xi1>
    %140 = vector.broadcast %cst_96 : f32 to vector<4x4xf32>
    %141 = arith.select %139, %109, %140 : vector<4x4xi1>, vector<4x4xf32>
    %cst_97 = arith.constant dense<0xFF800000> : vector<4xf32>
    %142 = vector.multi_reduction <maximumf>, %141, %cst_97 [1] : vector<4x4xf32> to vector<4xf32>
    %143 = vector.shape_cast %142 : vector<4xf32> to vector<4x1xf32>
    %144 = vector.broadcast %143 : vector<4x1xf32> to vector<4x4xf32>
    %145 = arith.subf %141, %144 : vector<4x4xf32>
    %146 = math.exp %145 : vector<4x4xf32>
    %cst_98 = arith.constant dense<0.000000e+00> : vector<4xf32>
    %147 = vector.multi_reduction <add>, %146, %cst_98 [1] : vector<4x4xf32> to vector<4xf32>
    %148 = vector.shape_cast %147 : vector<4xf32> to vector<4x1xf32>
    %149 = tpu.reciprocal %148 {approx = true} : vector<4x1xf32> -> vector<4x1xf32>
    %150 = vector.broadcast %149 : vector<4x1xf32> to vector<4x4xf32>
    %151 = arith.mulf %146, %150 : vector<4x4xf32>
    %cst_99 = arith.constant dense<0.000000e+00> : vector<1x4xf32>
    %152 = tpu.matmul %112, %151, %cst_99 {dimension_numbers = #tpu.dot_dimension_numbers<[1], [0], [0], [1], [0, 0, 1, 1], [], []>} : vector<1x4xf32>, vector<4x4xf32>, vector<1x4xf32> -> vector<1x4xf32>
    %cst_100 = arith.constant dense<0.000000e+00> : vector<1x32xf32>
    %153 = tpu.matmul %152, %111, %cst_100 {dimension_numbers = #tpu.dot_dimension_numbers<[1], [0], [0], [1], [0, 0, 1, 1], [], []>} : vector<1x4xf32>, vector<4x32xf32>, vector<1x32xf32> -> vector<1x32xf32>
    %154 = arith.addf %135, %153 : vector<1x32xf32>
    %c0_101 = arith.constant 0 : index
    %c0_102 = arith.constant 0 : index
    %155 = vector.load %arg21[%c0_101, %c0_102] : memref<4x32xf32, #tpu.memory_space<vmem>>, vector<1x32xf32>
    tpu.vector_store %arg21[%c0_101, %c0_102], %154 {strides = array<i32>} : memref<4x32xf32, #tpu.memory_space<vmem>>, vector<1x32xf32>,
    %156 = vector.extract_strided_slice %98 {offsets = [1, 0], sizes = [1, 4], strides = [1, 1]} : vector<4x4xf32> to vector<1x4xf32>
    %cst_103 = arith.constant dense<0.000000e+00> : vector<1xf32>
    %157 = vector.multi_reduction <add>, %156, %cst_103 [1] : vector<1x4xf32> to vector<1xf32>
    %158 = vector.shape_cast %157 : vector<1xf32> to vector<1x1xf32>
    %159 = vector.broadcast %158 : vector<1x1xf32> to vector<1x32xf32>
    %160 = arith.mulf %159, %99 : vector<1x32xf32>
    %cst_104 = arith.constant 5.000000e-01 : f32
    %161 = vector.broadcast %cst_104 : f32 to vector<1x4xf32>
    %162 = arith.cmpf ogt, %156, %161 : vector<1x4xf32>
    %cst_105 = arith.constant -1.000000e+30 : f32
    %163 = vector.shape_cast %162 : vector<1x4xi1> to vector<1x4xi1>
    %164 = vector.broadcast %163 : vector<1x4xi1> to vector<4x4xi1>
    %165 = vector.broadcast %cst_105 : f32 to vector<4x4xf32>
    %166 = arith.select %164, %103, %165 : vector<4x4xi1>, vector<4x4xf32>
    %cst_106 = arith.constant dense<0xFF800000> : vector<4xf32>
    %167 = vector.multi_reduction <maximumf>, %166, %cst_106 [1] : vector<4x4xf32> to vector<4xf32>
    %168 = vector.shape_cast %167 : vector<4xf32> to vector<4x1xf32>
    %169 = vector.broadcast %168 : vector<4x1xf32> to vector<4x4xf32>
    %170 = arith.subf %166, %169 : vector<4x4xf32>
    %171 = math.exp %170 : vector<4x4xf32>
    %cst_107 = arith.constant dense<0.000000e+00> : vector<4xf32>
    %172 = vector.multi_reduction <add>, %171, %cst_107 [1] : vector<4x4xf32> to vector<4xf32>
    %173 = vector.shape_cast %172 : vector<4xf32> to vector<4x1xf32>
    %174 = tpu.reciprocal %173 {approx = true} : vector<4x1xf32> -> vector<4x1xf32>
    %175 = vector.broadcast %174 : vector<4x1xf32> to vector<4x4xf32>
    %176 = arith.mulf %171, %175 : vector<4x4xf32>
    %cst_108 = arith.constant dense<0.000000e+00> : vector<1x4xf32>
    %177 = tpu.matmul %156, %176, %cst_108 {dimension_numbers = #tpu.dot_dimension_numbers<[1], [0], [0], [1], [0, 0, 1, 1], [], []>} : vector<1x4xf32>, vector<4x4xf32>, vector<1x4xf32> -> vector<1x4xf32>
    %cst_109 = arith.constant dense<0.000000e+00> : vector<1x32xf32>
    %178 = tpu.matmul %177, %105, %cst_109 {dimension_numbers = #tpu.dot_dimension_numbers<[1], [0], [0], [1], [0, 0, 1, 1], [], []>} : vector<1x4xf32>, vector<4x32xf32>, vector<1x32xf32> -> vector<1x32xf32>
    %179 = arith.addf %160, %178 : vector<1x32xf32>
    %cst_110 = arith.constant 5.000000e-01 : f32
    %180 = vector.broadcast %cst_110 : f32 to vector<1x4xf32>
    %181 = arith.cmpf ogt, %156, %180 : vector<1x4xf32>
    %cst_111 = arith.constant -1.000000e+30 : f32
    %182 = vector.shape_cast %181 : vector<1x4xi1> to vector<1x4xi1>
    %183 = vector.broadcast %182 : vector<1x4xi1> to vector<4x4xi1>
    %184 = vector.broadcast %cst_111 : f32 to vector<4x4xf32>
    %185 = arith.select %183, %109, %184 : vector<4x4xi1>, vector<4x4xf32>
    %cst_112 = arith.constant dense<0xFF800000> : vector<4xf32>
    %186 = vector.multi_reduction <maximumf>, %185, %cst_112 [1] : vector<4x4xf32> to vector<4xf32>
    %187 = vector.shape_cast %186 : vector<4xf32> to vector<4x1xf32>
    %188 = vector.broadcast %187 : vector<4x1xf32> to vector<4x4xf32>
    %189 = arith.subf %185, %188 : vector<4x4xf32>
    %190 = math.exp %189 : vector<4x4xf32>
    %cst_113 = arith.constant dense<0.000000e+00> : vector<4xf32>
    %191 = vector.multi_reduction <add>, %190, %cst_113 [1] : vector<4x4xf32> to vector<4xf32>
    %192 = vector.shape_cast %191 : vector<4xf32> to vector<4x1xf32>
    %193 = tpu.reciprocal %192 {approx = true} : vector<4x1xf32> -> vector<4x1xf32>
    %194 = vector.broadcast %193 : vector<4x1xf32> to vector<4x4xf32>
    %195 = arith.mulf %190, %194 : vector<4x4xf32>
    %cst_114 = arith.constant dense<0.000000e+00> : vector<1x4xf32>
    %196 = tpu.matmul %156, %195, %cst_114 {dimension_numbers = #tpu.dot_dimension_numbers<[1], [0], [0], [1], [0, 0, 1, 1], [], []>} : vector<1x4xf32>, vector<4x4xf32>, vector<1x4xf32> -> vector<1x4xf32>
    %cst_115 = arith.constant dense<0.000000e+00> : vector<1x32xf32>
    %197 = tpu.matmul %196, %111, %cst_115 {dimension_numbers = #tpu.dot_dimension_numbers<[1], [0], [0], [1], [0, 0, 1, 1], [], []>} : vector<1x4xf32>, vector<4x32xf32>, vector<1x32xf32> -> vector<1x32xf32>
    %198 = arith.addf %179, %197 : vector<1x32xf32>
    %c1_116 = arith.constant 1 : index
    %c0_117 = arith.constant 0 : index
    %199 = vector.load %arg21[%c1_116, %c0_117] : memref<4x32xf32, #tpu.memory_space<vmem>>, vector<1x32xf32>
    tpu.vector_store %arg21[%c1_116, %c0_117], %198 {strides = array<i32>} : memref<4x32xf32, #tpu.memory_space<vmem>>, vector<1x32xf32>,
    %200 = vector.extract_strided_slice %98 {offsets = [2, 0], sizes = [1, 4], strides = [1, 1]} : vector<4x4xf32> to vector<1x4xf32>
    %cst_118 = arith.constant dense<0.000000e+00> : vector<1xf32>
    %201 = vector.multi_reduction <add>, %200, %cst_118 [1] : vector<1x4xf32> to vector<1xf32>
    %202 = vector.shape_cast %201 : vector<1xf32> to vector<1x1xf32>
    %203 = vector.broadcast %202 : vector<1x1xf32> to vector<1x32xf32>
    %204 = arith.mulf %203, %99 : vector<1x32xf32>
    %cst_119 = arith.constant 5.000000e-01 : f32
    %205 = vector.broadcast %cst_119 : f32 to vector<1x4xf32>
    %206 = arith.cmpf ogt, %200, %205 : vector<1x4xf32>
    %cst_120 = arith.constant -1.000000e+30 : f32
    %207 = vector.shape_cast %206 : vector<1x4xi1> to vector<1x4xi1>
    %208 = vector.broadcast %207 : vector<1x4xi1> to vector<4x4xi1>
    %209 = vector.broadcast %cst_120 : f32 to vector<4x4xf32>
    %210 = arith.select %208, %103, %209 : vector<4x4xi1>, vector<4x4xf32>
    %cst_121 = arith.constant dense<0xFF800000> : vector<4xf32>
    %211 = vector.multi_reduction <maximumf>, %210, %cst_121 [1] : vector<4x4xf32> to vector<4xf32>
    %212 = vector.shape_cast %211 : vector<4xf32> to vector<4x1xf32>
    %213 = vector.broadcast %212 : vector<4x1xf32> to vector<4x4xf32>
    %214 = arith.subf %210, %213 : vector<4x4xf32>
    %215 = math.exp %214 : vector<4x4xf32>
    %cst_122 = arith.constant dense<0.000000e+00> : vector<4xf32>
    %216 = vector.multi_reduction <add>, %215, %cst_122 [1] : vector<4x4xf32> to vector<4xf32>
    %217 = vector.shape_cast %216 : vector<4xf32> to vector<4x1xf32>
    %218 = tpu.reciprocal %217 {approx = true} : vector<4x1xf32> -> vector<4x1xf32>
    %219 = vector.broadcast %218 : vector<4x1xf32> to vector<4x4xf32>
    %220 = arith.mulf %215, %219 : vector<4x4xf32>
    %cst_123 = arith.constant dense<0.000000e+00> : vector<1x4xf32>
    %221 = tpu.matmul %200, %220, %cst_123 {dimension_numbers = #tpu.dot_dimension_numbers<[1], [0], [0], [1], [0, 0, 1, 1], [], []>} : vector<1x4xf32>, vector<4x4xf32>, vector<1x4xf32> -> vector<1x4xf32>
    %cst_124 = arith.constant dense<0.000000e+00> : vector<1x32xf32>
    %222 = tpu.matmul %221, %105, %cst_124 {dimension_numbers = #tpu.dot_dimension_numbers<[1], [0], [0], [1], [0, 0, 1, 1], [], []>} : vector<1x4xf32>, vector<4x32xf32>, vector<1x32xf32> -> vector<1x32xf32>
    %223 = arith.addf %204, %222 : vector<1x32xf32>
    %cst_125 = arith.constant 5.000000e-01 : f32
    %224 = vector.broadcast %cst_125 : f32 to vector<1x4xf32>
    %225 = arith.cmpf ogt, %200, %224 : vector<1x4xf32>
    %cst_126 = arith.constant -1.000000e+30 : f32
    %226 = vector.shape_cast %225 : vector<1x4xi1> to vector<1x4xi1>
    %227 = vector.broadcast %226 : vector<1x4xi1> to vector<4x4xi1>
    %228 = vector.broadcast %cst_126 : f32 to vector<4x4xf32>
    %229 = arith.select %227, %109, %228 : vector<4x4xi1>, vector<4x4xf32>
    %cst_127 = arith.constant dense<0xFF800000> : vector<4xf32>
    %230 = vector.multi_reduction <maximumf>, %229, %cst_127 [1] : vector<4x4xf32> to vector<4xf32>
    %231 = vector.shape_cast %230 : vector<4xf32> to vector<4x1xf32>
    %232 = vector.broadcast %231 : vector<4x1xf32> to vector<4x4xf32>
    %233 = arith.subf %229, %232 : vector<4x4xf32>
    %234 = math.exp %233 : vector<4x4xf32>
    %cst_128 = arith.constant dense<0.000000e+00> : vector<4xf32>
    %235 = vector.multi_reduction <add>, %234, %cst_128 [1] : vector<4x4xf32> to vector<4xf32>
    %236 = vector.shape_cast %235 : vector<4xf32> to vector<4x1xf32>
    %237 = tpu.reciprocal %236 {approx = true} : vector<4x1xf32> -> vector<4x1xf32>
    %238 = vector.broadcast %237 : vector<4x1xf32> to vector<4x4xf32>
    %239 = arith.mulf %234, %238 : vector<4x4xf32>
    %cst_129 = arith.constant dense<0.000000e+00> : vector<1x4xf32>
    %240 = tpu.matmul %200, %239, %cst_129 {dimension_numbers = #tpu.dot_dimension_numbers<[1], [0], [0], [1], [0, 0, 1, 1], [], []>} : vector<1x4xf32>, vector<4x4xf32>, vector<1x4xf32> -> vector<1x4xf32>
    %cst_130 = arith.constant dense<0.000000e+00> : vector<1x32xf32>
    %241 = tpu.matmul %240, %111, %cst_130 {dimension_numbers = #tpu.dot_dimension_numbers<[1], [0], [0], [1], [0, 0, 1, 1], [], []>} : vector<1x4xf32>, vector<4x32xf32>, vector<1x32xf32> -> vector<1x32xf32>
    %242 = arith.addf %223, %241 : vector<1x32xf32>
    %c2_131 = arith.constant 2 : index
    %c0_132 = arith.constant 0 : index
    %243 = vector.load %arg21[%c2_131, %c0_132] : memref<4x32xf32, #tpu.memory_space<vmem>>, vector<1x32xf32>
    tpu.vector_store %arg21[%c2_131, %c0_132], %242 {strides = array<i32>} : memref<4x32xf32, #tpu.memory_space<vmem>>, vector<1x32xf32>,
    %244 = vector.extract_strided_slice %98 {offsets = [3, 0], sizes = [1, 4], strides = [1, 1]} : vector<4x4xf32> to vector<1x4xf32>
    %cst_133 = arith.constant dense<0.000000e+00> : vector<1xf32>
    %245 = vector.multi_reduction <add>, %244, %cst_133 [1] : vector<1x4xf32> to vector<1xf32>
    %246 = vector.shape_cast %245 : vector<1xf32> to vector<1x1xf32>
    %247 = vector.broadcast %246 : vector<1x1xf32> to vector<1x32xf32>
    %248 = arith.mulf %247, %99 : vector<1x32xf32>
    %cst_134 = arith.constant 5.000000e-01 : f32
    %249 = vector.broadcast %cst_134 : f32 to vector<1x4xf32>
    %250 = arith.cmpf ogt, %244, %249 : vector<1x4xf32>
    %cst_135 = arith.constant -1.000000e+30 : f32
    %251 = vector.shape_cast %250 : vector<1x4xi1> to vector<1x4xi1>
    %252 = vector.broadcast %251 : vector<1x4xi1> to vector<4x4xi1>
    %253 = vector.broadcast %cst_135 : f32 to vector<4x4xf32>
    %254 = arith.select %252, %103, %253 : vector<4x4xi1>, vector<4x4xf32>
    %cst_136 = arith.constant dense<0xFF800000> : vector<4xf32>
    %255 = vector.multi_reduction <maximumf>, %254, %cst_136 [1] : vector<4x4xf32> to vector<4xf32>
    %256 = vector.shape_cast %255 : vector<4xf32> to vector<4x1xf32>
    %257 = vector.broadcast %256 : vector<4x1xf32> to vector<4x4xf32>
    %258 = arith.subf %254, %257 : vector<4x4xf32>
    %259 = math.exp %258 : vector<4x4xf32>
    %cst_137 = arith.constant dense<0.000000e+00> : vector<4xf32>
    %260 = vector.multi_reduction <add>, %259, %cst_137 [1] : vector<4x4xf32> to vector<4xf32>
    %261 = vector.shape_cast %260 : vector<4xf32> to vector<4x1xf32>
    %262 = tpu.reciprocal %261 {approx = true} : vector<4x1xf32> -> vector<4x1xf32>
    %263 = vector.broadcast %262 : vector<4x1xf32> to vector<4x4xf32>
    %264 = arith.mulf %259, %263 : vector<4x4xf32>
    %cst_138 = arith.constant dense<0.000000e+00> : vector<1x4xf32>
    %265 = tpu.matmul %244, %264, %cst_138 {dimension_numbers = #tpu.dot_dimension_numbers<[1], [0], [0], [1], [0, 0, 1, 1], [], []>} : vector<1x4xf32>, vector<4x4xf32>, vector<1x4xf32> -> vector<1x4xf32>
    %cst_139 = arith.constant dense<0.000000e+00> : vector<1x32xf32>
    %266 = tpu.matmul %265, %105, %cst_139 {dimension_numbers = #tpu.dot_dimension_numbers<[1], [0], [0], [1], [0, 0, 1, 1], [], []>} : vector<1x4xf32>, vector<4x32xf32>, vector<1x32xf32> -> vector<1x32xf32>
    %267 = arith.addf %248, %266 : vector<1x32xf32>
    %cst_140 = arith.constant 5.000000e-01 : f32
    %268 = vector.broadcast %cst_140 : f32 to vector<1x4xf32>
    %269 = arith.cmpf ogt, %244, %268 : vector<1x4xf32>
    %cst_141 = arith.constant -1.000000e+30 : f32
    %270 = vector.shape_cast %269 : vector<1x4xi1> to vector<1x4xi1>
    %271 = vector.broadcast %270 : vector<1x4xi1> to vector<4x4xi1>
    %272 = vector.broadcast %cst_141 : f32 to vector<4x4xf32>
    %273 = arith.select %271, %109, %272 : vector<4x4xi1>, vector<4x4xf32>
    %cst_142 = arith.constant dense<0xFF800000> : vector<4xf32>
    %274 = vector.multi_reduction <maximumf>, %273, %cst_142 [1] : vector<4x4xf32> to vector<4xf32>
    %275 = vector.shape_cast %274 : vector<4xf32> to vector<4x1xf32>
    %276 = vector.broadcast %275 : vector<4x1xf32> to vector<4x4xf32>
    %277 = arith.subf %273, %276 : vector<4x4xf32>
    %278 = math.exp %277 : vector<4x4xf32>
    %cst_143 = arith.constant dense<0.000000e+00> : vector<4xf32>
    %279 = vector.multi_reduction <add>, %278, %cst_143 [1] : vector<4x4xf32> to vector<4xf32>
    %280 = vector.shape_cast %279 : vector<4xf32> to vector<4x1xf32>
    %281 = tpu.reciprocal %280 {approx = true} : vector<4x1xf32> -> vector<4x1xf32>
    %282 = vector.broadcast %281 : vector<4x1xf32> to vector<4x4xf32>
    %283 = arith.mulf %278, %282 : vector<4x4xf32>
    %cst_144 = arith.constant dense<0.000000e+00> : vector<1x4xf32>
    %284 = tpu.matmul %244, %283, %cst_144 {dimension_numbers = #tpu.dot_dimension_numbers<[1], [0], [0], [1], [0, 0, 1, 1], [], []>} : vector<1x4xf32>, vector<4x4xf32>, vector<1x4xf32> -> vector<1x4xf32>
    %cst_145 = arith.constant dense<0.000000e+00> : vector<1x32xf32>
    %285 = tpu.matmul %284, %111, %cst_145 {dimension_numbers = #tpu.dot_dimension_numbers<[1], [0], [0], [1], [0, 0, 1, 1], [], []>} : vector<1x4xf32>, vector<4x32xf32>, vector<1x32xf32> -> vector<1x32xf32>
    %286 = arith.addf %267, %285 : vector<1x32xf32>
    %c3_146 = arith.constant 3 : index
    %c0_147 = arith.constant 0 : index
    %287 = vector.load %arg21[%c3_146, %c0_147] : memref<4x32xf32, #tpu.memory_space<vmem>>, vector<1x32xf32>
    tpu.vector_store %arg21[%c3_146, %c0_147], %286 {strides = array<i32>} : memref<4x32xf32, #tpu.memory_space<vmem>>, vector<1x32xf32>,
    %c0_148 = arith.constant 0 : index
    %c0_149 = arith.constant 0 : index
    %288 = vector.load %arg21[%c0_148, %c0_149] : memref<4x32xf32, #tpu.memory_space<vmem>>, vector<4x32xf32>
    %c0_150 = arith.constant 0 : index
    %c0_151 = arith.constant 0 : index
    %289 = vector.load %arg18[%c0_150, %c0_151] : memref<32x6xf32, #tpu.memory_space<vmem>>, vector<32x6xf32>
    %cst_152 = arith.constant dense<0.000000e+00> : vector<4x6xf32>
    %290 = tpu.matmul %288, %289, %cst_152 {dimension_numbers = #tpu.dot_dimension_numbers<[1], [0], [0], [1], [0, 0, 1, 1], [], []>} : vector<4x32xf32>, vector<32x6xf32>, vector<4x6xf32> -> vector<4x6xf32>
    %c0_153 = arith.constant 0 : index
    %c0_154 = arith.constant 0 : index
    %291 = vector.load %arg19[%c0_153, %c0_154] : memref<1x6xf32, #tpu.memory_space<vmem>>, vector<1x6xf32>
    %292 = vector.broadcast %291 : vector<1x6xf32> to vector<4x6xf32>
    %293 = arith.addf %290, %292 : vector<4x6xf32>
    %294 = vector.extract_strided_slice %293 {offsets = [0, 0], sizes = [4, 1], strides = [1, 1]} : vector<4x6xf32> to vector<4x1xf32>
    %295 = vector.extract_strided_slice %293 {offsets = [0, 1], sizes = [4, 5], strides = [1, 1]} : vector<4x6xf32> to vector<4x5xf32>
    %296 = vector.broadcast %294 : vector<4x1xf32> to vector<4x5xf32>
    %297 = arith.addf %296, %295 : vector<4x5xf32>
    %cst_155 = arith.constant dense<0.000000e+00> : vector<4xf32>
    %298 = vector.multi_reduction <add>, %295, %cst_155 [1] : vector<4x5xf32> to vector<4xf32>
    %299 = vector.shape_cast %298 : vector<4xf32> to vector<4x1xf32>
    %cst_156 = arith.constant 5.000000e+00 : f32
    %300 = vector.broadcast %cst_156 : f32 to vector<4x1xf32>
    %301 = arith.divf %299, %300 : vector<4x1xf32>
    %302 = vector.broadcast %301 : vector<4x1xf32> to vector<4x5xf32>
    %303 = arith.subf %297, %302 : vector<4x5xf32>
    %c0_157 = arith.constant 0 : index
    %c0_158 = arith.constant 0 : index
    %304 = vector.load %arg20[%c0_157, %c0_158] : memref<4x5xf32, #tpu.memory_space<vmem>>, vector<4x5xf32>
    tpu.vector_store %arg20[%c0_157, %c0_158], %303 {strides = array<i32>} : memref<4x5xf32, #tpu.memory_space<vmem>>, vector<4x5xf32>,
    return
  }
}

</mosaic_0001>

<bundles_post_ra>
// kernel: attention_critic_forward.1
= control target key start
LH: loop header
LB: loop body
LE: loop exit
PB: predicated region body
PF: predicated region fallthrough
CT: control target
= control target key end

     0   :  { %s5931_s0 = inlined_call_operand.vmem [shape: f32[8,75], index: 0, kind: input, shape index: {}]   ;;  %s5932_s1 = inlined_call_operand.vmem [shape: s32[4,1], index: 1, kind: input, shape index: {}]   ;;  %s5933_s2 = inlined_call_operand.hbm [shape: f32[4,4], index: 2, kind: input, shape index: {}]   ;;  %s5934_s3 = inlined_call_operand.hbm [shape: f32[75,200], index: 3, kind: input, shape index: {}]   ;;  %s5935_s4 = inlined_call_operand.hbm [shape: f32[1,200], index: 4, kind: input, shape index: {}]   ;;  %s5936_s5 = inlined_call_operand.hbm [shape: f32[6,200,200], index: 5, kind: input, shape index: {}]   ;;  %s5937_s6 = inlined_call_operand.hbm [shape: f32[6,1,200], index: 6, kind: input, shape index: {}]   ;;  %s5938_s7 = inlined_call_operand.hbm [shape: f32[200,400], index: 7, kind: input, shape index: {}]   ;;  %s5939_s8 = inlined_call_operand.hbm [shape: f32[1,400], index: 8, kind: input, shape index: {}]   ;;  %s5940_s9 = inlined_call_operand.vmem [shape: f32[400,16], index: 9, kind: input, shape index: {}]   ;;  %s5941_s10 = inlined_call_operand.hbm [shape: f32[1,16], index: 10, kind: input, shape index: {}]   ;;  %s5942_s11 = inlined_call_operand.hbm [shape: f32[5,16], index: 11, kind: input, shape index: {}]   ;;  %s5943_s12 = inlined_call_operand.hbm [shape: f32[1,16], index: 12, kind: input, shape index: {}]   ;;  %s5944_s13 = inlined_call_operand.hbm [shape: f32[4,8], index: 13, kind: input, shape index: {}]   ;;  %s5945_s14 = inlined_call_operand.hbm [shape: f32[32,192], index: 14, kind: input, shape index: {}]   ;;  %s5946_s15 = inlined_call_operand.hbm [shape: f32[1,192], index: 15, kind: input, shape index: {}]   ;;  %s5947_s16 = inlined_call_operand.vmem [shape: f32[64,32], index: 16, kind: input, shape index: {}]   ;;  %s5948_s17 = inlined_call_operand.hbm [shape: f32[1,32], index: 17, kind: input, shape index: {}]   ;;  %s5949_s18 = inlined_call_operand.vmem [shape: f32[32,6], index: 18, kind: input, shape index: {}]   ;;  %s5950_s19 = inlined_call_operand.hbm [shape: f32[1,6], index: 19, kind: input, shape index: {}]   ;;  %s5951_s20 = inlined_call_operand.hbm [shape: f32[4,5], index: 20, kind: output, shape index: {}]  }
   0x1   :  { %5957 = sst [smem:[#allocation37_spill]] %s5931_s0 }
   0x2   :  { %5958 = sst [smem:[#allocation38_spill]] %s5932_s1 }
   0x3   :  { %5959 = sst [smem:[#allocation39_spill]] %s5933_s2 }
   0x4   :  { %5960 = sst [smem:[#allocation40_spill]] %s5934_s3 }
   0x5   :  { %5961 = sst [smem:[#allocation41_spill]] %s5935_s4 }
   0x6   :  { %5962 = sst [smem:[#allocation42_spill]] %s5951_s20 }
   0x7   :  { %25 = vsyncpa [#allocation4], 0 }
   0x8   :  { %26 = vsyncpa [#allocation7], 0 }
   0x9   :  { %27 = vsyncpa [#allocation10], 0 }
   0xa   :  { %28 = vsyncpa [#allocation13], 0 }
   0xb   :  { %29 = vsyncpa [#allocation16], 0 }
   0xc   :  { %30 = vsyncpa [#allocation19], 0 }
   0xd   :  { %31 = vsyncpa [#allocation22], 0 }
   0xe   :  { %32 = vsyncpa [#allocation25], 0 }
   0xf   :  { %33 = vsyncpa [#allocation5], 0  ;;  %s5109_s1 = smov [#allocation6]   ;;  %s5963_s2 = sld [smem:[#allocation40_spill]] }
  0x10   :  { %s53_s22 = sshll.u32 %s5109_s1, 4  ;;  %s54_s22 = int_to_ptr.vmem [resolvable:$true] %s53_s22 }
  0x15   :  { %s4739_s25 = scalar_lea.hbm %s5963_s2, 2560 }
  0x16   :  { %p4740_p0 = scmp.ne.s32.totalorder %s5963_s2, %s4739_s25  ;;  %p4743_p1 = scmp.lt.u32.totalorder %s4739_s25, %s5963_s2 }
  0x18   :  { %p4745_p2 = pnand %p4743_p1, %p4740_p0 }
  0x1a   :  { %4748 = shalt.err (!%p4745_p2)
}
  0x1b   :  { %s4749_s4 = scalar_lea.vmem %s54_s22, 2560  ;;  %p4754_p4 = scmp.lt.s32.totalorder %s54_s22, %s54_s22 }
  0x1c   :  { %p4750_p3 = scmp.ne.s32.totalorder %s54_s22, %s4749_s4  ;;  %p4755_p5 = scmp.lt.s32.totalorder %s4749_s4, %s4749_s4 }
  0x1e   :  { %p4756_p6 = por %p4755_p5, %p4754_p4 }
  0x20   :  { %p4757_p7 = pnand %p4756_p6, %p4750_p3 }
  0x22   :  { %4760 = shalt.err (!%p4757_p7)
}
  0x23   :  { %s5956_s29 = smov 256   ;;  %s5111_s30 = smov 16  }
  0x24   :  { %59 = dma.hbm_to_vmem [thread:$0]  %s5963_s2, 2560, %s54_s22, [#allocation7], %s5956_s29, %s5956_s29, %s5111_s30  }
  0x25   :  { %s5112_s1 = smov [#allocation9]   ;;  %s4761_s3 = scalar_lea.hbm %s5936_s5, 38400 }
  0x26   :  { %s75_s23 = sshll.u32 %s5112_s1, 4  ;;  %p4762_p8 = scmp.ne.s32.totalorder %s5936_s5, %s4761_s3  ;;  %s76_s23 = int_to_ptr.vmem [resolvable:$true] %s75_s23 }
  0x27   :  { %p4765_p9 = scmp.lt.u32.totalorder %s4761_s3, %s5936_s5 }
  0x29   :  { %p4767_p10 = pnand %p4765_p9, %p4762_p8 }
  0x2b   :  { %4770 = shalt.err (!%p4767_p10)
}
  0x2c   :  { %s4771_s20 = scalar_lea.vmem %s76_s23, 38400  ;;  %p4776_p12 = scmp.lt.s32.totalorder %s76_s23, %s76_s23 }
  0x2d   :  { %p4772_p11 = scmp.ne.s32.totalorder %s76_s23, %s4771_s20  ;;  %p4777_p13 = scmp.lt.s32.totalorder %s4771_s20, %s4771_s20 }
  0x2f   :  { %p4778_p0 = por %p4777_p13, %p4776_p12 }
  0x31   :  { %p4779_p1 = pnand %p4778_p0, %p4772_p11 }
  0x33   :  { %4782 = shalt.err (!%p4779_p1)
}
  0x34   :  { %81 = dma.hbm_to_vmem [thread:$0]  %s5936_s5, 38400, %s76_s23, [#allocation10], %s5956_s29, %s5956_s29, %s5111_s30  }
  0x35   :  { %s5113_s0 = smov [#allocation12]   ;;  %s4783_s25 = scalar_lea.hbm %s5938_s7, 12800 }
  0x36   :  { %s99_s21 = sshll.u32 %s5113_s0, 4  ;;  %p4784_p2 = scmp.ne.s32.totalorder %s5938_s7, %s4783_s25  ;;  %s100_s21 = int_to_ptr.vmem [resolvable:$true] %s99_s21 }
  0x37   :  { %p4787_p3 = scmp.lt.u32.totalorder %s4783_s25, %s5938_s7 }
  0x39   :  { %p4789_p4 = pnand %p4787_p3, %p4784_p2 }
  0x3b   :  { %4792 = shalt.err (!%p4789_p4)
}
  0x3c   :  { %s4793_s28 = scalar_lea.vmem %s100_s21, 12800  ;;  %p4798_p6 = scmp.lt.s32.totalorder %s100_s21, %s100_s21 }
  0x3d   :  { %p4794_p5 = scmp.ne.s32.totalorder %s100_s21, %s4793_s28  ;;  %p4799_p7 = scmp.lt.s32.totalorder %s4793_s28, %s4793_s28 }
  0x3f   :  { %p4800_p8 = por %p4799_p7, %p4798_p6 }
  0x41   :  { %p4801_p9 = pnand %p4800_p8, %p4794_p5 }
  0x43   :  { %4804 = shalt.err (!%p4801_p9)
}
  0x44   :  { %s5114_s5 = smov 512   ;;  %s5115_s23 = smov 32  }
  0x45   :  { %105 = dma.hbm_to_vmem [thread:$0]  %s5938_s7, 12800, %s100_s21, [#allocation13], %s5114_s5, %s5114_s5, %s5115_s23  }
  0x46   :  { %s5116_s2 = smov [#allocation15]   ;;  %s5117_s1 = smov [#allocation18]  }
  0x47   :  { %s124_s0 = sshll.u32 %s5116_s2, 4  ;;  %s144_s24 = sshll.u32 %s5117_s1, 4  ;;  %s125_s0 = int_to_ptr.vmem [resolvable:$true] %s124_s0  ;;  %s145_s24 = int_to_ptr.vmem [resolvable:$true] %s144_s24 }
  0x48   :  { %s4805_s26 = scalar_lea.hbm %s5941_s10, 16 }
  0x49   :  { %p4806_p10 = scmp.ne.s32.totalorder %s5941_s10, %s4805_s26  ;;  %p4809_p11 = scmp.lt.u32.totalorder %s4805_s26, %s5941_s10 }
  0x4b   :  { %p4811_p12 = pnand %p4809_p11, %p4806_p10 }
  0x4d   :  { %4814 = shalt.err (!%p4811_p12)
}
  0x4e   :  { %s4815_s7 = scalar_lea.vmem %s125_s0, 16  ;;  %s4819_s21 = scalar_lea.vmem %s125_s0, 32 }
  0x4f   :  { %p4816_p13 = scmp.ne.s32.totalorder %s125_s0, %s4815_s7  ;;  %p4820_p0 = scmp.lt.s32.totalorder %s125_s0, %s125_s0 }
  0x50   :  { %p4821_p1 = scmp.lt.s32.totalorder %s4819_s21, %s4815_s7 }
  0x52   :  { %p4822_p2 = por %p4821_p1, %p4820_p0 }
  0x54   :  { %p4823_p3 = pnand %p4822_p2, %p4816_p13 }
  0x56   :  { %4826 = shalt.err (!%p4823_p3)
}
  0x57   :  { %127 = dma.hbm_to_vmem [thread:$0]  %s5941_s10, 16, %s125_s0, [#allocation16]  }
  0x58   :  { %s4827_s29 = scalar_lea.hbm %s5943_s12, 16 }
  0x59   :  { %p4828_p4 = scmp.ne.s32.totalorder %s5943_s12, %s4827_s29  ;;  %p4831_p5 = scmp.lt.u32.totalorder %s4827_s29, %s5943_s12 }
  0x5b   :  { %p4833_p6 = pnand %p4831_p5, %p4828_p4 }
  0x5d   :  { %4836 = shalt.err (!%p4833_p6)
}
  0x5e   :  { %s4837_s20 = scalar_lea.vmem %s145_s24, 16  ;;  %s4841_s27 = scalar_lea.vmem %s145_s24, 32 }
  0x5f   :  { %p4838_p7 = scmp.ne.s32.totalorder %s145_s24, %s4837_s20  ;;  %p4842_p8 = scmp.lt.s32.totalorder %s145_s24, %s145_s24 }
  0x60   :  { %p4843_p9 = scmp.lt.s32.totalorder %s4841_s27, %s4837_s20 }
  0x62   :  { %p4844_p10 = por %p4843_p9, %p4842_p8 }
  0x64   :  { %p4845_p11 = pnand %p4844_p10, %p4838_p7 }
  0x66   :  { %4848 = shalt.err (!%p4845_p11)
}
  0x67   :  { %147 = dma.hbm_to_vmem [thread:$0]  %s5943_s12, 16, %s145_s24, [#allocation19]  }
  0x68   :  { %s5118_s28 = smov [#allocation21]   ;;  %s5119_s21 = smov [#allocation24]  }
  0x69   :  { %s163_s7 = sshll.u32 %s5118_s28, 4  ;;  %s188_s5 = sshll.u32 %s5119_s21, 4  ;;  %s164_s7 = int_to_ptr.vmem [resolvable:$true] %s163_s7  ;;  %s189_s5 = int_to_ptr.vmem [resolvable:$true] %s188_s5 }
  0x6a   :  { %s4849_s2 = scalar_lea.hbm %s5945_s14, 1024 }
  0x6b   :  { %p4850_p12 = scmp.ne.s32.totalorder %s5945_s14, %s4849_s2  ;;  %p4853_p13 = scmp.lt.u32.totalorder %s4849_s2, %s5945_s14 }
  0x6d   :  { %p4855_p0 = pnand %p4853_p13, %p4850_p12 }
  0x6f   :  { %4858 = shalt.err (!%p4855_p0)
}
  0x70   :  { %s4859_s12 = scalar_lea.vmem %s164_s7, 1024  ;;  %p4864_p2 = scmp.lt.s32.totalorder %s164_s7, %s164_s7 }
  0x71   :  { %p4860_p1 = scmp.ne.s32.totalorder %s164_s7, %s4859_s12  ;;  %p4865_p3 = scmp.lt.s32.totalorder %s4859_s12, %s4859_s12 }
  0x73   :  { %p4866_p4 = por %p4865_p3, %p4864_p2 }
  0x75   :  { %p4867_p5 = pnand %p4866_p4, %p4860_p1 }
  0x77   :  { %4870 = shalt.err (!%p4867_p5)
}
  0x78   :  { %s5964_s24 = smov 256   ;;  %s4871_s0 = scalar_lea.hbm %s5948_s17, 16 }
  0x79   :  { %169 = dma.hbm_to_vmem [thread:$0]  %s5945_s14, 1024, %s164_s7, [#allocation22], %s5964_s24, %s5964_s24, %s5111_s30  }
  0x7a   :  { %p4872_p6 = scmp.ne.s32.totalorder %s5948_s17, %s4871_s0  ;;  %p4875_p7 = scmp.lt.u32.totalorder %s4871_s0, %s5948_s17 }
  0x7c   :  { %p4877_p8 = pnand %p4875_p7, %p4872_p6 }
  0x7e   :  { %4880 = shalt.err (!%p4877_p8)
}
  0x7f   :  { %s4881_s2 = scalar_lea.vmem %s189_s5, 16  ;;  %s4885_s29 = scalar_lea.vmem %s189_s5, 32 }
  0x80   :  { %p4882_p9 = scmp.ne.s32.totalorder %s189_s5, %s4881_s2  ;;  %p4886_p10 = scmp.lt.s32.totalorder %s189_s5, %s189_s5 }
  0x81   :  { %p4887_p11 = scmp.lt.s32.totalorder %s4885_s29, %s4881_s2 }
  0x83   :  { %p4888_p12 = por %p4887_p11, %p4886_p10 }
  0x85   :  { %p4889_p13 = pnand %p4888_p12, %p4882_p9 }
  0x87   :  { %4892 = shalt.err (!%p4889_p13)
}
  0x88   :  { %191 = dma.hbm_to_vmem [thread:$0]  %s5948_s17, 16, %s189_s5, [#allocation25]  }
  0x89   :  { %s5120_s7 = smov [#allocation3]   ;;  %s5121_s25 = smov [#allocation8]  }
  0x8a   :  { %s44_s1 = sshll.u32 %s5120_s7, 4  ;;  %s66_s3 = sshll.u32 %s5121_s25, 4  ;;  %s45_s1 = int_to_ptr.vmem [resolvable:$true] %s44_s1  ;;  %s67_s3 = int_to_ptr.vmem [resolvable:$true] %s66_s3 }
  0x8b   :  { %s5965_s26 = sld [smem:[#allocation39_spill]] }
  0x91   :  { %s4893_s20 = scalar_lea.hbm %s5965_s26, 64 }
  0x92   :  { %p4894_p0 = scmp.ne.s32.totalorder %s5965_s26, %s4893_s20  ;;  %p4897_p1 = scmp.lt.u32.totalorder %s4893_s20, %s5965_s26 }
  0x94   :  { %p4899_p2 = pnand %p4897_p1, %p4894_p0 }
  0x96   :  { %4902 = shalt.err (!%p4899_p2)
}
  0x97   :  { %s4903_s17 = scalar_lea.vmem %s45_s1, 64  ;;  %p4908_p4 = scmp.lt.s32.totalorder %s45_s1, %s45_s1 }
  0x98   :  { %p4904_p3 = scmp.ne.s32.totalorder %s45_s1, %s4903_s17  ;;  %p4909_p5 = scmp.lt.s32.totalorder %s4903_s17, %s4903_s17 }
  0x9a   :  { %p4910_p6 = por %p4909_p5, %p4908_p4 }
  0x9c   :  { %p4911_p7 = pnand %p4910_p6, %p4904_p3 }
  0x9e   :  { %4914 = shalt.err (!%p4911_p7)
}
  0x9f   :  { %47 = dma.hbm_to_vmem [thread:$0]  %s5965_s26, 64, %s45_s1, [#allocation4]  }
  0xa0   :  { %s5966_s2 = sld [smem:[#allocation41_spill]] }
  0xa6   :  { %s4915_s29 = scalar_lea.hbm %s5966_s2, 32 }
  0xa7   :  { %p4916_p8 = scmp.ne.s32.totalorder %s5966_s2, %s4915_s29  ;;  %p4919_p9 = scmp.lt.u32.totalorder %s4915_s29, %s5966_s2 }
  0xa9   :  { %p4921_p10 = pnand %p4919_p9, %p4916_p8 }
  0xab   :  { %4924 = shalt.err (!%p4921_p10)
}
  0xac   :  { %s4925_s12 = scalar_lea.vmem %s67_s3, 32  ;;  %p4930_p12 = scmp.lt.s32.totalorder %s67_s3, %s67_s3 }
  0xad   :  { %p4926_p11 = scmp.ne.s32.totalorder %s67_s3, %s4925_s12  ;;  %p4931_p13 = scmp.lt.s32.totalorder %s4925_s12, %s4925_s12 }
  0xaf   :  { %p4932_p0 = por %p4931_p13, %p4930_p12 }
  0xb1   :  { %p4933_p1 = pnand %p4932_p0, %p4926_p11 }
  0xb3   :  { %4936 = shalt.err (!%p4933_p1)
}
  0xb4   :  { %69 = dma.hbm_to_vmem [thread:$0]  %s5966_s2, 32, %s67_s3, [#allocation7]  }
  0xb5   :  { %s5122_s26 = smov [#allocation11]   ;;  %s4937_s0 = scalar_lea.hbm %s5937_s6, 192 }
  0xb6   :  { %s87_s20 = sshll.u32 %s5122_s26, 4  ;;  %p4938_p2 = scmp.ne.s32.totalorder %s5937_s6, %s4937_s0  ;;  %s88_s20 = int_to_ptr.vmem [resolvable:$true] %s87_s20 }
  0xb7   :  { %p4941_p3 = scmp.lt.u32.totalorder %s4937_s0, %s5937_s6 }
  0xb9   :  { %p4943_p4 = pnand %p4941_p3, %p4938_p2 }
  0xbb   :  { %4946 = shalt.err (!%p4943_p4)
}
  0xbc   :  { %s4947_s4 = scalar_lea.vmem %s88_s20, 192  ;;  %p4952_p6 = scmp.lt.s32.totalorder %s88_s20, %s88_s20 }
  0xbd   :  { %p4948_p5 = scmp.ne.s32.totalorder %s88_s20, %s4947_s4  ;;  %p4953_p7 = scmp.lt.s32.totalorder %s4947_s4, %s4947_s4 }
  0xbf   :  { %p4954_p8 = por %p4953_p7, %p4952_p6 }
  0xc1   :  { %p4955_p9 = pnand %p4954_p8, %p4948_p5 }
  0xc3   :  { %4958 = shalt.err (!%p4955_p9)
}
  0xc4   :  { %s5123_s3 = smov 2   ;;  %s5124_s29 = smov [#allocation14]  }
  0xc5   :  { %93 = dma.hbm_to_vmem [thread:$0]  %s5937_s6, 192, %s88_s20, [#allocation10], %s5115_s23, %s5115_s23, %s5123_s3  }
  0xc6   :  { %s112_s14 = sshll.u32 %s5124_s29, 4  ;;  %s5125_s30 = smov [#allocation17]   ;;  %s113_s14 = int_to_ptr.vmem [resolvable:$true] %s112_s14 }
  0xc7   :  { %s134_s7 = sshll.u32 %s5125_s30, 4  ;;  %s4959_s1 = scalar_lea.hbm %s5939_s8, 64  ;;  %s135_s7 = int_to_ptr.vmem [resolvable:$true] %s134_s7 }
  0xc8   :  { %p4960_p10 = scmp.ne.s32.totalorder %s5939_s8, %s4959_s1  ;;  %p4963_p11 = scmp.lt.u32.totalorder %s4959_s1, %s5939_s8 }
  0xca   :  { %p4965_p12 = pnand %p4963_p11, %p4960_p10 }
  0xcc   :  { %4968 = shalt.err (!%p4965_p12)
}
  0xcd   :  { %s4969_s6 = scalar_lea.vmem %s113_s14, 64  ;;  %p4974_p0 = scmp.lt.s32.totalorder %s113_s14, %s113_s14 }
  0xce   :  { %p4970_p13 = scmp.ne.s32.totalorder %s113_s14, %s4969_s6  ;;  %p4975_p1 = scmp.lt.s32.totalorder %s4969_s6, %s4969_s6 }
  0xd0   :  { %p4976_p2 = por %p4975_p1, %p4974_p0 }
  0xd2   :  { %p4977_p3 = pnand %p4976_p2, %p4970_p13 }
  0xd4   :  { %4980 = shalt.err (!%p4977_p3)
}
  0xd5   :  { %115 = dma.hbm_to_vmem [thread:$0]  %s5939_s8, 64, %s113_s14, [#allocation13]  }
  0xd6   :  { %s4981_s5 = scalar_lea.hbm %s5942_s11, 128 }
  0xd7   :  { %p4982_p4 = scmp.ne.s32.totalorder %s5942_s11, %s4981_s5  ;;  %p4985_p5 = scmp.lt.u32.totalorder %s4981_s5, %s5942_s11 }
  0xd9   :  { %p4987_p6 = pnand %p4985_p5, %p4982_p4 }
  0xdb   :  { %4990 = shalt.err (!%p4987_p6)
}
  0xdc   :  { %s4991_s2 = scalar_lea.vmem %s135_s7, 128  ;;  %p4996_p8 = scmp.lt.s32.totalorder %s135_s7, %s135_s7 }
  0xdd   :  { %p4992_p7 = scmp.ne.s32.totalorder %s135_s7, %s4991_s2  ;;  %p4997_p9 = scmp.lt.s32.totalorder %s4991_s2, %s4991_s2 }
  0xdf   :  { %p4998_p10 = por %p4997_p9, %p4996_p8 }
  0xe1   :  { %p4999_p11 = pnand %p4998_p10, %p4992_p7 }
  0xe3   :  { %5002 = shalt.err (!%p4999_p11)
}
  0xe4   :  { %137 = dma.hbm_to_vmem [thread:$0]  %s5942_s11, 128, %s135_s7, [#allocation16]  }
  0xe5   :  { %s5126_s14 = smov [#allocation20]   ;;  %s5127_s25 = smov [#allocation23]  }
  0xe6   :  { %s154_s30 = sshll.u32 %s5126_s14, 4  ;;  %s176_s12 = sshll.u32 %s5127_s25, 4  ;;  %s155_s30 = int_to_ptr.vmem [resolvable:$true] %s154_s30  ;;  %s177_s12 = int_to_ptr.vmem [resolvable:$true] %s176_s12 }
  0xe7   :  { %s5003_s26 = scalar_lea.hbm %s5944_s13, 64 }
  0xe8   :  { %p5004_p12 = scmp.ne.s32.totalorder %s5944_s13, %s5003_s26  ;;  %p5007_p13 = scmp.lt.u32.totalorder %s5003_s26, %s5944_s13 }
  0xea   :  { %p5009_p0 = pnand %p5007_p13, %p5004_p12 }
  0xec   :  { %5012 = shalt.err (!%p5009_p0)
}
  0xed   :  { %s5013_s11 = scalar_lea.vmem %s155_s30, 64  ;;  %p5018_p2 = scmp.lt.s32.totalorder %s155_s30, %s155_s30 }
  0xee   :  { %p5014_p1 = scmp.ne.s32.totalorder %s155_s30, %s5013_s11  ;;  %p5019_p3 = scmp.lt.s32.totalorder %s5013_s11, %s5013_s11 }
  0xf0   :  { %p5020_p4 = por %p5019_p3, %p5018_p2 }
  0xf2   :  { %p5021_p5 = pnand %p5020_p4, %p5014_p1 }
  0xf4   :  { %5024 = shalt.err (!%p5021_p5)
}
  0xf5   :  { %157 = dma.hbm_to_vmem [thread:$0]  %s5944_s13, 64, %s155_s30, [#allocation19]  }
  0xf6   :  { %s5025_s5 = scalar_lea.hbm %s5946_s15, 32 }
  0xf7   :  { %p5026_p6 = scmp.ne.s32.totalorder %s5946_s15, %s5025_s5  ;;  %p5029_p7 = scmp.lt.u32.totalorder %s5025_s5, %s5946_s15 }
  0xf9   :  { %p5031_p8 = pnand %p5029_p7, %p5026_p6 }
  0xfb   :  { %5034 = shalt.err (!%p5031_p8)
}
  0xfc   :  { %s5035_s2 = scalar_lea.vmem %s177_s12, 32  ;;  %p5040_p10 = scmp.lt.s32.totalorder %s177_s12, %s177_s12 }
  0xfd   :  { %p5036_p9 = scmp.ne.s32.totalorder %s177_s12, %s5035_s2  ;;  %p5041_p11 = scmp.lt.s32.totalorder %s5035_s2, %s5035_s2 }
  0xff   :  { %p5042_p12 = por %p5041_p11, %p5040_p10 }
 0x101   :  { %p5043_p13 = pnand %p5042_p12, %p5036_p9 }
 0x103   :  { %5046 = shalt.err (!%p5043_p13)
}
 0x104   :  { %179 = dma.hbm_to_vmem [thread:$0]  %s5946_s15, 32, %s177_s12, [#allocation22]  }
 0x105   :  { %s5128_s29 = smov [#allocation26]   ;;  %s5047_s1 = scalar_lea.hbm %s5950_s19, 16 }
 0x106   :  { %s200_s14 = sshll.u32 %s5128_s29, 4  ;;  %p5048_p0 = scmp.ne.s32.totalorder %s5950_s19, %s5047_s1  ;;  %s201_s14 = int_to_ptr.vmem [resolvable:$true] %s200_s14 }
 0x107   :  { %p5051_p1 = scmp.lt.u32.totalorder %s5047_s1, %s5950_s19 }
 0x109   :  { %p5053_p2 = pnand %p5051_p1, %p5048_p0 }
 0x10b   :  { %5056 = shalt.err (!%p5053_p2)
}
 0x10c   :  { %s5057_s6 = scalar_lea.vmem %s201_s14, 16  ;;  %s5061_s15 = scalar_lea.vmem %s201_s14, 32 }
 0x10d   :  { %p5058_p3 = scmp.ne.s32.totalorder %s201_s14, %s5057_s6  ;;  %p5062_p4 = scmp.lt.s32.totalorder %s201_s14, %s201_s14 }
 0x10e   :  { %p5063_p5 = scmp.lt.s32.totalorder %s5061_s15, %s5057_s6 }
 0x110   :  { %p5064_p6 = por %p5063_p5, %p5062_p4 }
 0x112   :  { %p5065_p7 = pnand %p5064_p6, %p5058_p3 }
 0x114   :  { %5068 = shalt.err (!%p5065_p7)
}
 0x115   :  { %203 = dma.hbm_to_vmem [thread:$0]  %s5950_s19, 16, %s201_s14, [#allocation25]  }
 0x116   :  { %5091 = dma.done.wait [#allocation4], 64  }
 0x117   :  { %5092 = vsyncadd [#allocation4], 4294967232 }
 0x118   :  { %5093 = dma.done.wait [#allocation7], 2592  }
 0x119   :  { %5094 = vsyncadd [#allocation7], 4294964704 }
 0x11a   :  { %5095 = dma.done.wait [#allocation10], 38592  }
 0x11b   :  { %5096 = vsyncadd [#allocation10], 4294928704 }
 0x11c   :  { %5097 = dma.done.wait [#allocation13], 12864  }
 0x11d   :  { %5098 = vsyncadd [#allocation13], 4294954432 }
 0x11e   :  { %5099 = dma.done.wait [#allocation16], 144  }
 0x11f   :  { %5100 = vsyncadd [#allocation16], 4294967152 }
 0x120   :  { %5101 = dma.done.wait [#allocation19], 80  }
 0x121   :  { %5102 = vsyncadd [#allocation19], 4294967216 }
 0x122   :  { %5103 = dma.done.wait [#allocation22], 1056  }
 0x123   :  { %5104 = vsyncadd [#allocation22], 4294966240 }
 0x124   :  { %5105 = dma.done.wait [#allocation25], 32  }
 0x125   :  { %5106 = vsyncadd [#allocation25], 4294967264  ;;  %v5129_v0 = vmov 0.0   ;;  %v251_v1 = vld [vmem:[#allocation6 + $0x8] sm:$0xff]  ;;  %v253_v2 = vld [vmem:[#allocation6 + $0x18] sm:$0xff]  ;;  %vm286_vm0 = vcmask 1042432  }
 0x126   :  { %357 = vmatprep.mubr.f32.mxu0 %v5129_v0  ;;  %v250_v3 = vld [vmem:[#allocation6] sm:$0xff]  ;;  %v4180_v4 = vpack.c.bf16 %v253_v2, %v251_v1  ;;  %v252_v5 = vld [vmem:[#allocation6 + $0x10] sm:$0xff]  ;;  %v255_v6 = vld [vmem:[#allocation6 + $0x28] sm:$0xff]  ;;  %vm5130_vm1 = vmmov 1   ;;  %s5967_s7 = sld [smem:[#allocation37_spill]]  ;;  %vm282_vm3 = vcmask 613376  }
 0x127   :  { %v257_v7 = vld [vmem:[#allocation6 + $0x38] sm:$0xff]  ;;  %v4182_v8 = vpack.c.bf16 %v252_v5, %v250_v3  ;;  %v254_v10 = vld [vmem:[#allocation6 + $0x20] sm:$0xff]  ;;  %v256_v11 = vld [vmem:[#allocation6 + $0x30] sm:$0xff]  ;;  %vm428_vm4 = vcmask 588800   ;;  %s5968_s17 = sld [smem:[#allocation38_spill]]  ;;  %vm1483_vm5 = vcmask 64512  }
 0x128   :  { %v4184_v9 = vpack.c.bf16 %v257_v7, %v255_v6  ;;  %v259_v12 = vld [vmem:[#allocation6 + $0x48] sm:$0xff]  ;;  %4181 = vmatprep.subr.bf16.mxu0 %v4180_v4  ;;  %v261_v13 = vld [vmem:[#allocation6 + $0x58] sm:$0xff]  ;;  %v4186_v14 = vpack.c.bf16 %v256_v11, %v254_v10  ;;  %v258_v16 = vld [vmem:[#allocation6 + $0x40] sm:$0xff]  ;;  %vm1851_vm7 = vcmask 1044480   ;;  %vm1686_vm8 = vcmask 130048   ;;  %s5135_s5 = smov 96  }
 0x129   :  { %4183 = vmatpush1.bf16.msra.mxu0 %v4182_v8  ;;  %v4188_v15 = vpack.c.bf16 %v261_v13, %v259_v12  ;;  %v260_v17 = vld [vmem:[#allocation6 + $0x50] sm:$0xff]  ;;  %v263_v18 = vld [vmem:[#allocation6 + $0x68] sm:$0xff]  ;;  %v265_v19 = vld [vmem:[#allocation6 + $0x78] sm:$0xff]  ;;  %vm5133_vm9 = vmmov 0   ;;  %vm1847_vm10 = vcmask 39936   ;;  %vm2100_vm11 = vcmask 261120  }
 0x12a   :  { %4185 = vmatprep.subr.bf16.mxu0 %v4184_v9  ;;  %v262_v20 = vld [vmem:[#allocation6 + $0x60] sm:$0xff]  ;;  %v264_v21 = vld [vmem:[#allocation6 + $0x70] sm:$0xff]  ;;  %v4190_v25 = vpack.c.bf16 %v260_v17, %v258_v16  ;;  %v4192_v30 = vpack.c.bf16 %v265_v19, %v263_v18  ;;  %v267_v36 = vld [vmem:[#allocation6 + $0x88] sm:$0xff]  ;;  %vm2421_vm15 = vcmask 27648   ;;  %s5137_s27 = smov [#allocation27]  }
 0x12b   :  { %v367_v22 = vld [vmem:[#allocation9 + $0x8] sm:$0xff]  ;;  %v369_v23 = vld [vmem:[#allocation9 + $0x18] sm:$0xff]  ;;  %v366_v24 = vld [vmem:[#allocation9] sm:$0xff]  ;;  %v4194_v40 = vpack.c.bf16 %v264_v21, %v262_v20  ;;  %s3887_s10 = sshll.u32 %s5137_s27, 4  ;;  %s3888_s10 = int_to_ptr.vmem [resolvable:$true] %s3887_s10 }
 0x12c   :  { %v4202_v26 = vpack.c.bf16 %v369_v23, %v367_v22  ;;  %v368_v27 = vld [vmem:[#allocation9 + $0x10] sm:$0xff]  ;;  %v371_v28 = vld [vmem:[#allocation9 + $0x28] sm:$0xff]  ;;  %v373_v29 = vld [vmem:[#allocation9 + $0x38] sm:$0xff]  ;;  %s5069_s6 = scalar_lea.vmem %s3888_s10, 64  ;;  %p5074_p9 = scmp.lt.s32.totalorder %s3888_s10, %s3888_s10 }
 0x12d   :  { %4187 = vmatpush1.bf16.msra.mxu0 %v4186_v14  ;;  %v4204_v31 = vpack.c.bf16 %v368_v27, %v366_v24  ;;  %v4206_v32 = vpack.c.bf16 %v373_v29, %v371_v28  ;;  %v370_v33 = vld [vmem:[#allocation9 + $0x20] sm:$0xff]  ;;  %v372_v34 = vld [vmem:[#allocation9 + $0x30] sm:$0xff]  ;;  %v375_v35 = vld [vmem:[#allocation9 + $0x48] sm:$0xff]  ;;  %p5070_p8 = scmp.ne.s32.totalorder %s3888_s10, %s5069_s6  ;;  %p5075_p10 = scmp.lt.s32.totalorder %s5069_s6, %s5069_s6 }
 0x12e   :  { %4189 = vmatprep.subr.bf16.mxu0 %v4188_v15  ;;  %v269_v37 = vld [vmem:[#allocation6 + $0x98] sm:$0x7]  ;;  %4203 = vmatprep.subr.bf16.mxu1 %v4202_v26  ;;  %v4208_v39 = vpack.c.bf16 %v372_v34, %v370_v33  ;;  %v266_v41 = vld [vmem:[#allocation6 + $0x80] sm:$0xff]  ;;  %v268_v46 = vld [vmem:[#allocation6 + $0x90] sm:$0x7] }
 0x12f   :  { %v377_v38 = vld [vmem:[#allocation9 + $0x58] sm:$0xff]  ;;  %4205 = vmatpush1.bf16.msra.mxu1 %v4204_v31  ;;  %v374_v43 = vld [vmem:[#allocation9 + $0x40] sm:$0xff]  ;;  %v376_v44 = vld [vmem:[#allocation9 + $0x50] sm:$0xff]  ;;  %v4196_v45 = vpack.c.bf16 %v269_v37, %v267_v36  ;;  %v4199_v50 = vpack.c.bf16 %v268_v46, %v266_v41  ;;  %p5076_p11 = por %p5075_p10, %p5074_p9 }
 0x130   :  { %4207 = vmatprep.subr.bf16.mxu1 %v4206_v32  ;;  %v4210_v42 = vpack.c.bf16 %v377_v38, %v375_v35  ;;  %v379_v47 = vld [vmem:[#allocation9 + $0x68] sm:$0xff]  ;;  %v381_v48 = vld [vmem:[#allocation9 + $0x78] sm:$0xff]  ;;  %vm4197_vm2 = vmpackc.low %vm286_vm0, %vm5130_vm1  ;;  %v4212_v49 = vpack.c.bf16 %v376_v44, %v374_v43 }
 0x131   :  { %4191 = vmatpush1.bf16.msra.mxu0 %v4190_v25  ;;  %v4214_v51 = vpack.c.bf16 %v381_v48, %v379_v47  ;;  %v378_v52 = vld [vmem:[#allocation9 + $0x60] sm:$0xff]  ;;  %v380_v53 = vld [vmem:[#allocation9 + $0x70] sm:$0xff]  ;;  %v383_v54 = vld [vmem:[#allocation9 + $0x88] sm:$0xff]  ;;  %p5077_p12 = pnand %p5076_p11, %p5070_p8 }
 0x132   :  { %4193 = vmatprep.subr.bf16.mxu0 %v4192_v30  ;;  %v385_v55 = vld [vmem:[#allocation9 + $0x98] sm:$0xff]  ;;  %v4216_v56 = vpack.c.bf16 %v380_v53, %v378_v52  ;;  %v382_v59 = vld [vmem:[#allocation9 + $0x80] sm:$0xff]  ;;  %v384_v60 = vld [vmem:[#allocation9 + $0x90] sm:$0xff] }
 0x133   :  { %4209 = vmatpush1.bf16.msra.mxu1 %v4208_v39  ;;  %v249_v57 = vld [vmem:[%s5967_s7] sm:$0xff]  ;;  %v4218_v58 = vpack.c.bf16 %v385_v55, %v383_v54  ;;  %v387_v61 = vld [vmem:[#allocation9 + $0xa8] sm:$0xff]  ;;  %v4220_v63 = vpack.c.bf16 %v384_v60, %v382_v59  ;;  %v386_v2 = vld [vmem:[#allocation9 + $0xa0] sm:$0xff] }
 0x134   :  { %4211 = vmatprep.subr.bf16.mxu1 %v4210_v42  ;;  %v389_v62 = vld [vmem:[#allocation9 + $0xb8] sm:$0xff]  ;;  %v388_v3 = vld [vmem:[#allocation9 + $0xb0] sm:$0xff]  ;;  %v391_v4 = vld [vmem:[#allocation9 + $0xc8] sm:$0xff] }
 0x135   :  { %4195 = vmatpush1.bf16.msra.mxu0 %v4194_v40  ;;  %v4222_v1 = vpack.c.bf16 %v389_v62, %v387_v61  ;;  %v393_v5 = vld [vmem:[#allocation9 + $0xd8] sm:$0xff]  ;;  %v4224_v6 = vpack.c.bf16 %v388_v3, %v386_v2  ;;  %v390_v8 = vld [vmem:[#allocation9 + $0xc0] sm:$0xff]  ;;  %v392_v9 = vld [vmem:[#allocation9 + $0xd0] sm:$0xff] }
 0x136   :  { %4198 = vmatprep.subr.msk.bf16.mxu0 %vm4197_vm2, %v4196_v45  ;;  %v4226_v7 = vpack.c.bf16 %v393_v5, %v391_v4  ;;  %v395_v10 = vld [vmem:[#allocation9 + $0xe8] sm:$0xff]  ;;  %v397_v11 = vld [vmem:[#allocation9 + $0xf8] sm:$0xff]  ;;  %v4228_v12 = vpack.c.bf16 %v392_v9, %v390_v8  ;;  %v394_v14 = vld [vmem:[#allocation9 + $0xe0] sm:$0xff] }
 0x137   :  { %4213 = vmatpush1.bf16.msra.mxu1 %v4212_v49  ;;  %v4230_v13 = vpack.c.bf16 %v397_v11, %v395_v10  ;;  %v396_v15 = vld [vmem:[#allocation9 + $0xf0] sm:$0xff]  ;;  %v399_v16 = vld [vmem:[#allocation9 + $0x108] sm:$0xff]  ;;  %v401_v17 = vld [vmem:[#allocation9 + $0x118] sm:$0xff] }
 0x138   :  { %4215 = vmatprep.subr.bf16.mxu1 %v4214_v51  ;;  %v4232_v18 = vpack.c.bf16 %v396_v15, %v394_v14  ;;  %v4234_v19 = vpack.c.bf16 %v401_v17, %v399_v16  ;;  %v398_v20 = vld [vmem:[#allocation9 + $0x100] sm:$0xff]  ;;  %v400_v21 = vld [vmem:[#allocation9 + $0x110] sm:$0xff]  ;;  %v403_v22 = vld [vmem:[#allocation9 + $0x128] sm:$0xff] }
 0x139   :  { %4201 = vmatpush1.bf16.msk.msra.mxu0 %vm4197_vm2, %v4199_v50  ;;  %v405_v23 = vld [vmem:[#allocation9 + $0x138] sm:$0xff]  ;;  %v4236_v24 = vpack.c.bf16 %v400_v21, %v398_v20  ;;  %v402_v26 = vld [vmem:[#allocation9 + $0x120] sm:$0xff]  ;;  %v404_v27 = vld [vmem:[#allocation9 + $0x130] sm:$0xff]  ;;  %vm2437_vm2 = vcmask 1043456  }
 0x13a   :  { %v4238_v25 = vpack.c.bf16 %v405_v23, %v403_v22  ;;  %v407_v28 = vld [vmem:[#allocation9 + $0x148] sm:$0xff]  ;;  %v409_v29 = vld [vmem:[#allocation9 + $0x158] sm:$0xff]  ;;  %v4240_v30 = vpack.c.bf16 %v404_v27, %v402_v26  ;;  %v406_v32 = vld [vmem:[#allocation9 + $0x140] sm:$0xff] }
 0x13b   :  { %4217 = vmatpush1.bf16.msra.mxu1 %v4216_v56  ;;  %v4242_v31 = vpack.c.bf16 %v409_v29, %v407_v28  ;;  %v408_v33 = vld [vmem:[#allocation9 + $0x150] sm:$0xff]  ;;  %v411_v35 = vld [vmem:[#allocation9 + $0x168] sm:$0xff]  ;;  %v413_v36 = vld [vmem:[#allocation9 + $0x178] sm:$0xff] }
 0x13c   :  { %3905 = vmatmul.mubr.msk.f32.vlgmr.msra.gmra.mrb[0].mxu0 %vm282_vm3, %v249_v57  ;;  %4219 = vmatprep.subr.bf16.mxu1 %v4218_v58  ;;  %v4244_v34 = vpack.c.bf16 %v408_v33, %v406_v32  ;;  %v4246_v37 = vpack.c.bf16 %v413_v36, %v411_v35  ;;  %v410_v38 = vld [vmem:[#allocation9 + $0x160] sm:$0xff]  ;;  %v412_v39 = vld [vmem:[#allocation9 + $0x170] sm:$0xff]  ;;  %v415_v41 = vld [vmem:[#allocation9 + $0x188] sm:$0xff]  ;;  %vm2433_vm3 = vcmask 31744  }
 0x13d   :  { %v4248_v40 = vpack.c.bf16 %v412_v39, %v410_v38  ;;  %v414_v42 = vld [vmem:[#allocation9 + $0x180] sm:$0xff]  ;;  %v507_v43 = vld [vmem:[#allocation9 + $0x198] sm:$0xff]  ;;  %v509_v44 = vld [vmem:[#allocation9 + $0x1a8] sm:$0xff] }
 0x13e   :  { %v506_v45 = vld [vmem:[#allocation9 + $0x190] sm:$0xff]  ;;  %v4250_v46 = vpack.c.bf16 %v509_v44, %v507_v43  ;;  %v508_v47 = vld [vmem:[#allocation9 + $0x1a0] sm:$0xff]  ;;  %v511_v48 = vld [vmem:[#allocation9 + $0x1b8] sm:$0xff] }
 0x13f   :  { %4221 = vmatpush1.bf16.msra.mxu1 %v4220_v63  ;;  %v513_v49 = vld [vmem:[#allocation9 + $0x1c8] sm:$0xff]  ;;  %v4252_v50 = vpack.c.bf16 %v508_v47, %v506_v45  ;;  %v510_v52 = vld [vmem:[#allocation9 + $0x1b0] sm:$0xff]  ;;  %v512_v53 = vld [vmem:[#allocation9 + $0x1c0] sm:$0xff] }
 0x140   :  { %4223 = vmatprep.subr.bf16.mxu1 %v4222_v1  ;;  %v4254_v51 = vpack.c.bf16 %v513_v49, %v511_v48  ;;  %v515_v54 = vld [vmem:[#allocation9 + $0x1d8] sm:$0xff]  ;;  %4251 = vmatprep.subr.bf16.mxu0 %v4250_v46  ;;  %v517_v55 = vld [vmem:[#allocation9 + $0x1e8] sm:$0xff]  ;;  %v4256_v56 = vpack.c.bf16 %v512_v53, %v510_v52  ;;  %v514_v58 = vld [vmem:[#allocation9 + $0x1d0] sm:$0xff]  ;;  %v272_v46 = vlaneseq }
 0x141   :  { %4253 = vmatpush1.bf16.msra.mxu0 %v4252_v50  ;;  %v4258_v57 = vpack.c.bf16 %v517_v55, %v515_v54  ;;  %v516_v59 = vld [vmem:[#allocation9 + $0x1e0] sm:$0xff]  ;;  %v519_v60 = vld [vmem:[#allocation9 + $0x1f8] sm:$0xff]  ;;  %v521_v61 = vld [vmem:[#allocation9 + $0x208] sm:$0xff] }
 0x142   :  { %4255 = vmatprep.subr.bf16.mxu0 %v4254_v51  ;;  %v4260_v62 = vpack.c.bf16 %v516_v59, %v514_v58  ;;  %v4262_v63 = vpack.c.bf16 %v521_v61, %v519_v60  ;;  %v518_v1 = vld [vmem:[#allocation9 + $0x1f0] sm:$0xff]  ;;  %v520_v2 = vld [vmem:[#allocation9 + $0x200] sm:$0xff]  ;;  %v523_v3 = vld [vmem:[#allocation9 + $0x218] sm:$0xff]  ;;  %v5441_v47 = vshrl.u32 %v272_v46, 7 }
 0x143   :  { %4225 = vmatpush1.bf16.msra.mxu1 %v4224_v6  ;;  %v525_v4 = vld [vmem:[#allocation9 + $0x228] sm:$0xff]  ;;  %v4264_v5 = vpack.c.bf16 %v520_v2, %v518_v1  ;;  %v524_v8 = vld [vmem:[#allocation9 + $0x220] sm:$0xff]  ;;  %v527_v9 = vld [vmem:[#allocation9 + $0x238] sm:$0xff] }
 0x144   :  { %4227 = vmatprep.subr.bf16.mxu1 %v4226_v7  ;;  %v4266_v6 = vpack.c.bf16 %v525_v4, %v523_v3  ;;  %v522_v7 = vld [vmem:[#allocation9 + $0x210] sm:$0xff]  ;;  %v529_v10 = vld [vmem:[#allocation9 + $0x248] sm:$0xff]  ;;  %v528_v14 = vld [vmem:[#allocation9 + $0x240] sm:$0xff]  ;;  %v5444_v48 = vsub.s32 0, %v5441_v47  ;;  %v5447_v50 = vsub.s32 1, %v5441_v47 }
 0x145   :  { %4257 = vmatpush1.bf16.msra.mxu0 %v4256_v56  ;;  %v4268_v11 = vpack.c.bf16 %v524_v8, %v522_v7  ;;  %v531_v15 = vld [vmem:[#allocation9 + $0x258] sm:$0xff]  ;;  %v533_v16 = vld [vmem:[#allocation9 + $0x268] sm:$0xff]  ;;  %v532_v20 = vld [vmem:[#allocation9 + $0x260] sm:$0xff] }
 0x146   :  { %4259 = vmatprep.subr.bf16.mxu0 %v4258_v57  ;;  %v535_v21 = vld [vmem:[#allocation9 + $0x278] sm:$0xff]  ;;  %v537_v22 = vld [vmem:[#allocation9 + $0x288] sm:$0xff]  ;;  %v536_v26 = vld [vmem:[#allocation9 + $0x280] sm:$0xff] }
 0x147   :  { %4229 = vmatpush1.bf16.msra.mxu1 %v4228_v12  ;;  %v4270_v12 = vpack.c.bf16 %v529_v10, %v527_v9  ;;  %v539_v27 = vld [vmem:[#allocation9 + $0x298] sm:$0xff]  ;;  %v541_v28 = vld [vmem:[#allocation9 + $0x2a8] sm:$0xff]  ;;  %v540_v32 = vld [vmem:[#allocation9 + $0x2a0] sm:$0xff] }
 0x148   :  { %4231 = vmatprep.subr.bf16.mxu1 %v4230_v13  ;;  %v526_v13 = vld [vmem:[#allocation9 + $0x230] sm:$0xff]  ;;  %v543_v33 = vld [vmem:[#allocation9 + $0x2b8] sm:$0xff]  ;;  %v544_v38 = vld [vmem:[#allocation9 + $0x2c0] sm:$0xff] }
 0x149   :  { %4261 = vmatpush1.bf16.msra.mxu0 %v4260_v62  ;;  %v4272_v17 = vpack.c.bf16 %v528_v14, %v526_v13  ;;  %v547_v39 = vld [vmem:[#allocation9 + $0x2d8] sm:$0xff]  ;;  %v546_v43 = vld [vmem:[#allocation9 + $0x2d0] sm:$0xff]  ;;  %v548_v44 = vld [vmem:[#allocation9 + $0x2e0] sm:$0xff] }
 0x14a   :  { %4263 = vmatprep.subr.bf16.mxu0 %v4262_v63  ;;  %v4292_v45 = vpack.c.bf16 %v548_v44, %v546_v43  ;;  %v270_v49 = vld [vmem:[#allocation8] sm:$0x3]  ;;  %v553_v60 = vld [vmem:[#allocation9 + $0x308] sm:$0xff]  ;;  %v550_v62 = vld [vmem:[#allocation9 + $0x2f0] sm:$0xff] }
 0x14b   :  { %4233 = vmatpush1.bf16.msra.mxu1 %v4232_v18  ;;  %v4274_v18 = vpack.c.bf16 %v533_v16, %v531_v15  ;;  %v275_v51 = vrot.slane %v270_v49, %v5444_v48  ;;  %v279_v52 = vrot.slane %v270_v49, %v5447_v50  ;;  %v551_v59 = vld [vmem:[#allocation9 + $0x2f8] sm:$0xff]  ;;  %v552_v63 = vld [vmem:[#allocation9 + $0x300] sm:$0xff]  ;;  %v554_v3 = vld [vmem:[#allocation9 + $0x310] sm:$0xff] }
 0x14c   :  { %4235 = vmatprep.subr.bf16.mxu1 %v4234_v19  ;;  %v530_v19 = vld [vmem:[#allocation9 + $0x250] sm:$0xff]  ;;  %v4294_v61 = vpack.c.bf16 %v553_v60, %v551_v59  ;;  %v4296_v1 = vpack.c.bf16 %v552_v63, %v550_v62  ;;  %v555_v2 = vld [vmem:[#allocation9 + $0x318] sm:$0xff]  ;;  %v649_v4 = vld [vmem:[#allocation9 + $0x328] sm:$0xff] }
 0x14d   :  { %4265 = vmatpush1.bf16.msra.mxu0 %v4264_v5  ;;  %v4276_v23 = vpack.c.bf16 %v532_v20, %v530_v19  ;;  %v651_v5 = vld [vmem:[#allocation9 + $0x338] sm:$0xff]  ;;  %v650_v8 = vld [vmem:[#allocation9 + $0x330] sm:$0xff]  ;;  %v653_v9 = vld [vmem:[#allocation9 + $0x348] sm:$0xff] }
 0x14e   :  { %4267 = vmatprep.subr.bf16.mxu0 %v4266_v6  ;;  %v648_v6 = vld [vmem:[#allocation9 + $0x320] sm:$0xff]  ;;  %v4298_v7 = vpack.c.bf16 %v651_v5, %v649_v4  ;;  %v655_v10 = vld [vmem:[#allocation9 + $0x358] sm:$0xff]  ;;  %v654_v14 = vld [vmem:[#allocation9 + $0x350] sm:$0xff] }
 0x14f   :  { %4237 = vmatpush1.bf16.msra.mxu1 %v4236_v24  ;;  %v4278_v24 = vpack.c.bf16 %v537_v22, %v535_v21  ;;  %v652_v13 = vld [vmem:[#allocation9 + $0x340] sm:$0xff]  ;;  %v657_v15 = vld [vmem:[#allocation9 + $0x368] sm:$0xff]  ;;  %v659_v16 = vld [vmem:[#allocation9 + $0x378] sm:$0xff] }
 0x150   :  { %4239 = vmatprep.subr.bf16.mxu1 %v4238_v25  ;;  %v534_v25 = vld [vmem:[#allocation9 + $0x270] sm:$0xff]  ;;  %v656_v19 = vld [vmem:[#allocation9 + $0x360] sm:$0xff]  ;;  %v661_v21 = vld [vmem:[#allocation9 + $0x388] sm:$0xff] }
 0x151   :  { %4269 = vmatpush1.bf16.msra.mxu0 %v4268_v11  ;;  %v4280_v29 = vpack.c.bf16 %v536_v26, %v534_v25  ;;  %v4300_v11 = vpack.c.bf16 %v650_v8, %v648_v6  ;;  %v658_v20 = vld [vmem:[#allocation9 + $0x370] sm:$0xff]  ;;  %v663_v22 = vld [vmem:[#allocation9 + $0x398] sm:$0xff]  ;;  %v660_v25 = vld [vmem:[#allocation9 + $0x380] sm:$0xff] }
 0x152   :  { %4271 = vmatprep.subr.bf16.mxu0 %v4270_v12  ;;  %v4302_v12 = vpack.c.bf16 %v655_v10, %v653_v9  ;;  %v662_v26 = vld [vmem:[#allocation9 + $0x390] sm:$0xff]  ;;  %v672_v43 = vld [vmem:[#allocation9 + $0x3e0] sm:$0xff]  ;;  %v679_v49 = vld [vmem:[#allocation9 + $0x418] sm:$0xff] }
 0x153   :  { %4241 = vmatpush1.bf16.msra.mxu1 %v4240_v30  ;;  %v4282_v30 = vpack.c.bf16 %v541_v28, %v539_v27  ;;  %v665_v27 = vld [vmem:[#allocation9 + $0x3a8] sm:$0xff]  ;;  %v667_v28 = vld [vmem:[#allocation9 + $0x3b8] sm:$0xff]  ;;  %v674_v44 = vld [vmem:[#allocation9 + $0x3f0] sm:$0xff] }
 0x154   :  { %4243 = vmatprep.subr.bf16.mxu1 %v4242_v31  ;;  %v538_v31 = vld [vmem:[#allocation9 + $0x290] sm:$0xff]  ;;  %v681_v59 = vld [vmem:[#allocation9 + $0x428] sm:$0xff]  ;;  %v683_v60 = vld [vmem:[#allocation9 + $0x438] sm:$0xff] }
 0x155   :  { %4273 = vmatpush1.bf16.msra.mxu0 %v4272_v17  ;;  %v4284_v35 = vpack.c.bf16 %v540_v32, %v538_v31  ;;  %v4304_v17 = vpack.c.bf16 %v654_v14, %v652_v13  ;;  %v664_v31 = vld [vmem:[#allocation9 + $0x3a0] sm:$0xff]  ;;  %v666_v32 = vld [vmem:[#allocation9 + $0x3b0] sm:$0xff]  ;;  %v4330_v62 = vpack.c.bf16 %v683_v60, %v681_v59  ;;  %v689_v8 = vld [vmem:[#allocation9 + $0x468] sm:$0xff] }
 0x156   :  { %4275 = vmatprep.subr.bf16.mxu0 %v4274_v18  ;;  %v4306_v18 = vpack.c.bf16 %v659_v16, %v657_v15  ;;  %v680_v63 = vld [vmem:[#allocation9 + $0x420] sm:$0xff]  ;;  %v691_v9 = vld [vmem:[#allocation9 + $0x478] sm:$0xff] }
 0x157   :  { %4245 = vmatpush1.bf16.msra.mxu1 %v4244_v34  ;;  %v545_v34 = vld [vmem:[#allocation9 + $0x2c8] sm:$0xff]  ;;  %v684_v6 = vld [vmem:[#allocation9 + $0x440] sm:$0xff] }
 0x158   :  { %4247 = vmatprep.subr.bf16.mxu1 %v4246_v37  ;;  %v4286_v36 = vpack.c.bf16 %v545_v34, %v543_v33  ;;  %v542_v37 = vld [vmem:[#allocation9 + $0x2b0] sm:$0xff]  ;;  %v669_v33 = vld [vmem:[#allocation9 + $0x3c8] sm:$0xff]  ;;  %v671_v34 = vld [vmem:[#allocation9 + $0x3d8] sm:$0xff] }
 0x159   :  { %4277 = vmatpush1.bf16.msra.mxu0 %v4276_v23  ;;  %v4308_v23 = vpack.c.bf16 %v658_v20, %v656_v19 }
 0x15a   :  { %4279 = vmatprep.subr.bf16.mxu0 %v4278_v24  ;;  %v4310_v24 = vpack.c.bf16 %v663_v22, %v661_v21  ;;  %v688_v21 = vld [vmem:[#allocation9 + $0x460] sm:$0xff]  ;;  %v690_v22 = vld [vmem:[#allocation9 + $0x470] sm:$0xff] }
 0x15b   :  { %4249 = vmatpush1.bf16.msra.mxu1 %v4248_v40  ;;  %v549_v40 = vld [vmem:[#allocation9 + $0x2e8] sm:$0xff] }
 0x15c   :  { %480 = vmatprep.subr.mxu1 %v415_v41  ;;  %v4288_v41 = vpack.c.bf16 %v544_v38, %v542_v37  ;;  %v668_v37 = vld [vmem:[#allocation9 + $0x3c0] sm:$0xff]  ;;  %v670_v38 = vld [vmem:[#allocation9 + $0x3d0] sm:$0xff] }
 0x15d   :  { %4281 = vmatpush1.bf16.msra.mxu0 %v4280_v29  ;;  %v4312_v29 = vpack.c.bf16 %v662_v26, %v660_v25  ;;  %v695_v25 = vld [vmem:[#allocation9 + $0x498] sm:$0xff] }
 0x15e   :  { %4283 = vmatprep.subr.bf16.mxu0 %v4282_v30  ;;  %v4314_v30 = vpack.c.bf16 %v667_v28, %v665_v27  ;;  %v692_v27 = vld [vmem:[#allocation9 + $0x480] sm:$0xff]  ;;  %v694_v28 = vld [vmem:[#allocation9 + $0x490] sm:$0xff] }
 0x15f   :  { %481 = vmatpush1.msra.mxu1 %v414_v42  ;;  %v4290_v42 = vpack.c.bf16 %v549_v40, %v547_v39  ;;  %v673_v39 = vld [vmem:[#allocation9 + $0x3e8] sm:$0xff]  ;;  %v675_v40 = vld [vmem:[#allocation9 + $0x3f8] sm:$0xff] }
 0x160   :  { %4299 = vmatprep.subr.bf16.mxu1 %v4298_v7  ;;  %v686_v7 = vld [vmem:[#allocation9 + $0x450] sm:$0xff] }
 0x161   :  { %4285 = vmatpush1.bf16.msra.mxu0 %v4284_v35  ;;  %v4316_v35 = vpack.c.bf16 %v666_v32, %v664_v31  ;;  %v4336_v10 = vpack.c.bf16 %v686_v7, %v684_v6  ;;  %v696_v31 = vld [vmem:[#allocation9 + $0x4a0] sm:$0xff]  ;;  %v789_v32 = vld [vmem:[#allocation9 + $0x4b8] sm:$0xff]  ;;  %v811_v7 = vld [vmem:[#allocation9 + $0x568] sm:$0xff] }
 0x162   :  { %4287 = vmatprep.subr.bf16.mxu0 %v4286_v36  ;;  %v4318_v36 = vpack.c.bf16 %v671_v34, %v669_v33  ;;  %v791_v33 = vld [vmem:[#allocation9 + $0x4c8] sm:$0xff]  ;;  %v788_v34 = vld [vmem:[#allocation9 + $0x4b0] sm:$0xff]  ;;  %v809_v6 = vld [vmem:[#allocation9 + $0x558] sm:$0xff] }
 0x165   :  { %4289 = vmatpush1.bf16.msra.mxu0 %v4288_v41  ;;  %v4320_v41 = vpack.c.bf16 %v670_v38, %v668_v37  ;;  %v793_v37 = vld [vmem:[#allocation9 + $0x4d8] sm:$0xff]  ;;  %v795_v38 = vld [vmem:[#allocation9 + $0x4e8] sm:$0xff] }
 0x166   :  { %4291 = vmatprep.subr.bf16.mxu0 %v4290_v42  ;;  %v4322_v42 = vpack.c.bf16 %v675_v40, %v673_v39  ;;  %v4350_v40 = vpack.c.bf16 %v795_v38, %v793_v37  ;;  %v831_v37 = vld [vmem:[#allocation9 + $0x608] sm:$0xff] }
 0x169   :  { %4293 = vmatpush1.bf16.msra.mxu0 %v4292_v45  ;;  %v677_v45 = vld [vmem:[#allocation9 + $0x408] sm:$0xff] }
 0x16a   :  { %4295 = vmatprep.subr.bf16.mxu0 %v4294_v61 }
 0x16d   :  { %4297 = vmatpush1.bf16.msra.mxu0 %v4296_v1  ;;  %v682_v1 = vld [vmem:[#allocation9 + $0x430] sm:$0xff] }
 0x16e   :  { %620 = vmatprep.subr.mxu0 %v555_v2  ;;  %v685_v2 = vld [vmem:[#allocation9 + $0x448] sm:$0xff]  ;;  %v4332_v4 = vpack.c.bf16 %v682_v1, %v680_v63  ;;  %v805_v63 = vld [vmem:[#allocation9 + $0x538] sm:$0xff] }
 0x16f   :  { %v807_v1 = vld [vmem:[#allocation9 + $0x548] sm:$0xff] }
 0x171   :  { %621 = vmatpush1.msra.mxu0 %v554_v3  ;;  %v687_v3 = vld [vmem:[#allocation9 + $0x458] sm:$0xff] }
 0x172   :  { %v4334_v5 = vpack.c.bf16 %v687_v3, %v685_v2  ;;  %v4362_v3 = vpack.c.bf16 %v807_v1, %v805_v63  ;;  %v835_v63 = vld [vmem:[#allocation9 + $0x628] sm:$0xff]  ;;  %v834_v1 = vld [vmem:[#allocation9 + $0x620] sm:$0xff] }
 0x20f   :  { %v359_v53 = vpop.f32.mrb[0].mxu0 }
 0x210   :  { %v5451_v54 = vadd.f32 %v359_v53, %v275_v51  ;;  %v361_v55 = vpop.f32.mrb[1].mxu0  ;;  %v4324_v51 = vpack.c.bf16 %v674_v44, %v672_v43  ;;  %v676_v53 = vld [vmem:[#allocation9 + $0x400] sm:$0xff]  ;;  %v797_v43 = vld [vmem:[#allocation9 + $0x4f8] sm:$0xff]  ;;  %v799_v44 = vld [vmem:[#allocation9 + $0x508] sm:$0xff] }
 0x211   :  { %v5453_v56 = vadd.f32 %v361_v55, %v279_v52  ;;  %v4326_v52 = vpack.c.bf16 %v679_v49, %v677_v45  ;;  %v678_v55 = vld [vmem:[#allocation9 + $0x410] sm:$0xff]  ;;  %v4354_v49 = vpack.c.bf16 %v799_v44, %v797_v43  ;;  %v557_v43 = vld [vmem:[#allocation11 + $0x2] sm:$0x3] }
 0x212   :  { %v364_v58 = vmax.f32 %v5451_v54, 0.0  ;;  %v4328_v61 = vpack.c.bf16 %v678_v55, %v676_v53  ;;  %v801_v53 = vld [vmem:[#allocation9 + $0x518] sm:$0xff]  ;;  %v803_v55 = vld [vmem:[#allocation9 + $0x528] sm:$0xff]  ;;  %v562_v44 = vrot.slane %v557_v43, %v5444_v48 }
 0x213   :  { %v365_v57 = vmax.f32 %v5453_v56, 0.0  ;;  %v4358_v60 = vpack.c.bf16 %v803_v55, %v801_v53  ;;  %v837_v56 = vld [vmem:[#allocation9 + $0x638] sm:$0xff] }
 0x215   :  { %3906 = vmatprep.mubr.msk.f32.mxu1 %vm428_vm4, %v365_v57 }
 0x216   :  { %497 = vmatmul.mubr.f32.vlgmr.msra.gmra.mrb[0].mxu1 %v364_v58 }
 0x217   :  { %4301 = vmatpush1.bf16.msra.mxu1 %v4300_v11  ;;  %v4338_v11 = vpack.c.bf16 %v691_v9, %v689_v8  ;;  %v4366_v9 = vpack.c.bf16 %v811_v7, %v809_v6  ;;  %v932_v7 = vld [vmem:[#allocation9 + $0x650] sm:$0xff] }
 0x218   :  { %4303 = vmatprep.subr.bf16.mxu1 %v4302_v12  ;;  %v416_v12 = vld [vmem:[#allocation11] sm:$0x3] }
 0x219   :  { %v421_v13 = vrot.slane %v416_v12, %v5444_v48  ;;  %v425_v14 = vrot.slane %v416_v12, %v5447_v50  ;;  %v813_v12 = vld [vmem:[#allocation9 + $0x578] sm:$0xff] }
 0x21b   :  { %4305 = vmatpush1.bf16.msra.mxu1 %v4304_v17 }
 0x21c   :  { %4307 = vmatprep.subr.bf16.mxu1 %v4306_v18 }
 0x21f   :  { %4309 = vmatpush1.bf16.msra.mxu1 %v4308_v23  ;;  %v4340_v23 = vpack.c.bf16 %v690_v22, %v688_v21  ;;  %v816_v22 = vld [vmem:[#allocation9 + $0x590] sm:$0xff] }
 0x220   :  { %4311 = vmatprep.subr.bf16.mxu1 %v4310_v24  ;;  %v693_v24 = vld [vmem:[#allocation9 + $0x488] sm:$0xff] }
 0x221   :  { %v4342_v26 = vpack.c.bf16 %v695_v25, %v693_v24  ;;  %v821_v24 = vld [vmem:[#allocation9 + $0x5b8] sm:$0xff]  ;;  %v823_v25 = vld [vmem:[#allocation9 + $0x5c8] sm:$0xff] }
 0x223   :  { %4313 = vmatpush1.bf16.msra.mxu1 %v4312_v29  ;;  %v4344_v29 = vpack.c.bf16 %v694_v28, %v692_v27  ;;  %v4378_v27 = vpack.c.bf16 %v823_v25, %v821_v24  ;;  %v820_v28 = vld [vmem:[#allocation9 + $0x5b0] sm:$0xff]  ;;  %v942_v24 = vld [vmem:[#allocation9 + $0x6a0] sm:$0xff] }
 0x224   :  { %4315 = vmatprep.subr.bf16.mxu1 %v4314_v30  ;;  %v697_v30 = vld [vmem:[#allocation9 + $0x4a8] sm:$0xff]  ;;  %v944_v25 = vld [vmem:[#allocation9 + $0x6b0] sm:$0xff] }
 0x227   :  { %4317 = vmatpush1.bf16.msra.mxu1 %v4316_v35  ;;  %v4346_v35 = vpack.c.bf16 %v791_v33, %v789_v32 }
 0x228   :  { %4319 = vmatprep.subr.bf16.mxu1 %v4318_v36  ;;  %v790_v36 = vld [vmem:[#allocation9 + $0x4c0] sm:$0xff] }
 0x229   :  { %v4348_v39 = vpack.c.bf16 %v790_v36, %v788_v34  ;;  %4347 = vmatprep.subr.bf16.mxu0 %v4346_v35  ;;  %v824_v34 = vld [vmem:[#allocation9 + $0x5d0] sm:$0xff]  ;;  %v826_v35 = vld [vmem:[#allocation9 + $0x5e0] sm:$0xff]  ;;  %v829_v36 = vld [vmem:[#allocation9 + $0x5f8] sm:$0xff] }
 0x22a   :  { %v4384_v38 = vpack.c.bf16 %v826_v35, %v824_v34 }
 0x22b   :  { %4321 = vmatpush1.bf16.msra.mxu1 %v4320_v41  ;;  %v792_v41 = vld [vmem:[#allocation9 + $0x4d0] sm:$0xff] }
 0x22c   :  { %4323 = vmatprep.subr.bf16.mxu1 %v4322_v42  ;;  %v794_v42 = vld [vmem:[#allocation9 + $0x4e0] sm:$0xff] }
 0x22d   :  { %v4352_v45 = vpack.c.bf16 %v794_v42, %v792_v41  ;;  %v830_v41 = vld [vmem:[#allocation9 + $0x600] sm:$0xff] }
 0x22f   :  { %4325 = vmatpush1.bf16.msra.mxu1 %v4324_v51  ;;  %v796_v51 = vld [vmem:[#allocation9 + $0x4f0] sm:$0xff] }
 0x230   :  { %4327 = vmatprep.subr.bf16.mxu1 %v4326_v52  ;;  %v798_v52 = vld [vmem:[#allocation9 + $0x500] sm:$0xff] }
 0x231   :  { %v4356_v59 = vpack.c.bf16 %v798_v52, %v796_v51 }
 0x233   :  { %4329 = vmatpush1.bf16.msra.mxu1 %v4328_v61  ;;  %v800_v61 = vld [vmem:[#allocation9 + $0x510] sm:$0xff] }
 0x234   :  { %4331 = vmatprep.subr.bf16.mxu1 %v4330_v62  ;;  %v802_v62 = vld [vmem:[#allocation9 + $0x520] sm:$0xff] }
 0x235   :  { %v4360_v2 = vpack.c.bf16 %v802_v62, %v800_v61  ;;  %v833_v62 = vld [vmem:[#allocation9 + $0x618] sm:$0xff] }
 0x236   :  { %v4390_v54 = vpack.c.bf16 %v835_v63, %v833_v62  ;;  %v963_v62 = vld [vmem:[#allocation9 + $0x748] sm:$0xff]  ;;  %v965_v63 = vld [vmem:[#allocation9 + $0x758] sm:$0xff] }
 0x237   :  { %4333 = vmatpush1.bf16.msra.mxu1 %v4332_v4  ;;  %v804_v4 = vld [vmem:[#allocation9 + $0x530] sm:$0xff] }
 0x238   :  { %4335 = vmatprep.subr.bf16.mxu1 %v4334_v5  ;;  %v806_v5 = vld [vmem:[#allocation9 + $0x540] sm:$0xff] }
 0x239   :  { %v4364_v8 = vpack.c.bf16 %v806_v5, %v804_v4  ;;  %v933_v4 = vld [vmem:[#allocation9 + $0x658] sm:$0xff]  ;;  %v930_v5 = vld [vmem:[#allocation9 + $0x640] sm:$0xff] }
 0x23b   :  { %4337 = vmatpush1.bf16.msra.mxu1 %v4336_v10  ;;  %v808_v10 = vld [vmem:[#allocation9 + $0x550] sm:$0xff] }
 0x23c   :  { %4339 = vmatprep.subr.bf16.mxu1 %v4338_v11  ;;  %v810_v11 = vld [vmem:[#allocation9 + $0x560] sm:$0xff] }
 0x23f   :  { %4341 = vmatpush1.bf16.msra.mxu1 %v4340_v23  ;;  %v818_v23 = vld [vmem:[#allocation9 + $0x5a0] sm:$0xff] }
 0x240   :  { %4343 = vmatprep.subr.bf16.mxu1 %v4342_v26  ;;  %v4376_v26 = vpack.c.bf16 %v818_v23, %v816_v22 }
 0x243   :  { %4345 = vmatpush1.bf16.msra.mxu1 %v4344_v29  ;;  %v822_v29 = vld [vmem:[#allocation9 + $0x5c0] sm:$0xff] }
 0x244   :  { %762 = vmatprep.subr.mxu1 %v697_v30  ;;  %v825_v30 = vld [vmem:[#allocation9 + $0x5d8] sm:$0xff]  ;;  %v4380_v32 = vpack.c.bf16 %v822_v29, %v820_v28  ;;  %v4408_v28 = vpack.c.bf16 %v944_v25, %v942_v24 }
 0x245   :  { %v977_v24 = vld [vmem:[#allocation9 + $0x7b8] sm:$0xff] }
 0x247   :  { %763 = vmatpush1.msra.mxu1 %v696_v31  ;;  %v827_v31 = vld [vmem:[#allocation9 + $0x5e8] sm:$0xff] }
 0x248   :  { %v4382_v33 = vpack.c.bf16 %v827_v31, %v825_v30  ;;  %v946_v30 = vld [vmem:[#allocation9 + $0x6c0] sm:$0xff]  ;;  %v948_v31 = vld [vmem:[#allocation9 + $0x6d0] sm:$0xff] }
 0x249   :  { %v4412_v34 = vpack.c.bf16 %v948_v31, %v946_v30  ;;  %v978_v30 = vld [vmem:[#allocation9 + $0x7c0] sm:$0xff]  ;;  %v1071_v31 = vld [vmem:[#allocation9 + $0x7d8] sm:$0xff] }
 0x2e9   :  { %v498_v15 = vpop.f32.mrb[0].mxu1 }
 0x2ea   :  { %v499_v16 = vadd.f32 %v498_v15, %v421_v13  ;;  %v500_v17 = vpop.f32.mrb[1].mxu1  ;;  %v815_v13 = vld [vmem:[#allocation9 + $0x588] sm:$0xff] }
 0x2eb   :  { %v501_v18 = vadd.f32 %v500_v17, %v425_v14  ;;  %v4368_v14 = vpack.c.bf16 %v810_v11, %v808_v10  ;;  %v4370_v15 = vpack.c.bf16 %v815_v13, %v813_v12  ;;  %v814_v17 = vld [vmem:[#allocation9 + $0x580] sm:$0xff]  ;;  %v4396_v10 = vpack.c.bf16 %v932_v7, %v930_v5  ;;  %v936_v13 = vld [vmem:[#allocation9 + $0x670] sm:$0xff]  ;;  %v971_v7 = vld [vmem:[#allocation9 + $0x788] sm:$0xff] }
 0x2ec   :  { %v503_v20 = vmax.f32 %v499_v16, 0.0  ;;  %v812_v16 = vld [vmem:[#allocation9 + $0x570] sm:$0xff]  ;;  %v934_v12 = vld [vmem:[#allocation9 + $0x660] sm:$0xff] }
 0x2ed   :  { %v504_v19 = vmax.f32 %v501_v18, 0.0  ;;  %v817_v18 = vld [vmem:[#allocation9 + $0x598] sm:$0xff]  ;;  %v966_v5 = vld [vmem:[#allocation9 + $0x760] sm:$0xff] }
 0x2ef   :  { %3907 = vmatprep.mubr.msk.f32.mxu0 %vm428_vm4, %v504_v19  ;;  %v819_v19 = vld [vmem:[#allocation9 + $0x5a8] sm:$0xff] }
 0x2f0   :  { %637 = vmatmul.mubr.f32.vlgmr.msra.gmra.mrb[2].mxu0 %v503_v20  ;;  %v4372_v20 = vpack.c.bf16 %v814_v17, %v812_v16  ;;  %v4374_v21 = vpack.c.bf16 %v819_v19, %v817_v18  ;;  %v4400_v16 = vpack.c.bf16 %v936_v13, %v934_v12  ;;  %v938_v18 = vld [vmem:[#allocation9 + $0x680] sm:$0xff]  ;;  %v940_v19 = vld [vmem:[#allocation9 + $0x690] sm:$0xff] }
 0x2f1   :  { %4349 = vmatpush1.bf16.msra.mxu0 %v4348_v39  ;;  %v4386_v39 = vpack.c.bf16 %v831_v37, %v829_v36  ;;  %v4404_v22 = vpack.c.bf16 %v940_v19, %v938_v18  ;;  %v950_v36 = vld [vmem:[#allocation9 + $0x6e0] sm:$0xff]  ;;  %v952_v37 = vld [vmem:[#allocation9 + $0x6f0] sm:$0xff] }
 0x2f2   :  { %4351 = vmatprep.subr.bf16.mxu0 %v4350_v40  ;;  %v828_v40 = vld [vmem:[#allocation9 + $0x5f0] sm:$0xff] }
 0x2f3   :  { %v4388_v42 = vpack.c.bf16 %v830_v41, %v828_v40  ;;  %v4416_v40 = vpack.c.bf16 %v952_v37, %v950_v36  ;;  %v1075_v36 = vld [vmem:[#allocation9 + $0x7f8] sm:$0xff]  ;;  %v1077_v37 = vld [vmem:[#allocation9 + $0x808] sm:$0xff] }
 0x2f5   :  { %4353 = vmatpush1.bf16.msra.mxu0 %v4352_v45  ;;  %v566_v45 = vrot.slane %v557_v43, %v5447_v50  ;;  %v956_v43 = vld [vmem:[#allocation9 + $0x710] sm:$0xff] }
 0x2f6   :  { %4355 = vmatprep.subr.bf16.mxu0 %v4354_v49 }
 0x2f9   :  { %4357 = vmatpush1.bf16.msra.mxu0 %v4356_v59 }
 0x2fa   :  { %4359 = vmatprep.subr.bf16.mxu0 %v4358_v60 }
 0x2fd   :  { %4361 = vmatpush1.bf16.msra.mxu0 %v4360_v2 }
 0x2fe   :  { %4363 = vmatprep.subr.bf16.mxu0 %v4362_v3  ;;  %v931_v3 = vld [vmem:[#allocation9 + $0x648] sm:$0xff] }
 0x2ff   :  { %v4394_v6 = vpack.c.bf16 %v933_v4, %v931_v3 }
 0x301   :  { %4365 = vmatpush1.bf16.msra.mxu0 %v4364_v8  ;;  %v935_v8 = vld [vmem:[#allocation9 + $0x668] sm:$0xff]  ;;  %4395 = vmatprep.subr.bf16.mxu1 %v4394_v6  ;;  %v968_v6 = vld [vmem:[#allocation9 + $0x770] sm:$0xff] }
 0x302   :  { %4367 = vmatprep.subr.bf16.mxu0 %v4366_v9  ;;  %v937_v9 = vld [vmem:[#allocation9 + $0x678] sm:$0xff] }
 0x303   :  { %v4398_v11 = vpack.c.bf16 %v937_v9, %v935_v8  ;;  %v973_v8 = vld [vmem:[#allocation9 + $0x798] sm:$0xff]  ;;  %v4432_v9 = vpack.c.bf16 %v968_v6, %v966_v5  ;;  %v1093_v6 = vld [vmem:[#allocation9 + $0x888] sm:$0xff] }
 0x304   :  { %v1091_v5 = vld [vmem:[#allocation9 + $0x878] sm:$0xff] }
 0x305   :  { %4369 = vmatpush1.bf16.msra.mxu0 %v4368_v14  ;;  %v939_v14 = vld [vmem:[#allocation9 + $0x688] sm:$0xff] }
 0x306   :  { %4371 = vmatprep.subr.bf16.mxu0 %v4370_v15  ;;  %v941_v15 = vld [vmem:[#allocation9 + $0x698] sm:$0xff] }
 0x307   :  { %v4402_v17 = vpack.c.bf16 %v941_v15, %v939_v14 }
 0x309   :  { %4373 = vmatpush1.bf16.msra.mxu0 %v4372_v20  ;;  %v943_v20 = vld [vmem:[#allocation9 + $0x6a8] sm:$0xff] }
 0x30a   :  { %4375 = vmatprep.subr.bf16.mxu0 %v4374_v21  ;;  %v945_v21 = vld [vmem:[#allocation9 + $0x6b8] sm:$0xff] }
 0x30b   :  { %v4406_v23 = vpack.c.bf16 %v945_v21, %v943_v20  ;;  %v970_v20 = vld [vmem:[#allocation9 + $0x780] sm:$0xff]  ;;  %v972_v21 = vld [vmem:[#allocation9 + $0x790] sm:$0xff] }
 0x30d   :  { %4377 = vmatpush1.bf16.msra.mxu0 %v4376_v26  ;;  %v947_v26 = vld [vmem:[#allocation9 + $0x6c8] sm:$0xff] }
 0x30e   :  { %4379 = vmatprep.subr.bf16.mxu0 %v4378_v27  ;;  %v949_v27 = vld [vmem:[#allocation9 + $0x6d8] sm:$0xff] }
 0x30f   :  { %v4410_v29 = vpack.c.bf16 %v949_v27, %v947_v26  ;;  %v974_v26 = vld [vmem:[#allocation9 + $0x7a0] sm:$0xff]  ;;  %v976_v27 = vld [vmem:[#allocation9 + $0x7b0] sm:$0xff] }
 0x311   :  { %4381 = vmatpush1.bf16.msra.mxu0 %v4380_v32  ;;  %v951_v32 = vld [vmem:[#allocation9 + $0x6e8] sm:$0xff] }
 0x312   :  { %4383 = vmatprep.subr.bf16.mxu0 %v4382_v33  ;;  %v953_v33 = vld [vmem:[#allocation9 + $0x6f8] sm:$0xff] }
 0x313   :  { %v4414_v35 = vpack.c.bf16 %v953_v33, %v951_v32  ;;  %v1073_v32 = vld [vmem:[#allocation9 + $0x7e8] sm:$0xff]  ;;  %v1070_v33 = vld [vmem:[#allocation9 + $0x7d0] sm:$0xff] }
 0x315   :  { %4385 = vmatpush1.bf16.msra.mxu0 %v4384_v38  ;;  %v955_v38 = vld [vmem:[#allocation9 + $0x708] sm:$0xff] }
 0x316   :  { %4387 = vmatprep.subr.bf16.mxu0 %v4386_v39  ;;  %v957_v39 = vld [vmem:[#allocation9 + $0x718] sm:$0xff] }
 0x317   :  { %v4418_v41 = vpack.c.bf16 %v957_v39, %v955_v38  ;;  %v4446_v39 = vpack.c.bf16 %v1077_v37, %v1075_v36  ;;  %v1113_v36 = vld [vmem:[#allocation9 + $0x928] sm:$0xff] }
 0x319   :  { %4389 = vmatpush1.bf16.msra.mxu0 %v4388_v42  ;;  %v954_v42 = vld [vmem:[#allocation9 + $0x700] sm:$0xff] }
 0x31a   :  { %4391 = vmatprep.subr.bf16.mxu0 %v4390_v54 }
 0x3c3   :  { %v638_v49 = vpop.f32.mrb[2].mxu0 }
 0x3c4   :  { %v639_v51 = vadd.f32 %v638_v49, %v562_v44  ;;  %v640_v52 = vpop.f32.mrb[3].mxu0  ;;  %v959_v44 = vld [vmem:[#allocation9 + $0x728] sm:$0xff]  ;;  %v4420_v49 = vpack.c.bf16 %v956_v43, %v954_v42  ;;  %v1079_v42 = vld [vmem:[#allocation9 + $0x818] sm:$0xff] }
 0x3c5   :  { %v641_v53 = vadd.f32 %v640_v52, %v566_v45  ;;  %v961_v45 = vld [vmem:[#allocation9 + $0x738] sm:$0xff]  ;;  %v958_v52 = vld [vmem:[#allocation9 + $0x720] sm:$0xff]  ;;  %v1081_v43 = vld [vmem:[#allocation9 + $0x828] sm:$0xff] }
 0x3c6   :  { %v5469_v55 = vadd.f32 %v639_v51, %v364_v58  ;;  %v832_v58 = vld [vmem:[#allocation9 + $0x610] sm:$0xff]  ;;  %v4422_v51 = vpack.c.bf16 %v961_v45, %v959_v44  ;;  %v4450_v45 = vpack.c.bf16 %v1081_v43, %v1079_v42  ;;  %v839_v42 = vld [vmem:[#allocation11 + $0x6] sm:$0x3] }
 0x3c7   :  { %v5473_v59 = vadd.f32 %v641_v53, %v365_v57  ;;  %v4392_v2 = vpack.c.bf16 %v834_v1, %v832_v58  ;;  %v836_v57 = vld [vmem:[#allocation9 + $0x630] sm:$0xff]  ;;  %v4426_v58 = vpack.c.bf16 %v965_v63, %v963_v62  ;;  %v962_v1 = vld [vmem:[#allocation9 + $0x740] sm:$0xff]  ;;  %v844_v43 = vrot.slane %v839_v42, %v5444_v48 }
 0x3c8   :  { %v645_v61 = vmax.f32 %v5469_v55, 0.0  ;;  %v960_v53 = vld [vmem:[#allocation9 + $0x730] sm:$0xff] }
 0x3c9   :  { %v646_v60 = vmax.f32 %v5473_v59, 0.0  ;;  %4393 = vmatpush1.bf16.msra.mxu0 %v4392_v2  ;;  %v4424_v54 = vpack.c.bf16 %v960_v53, %v958_v52  ;;  %v964_v2 = vld [vmem:[#allocation9 + $0x750] sm:$0xff]  ;;  %v1083_v52 = vld [vmem:[#allocation9 + $0x838] sm:$0xff]  ;;  %v1085_v53 = vld [vmem:[#allocation9 + $0x848] sm:$0xff] }
 0x3ca   :  { %902 = vmatprep.subr.mxu0 %v837_v56  ;;  %v967_v56 = vld [vmem:[#allocation9 + $0x768] sm:$0xff]  ;;  %v4428_v3 = vpack.c.bf16 %v964_v2, %v962_v1  ;;  %v4454_v63 = vpack.c.bf16 %v1085_v53, %v1083_v52  ;;  %v1087_v1 = vld [vmem:[#allocation9 + $0x858] sm:$0xff] }
 0x3cb   :  { %3908 = vmatprep.mubr.msk.f32.mxu1 %vm428_vm4, %v646_v60  ;;  %v1089_v2 = vld [vmem:[#allocation9 + $0x868] sm:$0xff]  ;;  %v1119_v59 = vld [vmem:[#allocation9 + $0x958] sm:$0xff] }
 0x3cc   :  { %779 = vmatmul.mubr.f32.vlgmr.msra.gmra.mrb[2].mxu1 %v645_v61 }
 0x3cd   :  { %903 = vmatpush1.msra.mxu0 %v836_v57  ;;  %4397 = vmatpush1.bf16.msra.mxu1 %v4396_v10  ;;  %v969_v57 = vld [vmem:[#allocation9 + $0x778] sm:$0xff]  ;;  %v4434_v10 = vpack.c.bf16 %v973_v8, %v971_v7  ;;  %v4462_v8 = vpack.c.bf16 %v1093_v6, %v1091_v5  ;;  %v1218_v6 = vld [vmem:[#allocation12 + $0x38] sm:$0xff] }
 0x3ce   :  { %4399 = vmatprep.subr.bf16.mxu1 %v4398_v11  ;;  %v4430_v4 = vpack.c.bf16 %v969_v57, %v967_v56  ;;  %v699_v11 = vld [vmem:[#allocation11 + $0x4] sm:$0x3]  ;;  %v4458_v57 = vpack.c.bf16 %v1089_v2, %v1087_v1  ;;  %v1117_v1 = vld [vmem:[#allocation9 + $0x948] sm:$0xff] }
 0x3cf   :  { %v704_v12 = vrot.slane %v699_v11, %v5444_v48  ;;  %v708_v13 = vrot.slane %v699_v11, %v5447_v50  ;;  %v1095_v11 = vld [vmem:[#allocation9 + $0x898] sm:$0xff]  ;;  %v1116_v2 = vld [vmem:[#allocation9 + $0x940] sm:$0xff] }
 0x3d1   :  { %4401 = vmatpush1.bf16.msra.mxu1 %v4400_v16 }
 0x3d2   :  { %4403 = vmatprep.subr.bf16.mxu1 %v4402_v17 }
 0x3d5   :  { %4405 = vmatpush1.bf16.msra.mxu1 %v4404_v22  ;;  %v4436_v22 = vpack.c.bf16 %v972_v21, %v970_v20  ;;  %v1098_v21 = vld [vmem:[#allocation9 + $0x8b0] sm:$0xff] }
 0x3d6   :  { %4407 = vmatprep.subr.bf16.mxu1 %v4406_v23  ;;  %v975_v23 = vld [vmem:[#allocation9 + $0x7a8] sm:$0xff] }
 0x3d7   :  { %v4438_v25 = vpack.c.bf16 %v977_v24, %v975_v23  ;;  %v1103_v23 = vld [vmem:[#allocation9 + $0x8d8] sm:$0xff]  ;;  %v1105_v24 = vld [vmem:[#allocation9 + $0x8e8] sm:$0xff] }
 0x3d9   :  { %4409 = vmatpush1.bf16.msra.mxu1 %v4408_v28  ;;  %v4440_v28 = vpack.c.bf16 %v976_v27, %v974_v26  ;;  %v4474_v26 = vpack.c.bf16 %v1105_v24, %v1103_v23  ;;  %v1102_v27 = vld [vmem:[#allocation9 + $0x8d0] sm:$0xff] }
 0x3da   :  { %4411 = vmatprep.subr.bf16.mxu1 %v4410_v29  ;;  %v979_v29 = vld [vmem:[#allocation9 + $0x7c8] sm:$0xff]  ;;  %v1236_v23 = vld [vmem:[#allocation12 + $0xc8] sm:$0xff] }
 0x3db   :  { %v1240_v24 = vld [vmem:[#allocation12 + $0xe8] sm:$0xff] }
 0x3dd   :  { %4413 = vmatpush1.bf16.msra.mxu1 %v4412_v34  ;;  %v4442_v34 = vpack.c.bf16 %v1073_v32, %v1071_v31 }
 0x3de   :  { %4415 = vmatprep.subr.bf16.mxu1 %v4414_v35  ;;  %v1072_v35 = vld [vmem:[#allocation9 + $0x7e0] sm:$0xff] }
 0x3df   :  { %v4444_v38 = vpack.c.bf16 %v1072_v35, %v1070_v33  ;;  %4443 = vmatprep.subr.bf16.mxu0 %v4442_v34  ;;  %v1106_v33 = vld [vmem:[#allocation9 + $0x8f0] sm:$0xff]  ;;  %v1108_v34 = vld [vmem:[#allocation9 + $0x900] sm:$0xff]  ;;  %v1111_v35 = vld [vmem:[#allocation9 + $0x918] sm:$0xff] }
 0x3e0   :  { %v4480_v37 = vpack.c.bf16 %v1108_v34, %v1106_v33  ;;  %v1247_v33 = vld [vmem:[#allocation12 + $0x120] sm:$0xff] }
 0x3e1   :  { %4417 = vmatpush1.bf16.msra.mxu1 %v4416_v40  ;;  %v1074_v40 = vld [vmem:[#allocation9 + $0x7f0] sm:$0xff] }
 0x3e2   :  { %4419 = vmatprep.subr.bf16.mxu1 %v4418_v41  ;;  %v1076_v41 = vld [vmem:[#allocation9 + $0x800] sm:$0xff] }
 0x3e3   :  { %v4448_v44 = vpack.c.bf16 %v1076_v41, %v1074_v40  ;;  %v1112_v40 = vld [vmem:[#allocation9 + $0x920] sm:$0xff] }
 0x3e5   :  { %4421 = vmatpush1.bf16.msra.mxu1 %v4420_v49  ;;  %v1078_v49 = vld [vmem:[#allocation9 + $0x810] sm:$0xff] }
 0x3e6   :  { %4423 = vmatprep.subr.bf16.mxu1 %v4422_v51  ;;  %v1080_v51 = vld [vmem:[#allocation9 + $0x820] sm:$0xff] }
 0x3e7   :  { %v4452_v62 = vpack.c.bf16 %v1080_v51, %v1078_v49 }
 0x3e9   :  { %4425 = vmatpush1.bf16.msra.mxu1 %v4424_v54  ;;  %v1082_v54 = vld [vmem:[#allocation9 + $0x830] sm:$0xff] }
 0x3ea   :  { %4427 = vmatprep.subr.bf16.mxu1 %v4426_v58  ;;  %v1084_v58 = vld [vmem:[#allocation9 + $0x840] sm:$0xff] }
 0x3eb   :  { %v4456_v56 = vpack.c.bf16 %v1084_v58, %v1082_v54  ;;  %v1115_v58 = vld [vmem:[#allocation9 + $0x938] sm:$0xff] }
 0x3ec   :  { %v4486_v55 = vpack.c.bf16 %v1117_v1, %v1115_v58  ;;  %v1267_v1 = vld [vmem:[#allocation12 + $0x1c0] sm:$0xff] }
 0x3ed   :  { %4429 = vmatpush1.bf16.msra.mxu1 %v4428_v3  ;;  %v1086_v3 = vld [vmem:[#allocation9 + $0x850] sm:$0xff] }
 0x3ee   :  { %4431 = vmatprep.subr.bf16.mxu1 %v4430_v4  ;;  %v1088_v4 = vld [vmem:[#allocation9 + $0x860] sm:$0xff] }
 0x3ef   :  { %v4460_v7 = vpack.c.bf16 %v1088_v4, %v1086_v3  ;;  %v1216_v3 = vld [vmem:[#allocation12 + $0x28] sm:$0xff]  ;;  %v1214_v4 = vld [vmem:[#allocation12 + $0x18] sm:$0xff] }
 0x3f1   :  { %4433 = vmatpush1.bf16.msra.mxu1 %v4432_v9  ;;  %v1090_v9 = vld [vmem:[#allocation9 + $0x870] sm:$0xff] }
 0x3f2   :  { %4435 = vmatprep.subr.bf16.mxu1 %v4434_v10  ;;  %v1092_v10 = vld [vmem:[#allocation9 + $0x880] sm:$0xff] }
 0x3f5   :  { %4437 = vmatpush1.bf16.msra.mxu1 %v4436_v22  ;;  %v1100_v22 = vld [vmem:[#allocation9 + $0x8c0] sm:$0xff] }
 0x3f6   :  { %4439 = vmatprep.subr.bf16.mxu1 %v4438_v25  ;;  %v4472_v25 = vpack.c.bf16 %v1100_v22, %v1098_v21  ;;  %v1231_v21 = vld [vmem:[#allocation12 + $0xa0] sm:$0xff] }
 0x3f9   :  { %4441 = vmatpush1.bf16.msra.mxu1 %v4440_v28  ;;  %v1104_v28 = vld [vmem:[#allocation9 + $0x8e0] sm:$0xff] }
 0x3fa   :  { %1044 = vmatprep.subr.mxu1 %v979_v29  ;;  %v1107_v29 = vld [vmem:[#allocation9 + $0x8f8] sm:$0xff]  ;;  %v4476_v31 = vpack.c.bf16 %v1104_v28, %v1102_v27  ;;  %v1239_v27 = vld [vmem:[#allocation12 + $0xe0] sm:$0xff] }
 0x3fd   :  { %1045 = vmatpush1.msra.mxu1 %v978_v30  ;;  %v1109_v30 = vld [vmem:[#allocation9 + $0x908] sm:$0xff] }
 0x3fe   :  { %v4478_v32 = vpack.c.bf16 %v1109_v30, %v1107_v29  ;;  %v1244_v29 = vld [vmem:[#allocation12 + $0x108] sm:$0xff] }
 0x3ff   :  { %v1248_v30 = vld [vmem:[#allocation12 + $0x128] sm:$0xff] }
 0x49f   :  { %v780_v14 = vpop.f32.mrb[2].mxu1 }
 0x4a0   :  { %v781_v15 = vadd.f32 %v780_v14, %v704_v12  ;;  %v782_v16 = vpop.f32.mrb[3].mxu1  ;;  %v1097_v12 = vld [vmem:[#allocation9 + $0x8a8] sm:$0xff] }
 0x4a1   :  { %v783_v17 = vadd.f32 %v782_v16, %v708_v13  ;;  %v4464_v13 = vpack.c.bf16 %v1092_v10, %v1090_v9  ;;  %v4466_v14 = vpack.c.bf16 %v1097_v12, %v1095_v11  ;;  %v1096_v16 = vld [vmem:[#allocation9 + $0x8a0] sm:$0xff]  ;;  %v4538_v9 = vpack.c.bf16 %v1218_v6, %v1214_v4  ;;  %v1220_v11 = vld [vmem:[#allocation12 + $0x48] sm:$0xff] }
 0x4a2   :  { %v785_v19 = vmax.f32 %v781_v15, 0.0  ;;  %v1094_v15 = vld [vmem:[#allocation9 + $0x890] sm:$0xff] }
 0x4a3   :  { %v786_v18 = vmax.f32 %v783_v17, 0.0  ;;  %v1099_v17 = vld [vmem:[#allocation9 + $0x8b8] sm:$0xff] }
 0x4a4   :  { %v1224_v12 = vld [vmem:[#allocation12 + $0x68] sm:$0xff] }
 0x4a5   :  { %3909 = vmatprep.mubr.msk.f32.mxu0 %vm428_vm4, %v786_v18  ;;  %v1101_v18 = vld [vmem:[#allocation9 + $0x8c8] sm:$0xff]  ;;  %v1284_v4 = vld [vmem:[#allocation12 + $0x248] sm:$0xff] }
 0x4a6   :  { %919 = vmatmul.mubr.f32.vlgmr.msra.gmra.mrb[4].mxu0 %v785_v19  ;;  %v4468_v19 = vpack.c.bf16 %v1096_v16, %v1094_v15  ;;  %v4470_v20 = vpack.c.bf16 %v1101_v18, %v1099_v17  ;;  %v1223_v15 = vld [vmem:[#allocation12 + $0x60] sm:$0xff]  ;;  %v1228_v17 = vld [vmem:[#allocation12 + $0x88] sm:$0xff] }
 0x4a7   :  { %4445 = vmatpush1.bf16.msra.mxu0 %v4444_v38  ;;  %v4482_v38 = vpack.c.bf16 %v1113_v36, %v1111_v35  ;;  %v1232_v18 = vld [vmem:[#allocation12 + $0xa8] sm:$0xff] }
 0x4a8   :  { %4447 = vmatprep.subr.bf16.mxu0 %v4446_v39  ;;  %v1110_v39 = vld [vmem:[#allocation9 + $0x910] sm:$0xff] }
 0x4a9   :  { %v4484_v41 = vpack.c.bf16 %v1112_v40, %v1110_v39  ;;  %v1252_v35 = vld [vmem:[#allocation12 + $0x148] sm:$0xff]  ;;  %v1255_v39 = vld [vmem:[#allocation12 + $0x160] sm:$0xff] }
 0x4aa   :  { %v1256_v36 = vld [vmem:[#allocation12 + $0x168] sm:$0xff] }
 0x4ab   :  { %4449 = vmatpush1.bf16.msra.mxu0 %v4448_v44  ;;  %v848_v44 = vrot.slane %v839_v42, %v5447_v50  ;;  %v1264_v42 = vld [vmem:[#allocation12 + $0x1a8] sm:$0xff] }
 0x4ac   :  { %4451 = vmatprep.subr.bf16.mxu0 %v4450_v45 }
 0x4af   :  { %4453 = vmatpush1.bf16.msra.mxu0 %v4452_v62 }
 0x4b0   :  { %4455 = vmatprep.subr.bf16.mxu0 %v4454_v63 }
 0x4b3   :  { %4457 = vmatpush1.bf16.msra.mxu0 %v4456_v56 }
 0x4b4   :  { %4459 = vmatprep.subr.bf16.mxu0 %v4458_v57  ;;  %v1212_v57 = vld [vmem:[#allocation12 + $0x8] sm:$0xff] }
 0x4b5   :  { %v4490_v5 = vpack.c.bf16 %v1216_v3, %v1212_v57  ;;  %v1279_v57 = vld [vmem:[#allocation12 + $0x220] sm:$0xff] }
 0x4b7   :  { %4461 = vmatpush1.bf16.msra.mxu0 %v4460_v7  ;;  %v1211_v7 = vld [vmem:[#allocation12] sm:$0xff]  ;;  %4491 = vmatprep.subr.bf16.mxu1 %v4490_v5  ;;  %v1288_v5 = vld [vmem:[#allocation12 + $0x268] sm:$0xff] }
 0x4b8   :  { %4463 = vmatprep.subr.bf16.mxu0 %v4462_v8  ;;  %v1215_v8 = vld [vmem:[#allocation12 + $0x20] sm:$0xff]  ;;  %v4526_v6 = vpack.c.bf16 %v1288_v5, %v1284_v4  ;;  %v1265_v4 = vld [vmem:[#allocation12 + $0x1b0] sm:$0xff]  ;;  %v1270_v5 = vld [vmem:[#allocation12 + $0x1d8] sm:$0xff] }
 0x4b9   :  { %v4492_v10 = vpack.c.bf16 %v1215_v8, %v1211_v7  ;;  %v1283_v7 = vld [vmem:[#allocation12 + $0x240] sm:$0xff] }
 0x4ba   :  { %v1287_v8 = vld [vmem:[#allocation12 + $0x260] sm:$0xff] }
 0x4bb   :  { %4465 = vmatpush1.bf16.msra.mxu0 %v4464_v13  ;;  %v4494_v13 = vpack.c.bf16 %v1224_v12, %v1220_v11  ;;  %v1296_v11 = vld [vmem:[#allocation12 + $0x2a8] sm:$0xff] }
 0x4bc   :  { %4467 = vmatprep.subr.bf16.mxu0 %v4466_v14  ;;  %v1219_v14 = vld [vmem:[#allocation12 + $0x40] sm:$0xff] }
 0x4bd   :  { %v4496_v16 = vpack.c.bf16 %v1223_v15, %v1219_v14 }
 0x4bf   :  { %4469 = vmatpush1.bf16.msra.mxu0 %v4468_v19  ;;  %v4498_v19 = vpack.c.bf16 %v1232_v18, %v1228_v17 }
 0x4c0   :  { %4471 = vmatprep.subr.bf16.mxu0 %v4470_v20  ;;  %v1227_v20 = vld [vmem:[#allocation12 + $0x80] sm:$0xff] }
 0x4c1   :  { %v4500_v22 = vpack.c.bf16 %v1231_v21, %v1227_v20  ;;  %v1217_v20 = vld [vmem:[#allocation12 + $0x30] sm:$0xff] }
 0x4c3   :  { %4473 = vmatpush1.bf16.msra.mxu0 %v4472_v25  ;;  %v4502_v25 = vpack.c.bf16 %v1240_v24, %v1236_v23  ;;  %v1226_v23 = vld [vmem:[#allocation12 + $0x78] sm:$0xff] }
 0x4c4   :  { %4475 = vmatprep.subr.bf16.mxu0 %v4474_v26  ;;  %v1235_v26 = vld [vmem:[#allocation12 + $0xc0] sm:$0xff] }
 0x4c5   :  { %v4504_v28 = vpack.c.bf16 %v1239_v27, %v1235_v26 }
 0x4c7   :  { %4477 = vmatpush1.bf16.msra.mxu0 %v4476_v31  ;;  %v4506_v31 = vpack.c.bf16 %v1248_v30, %v1244_v29  ;;  %v1225_v29 = vld [vmem:[#allocation12 + $0x70] sm:$0xff]  ;;  %v1230_v30 = vld [vmem:[#allocation12 + $0x98] sm:$0xff] }
 0x4c8   :  { %4479 = vmatprep.subr.bf16.mxu0 %v4478_v32  ;;  %v1243_v32 = vld [vmem:[#allocation12 + $0x100] sm:$0xff] }
 0x4c9   :  { %v4508_v34 = vpack.c.bf16 %v1247_v33, %v1243_v32 }
 0x4cb   :  { %4481 = vmatpush1.bf16.msra.mxu0 %v4480_v37  ;;  %v4510_v37 = vpack.c.bf16 %v1256_v36, %v1252_v35  ;;  %v1233_v35 = vld [vmem:[#allocation12 + $0xb0] sm:$0xff]  ;;  %v1238_v36 = vld [vmem:[#allocation12 + $0xd8] sm:$0xff] }
 0x4cc   :  { %4483 = vmatprep.subr.bf16.mxu0 %v4482_v38  ;;  %v1251_v38 = vld [vmem:[#allocation12 + $0x140] sm:$0xff] }
 0x4cd   :  { %v4512_v40 = vpack.c.bf16 %v1255_v39, %v1251_v38 }
 0x4cf   :  { %4485 = vmatpush1.bf16.msra.mxu0 %v4484_v41  ;;  %v1260_v41 = vld [vmem:[#allocation12 + $0x188] sm:$0xff] }
 0x4d0   :  { %4487 = vmatprep.subr.bf16.mxu0 %v4486_v55  ;;  %v1271_v55 = vld [vmem:[#allocation12 + $0x1e0] sm:$0xff] }
 0x579   :  { %v920_v45 = vpop.f32.mrb[4].mxu0 }
 0x57a   :  { %v921_v49 = vadd.f32 %v920_v45, %v844_v43  ;;  %v922_v51 = vpop.f32.mrb[5].mxu0  ;;  %v4514_v43 = vpack.c.bf16 %v1264_v42, %v1260_v41  ;;  %v1263_v45 = vld [vmem:[#allocation12 + $0x1a0] sm:$0xff]  ;;  %v1241_v41 = vld [vmem:[#allocation12 + $0xf0] sm:$0xff]  ;;  %v1246_v42 = vld [vmem:[#allocation12 + $0x118] sm:$0xff] }
 0x57b   :  { %v923_v52 = vadd.f32 %v922_v51, %v848_v44  ;;  %v1259_v44 = vld [vmem:[#allocation12 + $0x180] sm:$0xff]  ;;  %v1268_v51 = vld [vmem:[#allocation12 + $0x1c8] sm:$0xff] }
 0x57c   :  { %v5489_v53 = vadd.f32 %v921_v49, %v645_v61  ;;  %v1114_v61 = vld [vmem:[#allocation9 + $0x930] sm:$0xff]  ;;  %v4516_v49 = vpack.c.bf16 %v1263_v45, %v1259_v44 }
 0x57d   :  { %v5493_v62 = vadd.f32 %v923_v52, %v646_v60  ;;  %v4488_v56 = vpack.c.bf16 %v1116_v2, %v1114_v61  ;;  %v1118_v60 = vld [vmem:[#allocation9 + $0x950] sm:$0xff]  ;;  %v4520_v61 = vpack.c.bf16 %v1271_v55, %v1267_v1 }
 0x57e   :  { %v927_v54 = vmax.f32 %v5489_v53, 0.0  ;;  %v1272_v52 = vld [vmem:[#allocation12 + $0x1e8] sm:$0xff]  ;;  %v5132_v53 = vmov 0.0|0.0  }
 0x57f   :  { %v928_v63 = vmax.f32 %v5493_v62, 0.0  ;;  %4489 = vmatpush1.bf16.msra.mxu0 %v4488_v56  ;;  %v4518_v58 = vpack.c.bf16 %v1272_v52, %v1268_v51  ;;  %v1276_v2 = vld [vmem:[#allocation12 + $0x208] sm:$0xff]  ;;  %v1249_v51 = vld [vmem:[#allocation12 + $0x130] sm:$0xff]  ;;  %v1254_v52 = vld [vmem:[#allocation12 + $0x158] sm:$0xff] }
 0x580   :  { %1184 = vmatprep.subr.mxu0 %v1119_v59  ;;  %v1280_v56 = vld [vmem:[#allocation12 + $0x228] sm:$0xff] }
 0x581   :  { %3910 = vmatprep.mubr.msk.f32.mxu1 %vm428_vm4, %v928_v63  ;;  %v4522_v59 = vpack.c.bf16 %v1280_v56, %v1276_v2  ;;  %v1257_v2 = vld [vmem:[#allocation12 + $0x170] sm:$0xff]  ;;  %v1262_v56 = vld [vmem:[#allocation12 + $0x198] sm:$0xff] }
 0x582   :  { %1061 = vmatmul.mubr.f32.vlgmr.msra.gmra.mrb[4].mxu1 %v927_v54  ;;  %v1661_v62 = vld [vmem:[%s5940_s9 + $0x100] sm:$0xff] }
 0x583   :  { %1185 = vmatpush1.msra.mxu0 %v1118_v60  ;;  %4493 = vmatpush1.bf16.msra.mxu1 %v4492_v10  ;;  %v1275_v60 = vld [vmem:[#allocation12 + $0x200] sm:$0xff]  ;;  %v1292_v10 = vld [vmem:[#allocation12 + $0x288] sm:$0xff] }
 0x584   :  { %4539 = vmatprep.subr.bf16.mxu0 %v4538_v9  ;;  %4495 = vmatprep.subr.bf16.mxu1 %v4494_v13  ;;  %v4524_v3 = vpack.c.bf16 %v1279_v57, %v1275_v60  ;;  %v4528_v9 = vpack.c.bf16 %v1287_v8, %v1283_v7  ;;  %v4530_v12 = vpack.c.bf16 %v1296_v11, %v1292_v10  ;;  %v981_v13 = vld [vmem:[#allocation11 + $0x8] sm:$0x3]  ;;  %v1273_v10 = vld [vmem:[#allocation12 + $0x1f0] sm:$0xff] }
 0x585   :  { %v986_v14 = vrot.slane %v981_v13, %v5444_v48  ;;  %v990_v15 = vrot.slane %v981_v13, %v5447_v50  ;;  %v1278_v11 = vld [vmem:[#allocation12 + $0x218] sm:$0xff] }
 0x587   :  { %4497 = vmatpush1.bf16.msra.mxu1 %v4496_v16 }
 0x588   :  { %4499 = vmatprep.subr.bf16.mxu1 %v4498_v19  ;;  %v1213_v19 = vld [vmem:[#allocation12 + $0x10] sm:$0xff] }
 0x58b   :  { %4501 = vmatpush1.bf16.msra.mxu1 %v4500_v22  ;;  %v1222_v22 = vld [vmem:[#allocation12 + $0x58] sm:$0xff] }
 0x58c   :  { %4503 = vmatprep.subr.bf16.mxu1 %v4502_v25  ;;  %v4540_v25 = vpack.c.bf16 %v1217_v20, %v1213_v19  ;;  %v4542_v27 = vpack.c.bf16 %v1226_v23, %v1222_v22  ;;  %v1289_v22 = vld [vmem:[#allocation12 + $0x270] sm:$0xff]  ;;  %v1294_v23 = vld [vmem:[#allocation12 + $0x298] sm:$0xff] }
 0x58f   :  { %4505 = vmatpush1.bf16.msra.mxu1 %v4504_v28  ;;  %v1221_v28 = vld [vmem:[#allocation12 + $0x50] sm:$0xff] }
 0x590   :  { %4507 = vmatprep.subr.bf16.mxu1 %v4506_v31  ;;  %v1234_v31 = vld [vmem:[#allocation12 + $0xb8] sm:$0xff]  ;;  %v4544_v32 = vpack.c.bf16 %v1225_v29, %v1221_v28  ;;  %v1295_v28 = vld [vmem:[#allocation12 + $0x2a0] sm:$0xff]  ;;  %v1293_v29 = vld [vmem:[#allocation12 + $0x290] sm:$0xff] }
 0x591   :  { %v4546_v33 = vpack.c.bf16 %v1234_v31, %v1230_v30  ;;  %v1297_v31 = vld [vmem:[#allocation12 + $0x2b0] sm:$0xff] }
 0x593   :  { %4509 = vmatpush1.bf16.msra.mxu1 %v4508_v34  ;;  %v1229_v34 = vld [vmem:[#allocation12 + $0x90] sm:$0xff] }
 0x594   :  { %4511 = vmatprep.subr.bf16.mxu1 %v4510_v37  ;;  %v1242_v37 = vld [vmem:[#allocation12 + $0xf8] sm:$0xff]  ;;  %v4548_v38 = vpack.c.bf16 %v1233_v35, %v1229_v34  ;;  %v1304_v34 = vld [vmem:[#allocation12 + $0x2e8] sm:$0xff] }
 0x595   :  { %v4550_v39 = vpack.c.bf16 %v1242_v37, %v1238_v36  ;;  %v1302_v35 = vld [vmem:[#allocation12 + $0x2d8] sm:$0xff] }
 0x596   :  { %v1306_v37 = vld [vmem:[#allocation12 + $0x2f8] sm:$0xff] }
 0x597   :  { %4513 = vmatpush1.bf16.msra.mxu1 %v4512_v40  ;;  %v1237_v40 = vld [vmem:[#allocation12 + $0xd0] sm:$0xff] }
 0x598   :  { %4515 = vmatprep.subr.bf16.mxu1 %v4514_v43  ;;  %v1250_v43 = vld [vmem:[#allocation12 + $0x138] sm:$0xff]  ;;  %v4552_v44 = vpack.c.bf16 %v1241_v41, %v1237_v40  ;;  %v4582_v40 = vpack.c.bf16 %v1306_v37, %v1302_v35 }
 0x599   :  { %v4554_v45 = vpack.c.bf16 %v1250_v43, %v1246_v42  ;;  %v1301_v42 = vld [vmem:[#allocation12 + $0x2d0] sm:$0xff] }
 0x59a   :  { %v1305_v43 = vld [vmem:[#allocation12 + $0x2f0] sm:$0xff] }
 0x59b   :  { %4517 = vmatpush1.bf16.msra.mxu1 %v4516_v49  ;;  %v1245_v49 = vld [vmem:[#allocation12 + $0x110] sm:$0xff] }
 0x59c   :  { %4519 = vmatprep.subr.bf16.mxu1 %v4518_v58  ;;  %v1258_v58 = vld [vmem:[#allocation12 + $0x178] sm:$0xff]  ;;  %v4556_v1 = vpack.c.bf16 %v1249_v51, %v1245_v49  ;;  %v1307_v51 = vld [vmem:[#allocation12 + $0x300] sm:$0xff] }
 0x59d   :  { %v4558_v55 = vpack.c.bf16 %v1258_v58, %v1254_v52  ;;  %v1310_v49 = vld [vmem:[#allocation12 + $0x318] sm:$0xff]  ;;  %v1309_v52 = vld [vmem:[#allocation12 + $0x310] sm:$0xff] }
 0x59e   :  { %v1121_v58 = vld [vmem:[#allocation11 + $0xa] sm:$0x3] }
 0x59f   :  { %4521 = vmatpush1.bf16.msra.mxu1 %v4520_v61  ;;  %v1253_v61 = vld [vmem:[#allocation12 + $0x150] sm:$0xff] }
 0x5a0   :  { %4523 = vmatprep.subr.bf16.mxu1 %v4522_v59  ;;  %v1266_v59 = vld [vmem:[#allocation12 + $0x1b8] sm:$0xff]  ;;  %v4560_v60 = vpack.c.bf16 %v1257_v2, %v1253_v61 }
 0x5a1   :  { %v4562_v57 = vpack.c.bf16 %v1266_v59, %v1262_v56 }
 0x5a3   :  { %4525 = vmatpush1.bf16.msra.mxu1 %v4524_v3  ;;  %v1261_v3 = vld [vmem:[#allocation12 + $0x190] sm:$0xff] }
 0x5a4   :  { %4527 = vmatprep.subr.bf16.mxu1 %v4526_v6  ;;  %v1274_v6 = vld [vmem:[#allocation12 + $0x1f8] sm:$0xff]  ;;  %v4564_v7 = vpack.c.bf16 %v1265_v4, %v1261_v3 }
 0x5a5   :  { %v4566_v8 = vpack.c.bf16 %v1274_v6, %v1270_v5  ;;  %v1832_v5 = vld [vmem:[%s5968_s17] sm:$0xf]  ;;  %v5131_v6 = vmov 0   ;;  %s5134_s17 = smov 64  }
 0x5a6   :  { %4705 = vset.pattern.permute.xlu0 %v5131_v6  ;;  %4706 = vset.pattern.permute.xlu1 %v5131_v6 }
 0x5a7   :  { %4529 = vmatpush1.bf16.msra.mxu1 %v4528_v9  ;;  %v1269_v9 = vld [vmem:[#allocation12 + $0x1d0] sm:$0xff]  ;;  %1834 = vperm.xlu0 %4705, %v1832_v5  }
 0x5a8   :  { %4531 = vmatprep.subr.bf16.mxu1 %v4530_v12  ;;  %v1282_v12 = vld [vmem:[#allocation12 + $0x238] sm:$0xff]  ;;  %v4568_v13 = vpack.c.bf16 %v1273_v10, %v1269_v9  ;;  %v1665_v10 = vld [vmem:[%s5940_s9 + $0x120] sm:$0xff] }
 0x5a9   :  { %v1633_v5 = vld [vmem:[%s5940_s9 + $0x20] sm:$0xff] }
 0x655   :  { %v1062_v16 = vpop.f32.mrb[4].mxu1 }
 0x656   :  { %v1063_v17 = vadd.f32 %v1062_v16, %v986_v14  ;;  %v1064_v18 = vpop.f32.mrb[5].mxu1  ;;  %v4570_v14 = vpack.c.bf16 %v1282_v12, %v1278_v11  ;;  %v1281_v16 = vld [vmem:[#allocation12 + $0x230] sm:$0xff] }
 0x657   :  { %v1065_v21 = vadd.f32 %v1064_v18, %v990_v15  ;;  %v1277_v15 = vld [vmem:[#allocation12 + $0x210] sm:$0xff]  ;;  %v1290_v18 = vld [vmem:[#allocation12 + $0x278] sm:$0xff] }
 0x658   :  { %v1067_v26 = vmax.f32 %v1063_v17, 0.0  ;;  %v1286_v17 = vld [vmem:[#allocation12 + $0x258] sm:$0xff]  ;;  %v4572_v19 = vpack.c.bf16 %v1281_v16, %v1277_v15  ;;  %v1669_v16 = vld [vmem:[%s5940_s9 + $0x140] sm:$0xff] }
 0x659   :  { %v1068_v24 = vmax.f32 %v1065_v21, 0.0  ;;  %v4574_v20 = vpack.c.bf16 %v1290_v18, %v1286_v17  ;;  %v1285_v21 = vld [vmem:[#allocation12 + $0x250] sm:$0xff] }
 0x65a   :  { %v1666_v11 = vld [vmem:[%s5940_s9 + $0x128] sm:$0xff] }
 0x65b   :  { %3911 = vmatprep.mubr.msk.f32.mxu0 %vm428_vm4, %v1068_v24  ;;  %v1298_v24 = vld [vmem:[#allocation12 + $0x2b8] sm:$0xff]  ;;  %v4625_v12 = vpack.c.bf16 %v1666_v11, %v1665_v10  ;;  %v1636_v10 = vld [vmem:[%s5940_s9 + $0x38] sm:$0xff]  ;;  %v1653_v11 = vld [vmem:[%s5940_s9 + $0xc0] sm:$0xff] }
 0x65c   :  { %1201 = vmatmul.mubr.f32.vlgmr.msra.gmra.mrb[6].mxu0 %v1067_v26  ;;  %v4578_v26 = vpack.c.bf16 %v1298_v24, %v1294_v23  ;;  %v1670_v17 = vld [vmem:[%s5940_s9 + $0x148] sm:$0xff] }
 0x65d   :  { %4541 = vmatpush1.bf16.msra.mxu0 %v4540_v25  ;;  %v4576_v25 = vpack.c.bf16 %v1289_v22, %v1285_v21  ;;  %v4631_v18 = vpack.c.bf16 %v1670_v17, %v1669_v16  ;;  %v1673_v22 = vld [vmem:[%s5940_s9 + $0x160] sm:$0xff]  ;;  %v1674_v23 = vld [vmem:[%s5940_s9 + $0x168] sm:$0xff]  ;;  %v1655_v17 = vld [vmem:[%s5940_s9 + $0xd0] sm:$0xff] }
 0x65e   :  { %4543 = vmatprep.subr.bf16.mxu0 %v4542_v27  ;;  %v1291_v27 = vld [vmem:[#allocation12 + $0x280] sm:$0xff]  ;;  %v4637_v24 = vpack.c.bf16 %v1674_v23, %v1673_v22  ;;  %v1638_v16 = vld [vmem:[%s5940_s9 + $0x48] sm:$0xff]  ;;  %v1657_v23 = vld [vmem:[%s5940_s9 + $0xe0] sm:$0xff] }
 0x65f   :  { %v4532_v30 = vpack.c.bf16 %v1295_v28, %v1291_v27  ;;  %v1323_v27 = vsub.s32 2, %v5441_v47  ;;  %v1640_v22 = vld [vmem:[%s5940_s9 + $0x58] sm:$0xff] }
 0x661   :  { %4545 = vmatpush1.bf16.msra.mxu0 %v4544_v32  ;;  %v4580_v32 = vpack.c.bf16 %v1297_v31, %v1293_v29  ;;  %4533 = vmatpush1.bf16.msra.mxu1 %v4532_v30 }
 0x662   :  { %4547 = vmatprep.subr.bf16.mxu0 %v4546_v33  ;;  %v1300_v33 = vld [vmem:[#allocation12 + $0x2c8] sm:$0xff] }
 0x663   :  { %v4534_v36 = vpack.c.bf16 %v1304_v34, %v1300_v33 }
 0x665   :  { %4549 = vmatpush1.bf16.msra.mxu0 %v4548_v38  ;;  %v1299_v38 = vld [vmem:[#allocation12 + $0x2c0] sm:$0xff]  ;;  %4535 = vmatprep.subr.bf16.mxu1 %v4534_v36 }
 0x666   :  { %4551 = vmatprep.subr.bf16.mxu0 %v4550_v39  ;;  %v1303_v39 = vld [vmem:[#allocation12 + $0x2e0] sm:$0xff] }
 0x667   :  { %v4536_v41 = vpack.c.bf16 %v1303_v39, %v1299_v38 }
 0x669   :  { %4553 = vmatpush1.bf16.msra.mxu0 %v4552_v44  ;;  %v4584_v44 = vpack.c.bf16 %v1305_v43, %v1301_v42  ;;  %4537 = vmatpush1.bf16.msra.mxu1 %v4536_v41  ;;  %v1646_v41 = vld [vmem:[%s5940_s9 + $0x88] sm:$0xff] }
 0x66a   :  { %4555 = vmatprep.subr.bf16.mxu0 %v4554_v45  ;;  %v1308_v45 = vld [vmem:[#allocation12 + $0x308] sm:$0xff] }
 0x66b   :  { %1384 = vmatprep.subr.mxu1 %v1308_v45 }
 0x66d   :  { %4557 = vmatpush1.bf16.msra.mxu0 %v4556_v1  ;;  %1385 = vmatpush1.msra.mxu1 %v1307_v51  ;;  %v1126_v1 = vrot.slane %v1121_v58, %v5444_v48  ;;  %v1629_v51 = vld [vmem:[%s5940_s9] sm:$0xff] }
 0x66e   :  { %4559 = vmatprep.subr.bf16.mxu0 %v4558_v55  ;;  %v1130_v55 = vrot.slane %v1121_v58, %v5447_v50 }
 0x671   :  { %4561 = vmatpush1.bf16.msra.mxu0 %v4560_v60 }
 0x672   :  { %4563 = vmatprep.subr.bf16.mxu0 %v4562_v57 }
 0x675   :  { %4565 = vmatpush1.bf16.msra.mxu0 %v4564_v7  ;;  %v1663_v7 = vld [vmem:[%s5940_s9 + $0x110] sm:$0xff] }
 0x676   :  { %4567 = vmatprep.subr.bf16.mxu0 %v4566_v8  ;;  %v1664_v8 = vld [vmem:[%s5940_s9 + $0x118] sm:$0xff] }
 0x677   :  { %v4622_v9 = vpack.c.bf16 %v1664_v8, %v1663_v7 }
 0x679   :  { %4569 = vmatpush1.bf16.msra.mxu0 %v4568_v13  ;;  %v1667_v13 = vld [vmem:[%s5940_s9 + $0x130] sm:$0xff] }
 0x67a   :  { %4571 = vmatprep.subr.bf16.mxu0 %v4570_v14  ;;  %v1668_v14 = vld [vmem:[%s5940_s9 + $0x138] sm:$0xff] }
 0x67b   :  { %v4628_v15 = vpack.c.bf16 %v1668_v14, %v1667_v13 }
 0x67d   :  { %4573 = vmatpush1.bf16.msra.mxu0 %v4572_v19  ;;  %v1671_v19 = vld [vmem:[%s5940_s9 + $0x150] sm:$0xff] }
 0x67e   :  { %4575 = vmatprep.subr.bf16.mxu0 %v4574_v20  ;;  %v1672_v20 = vld [vmem:[%s5940_s9 + $0x158] sm:$0xff] }
 0x67f   :  { %v4634_v21 = vpack.c.bf16 %v1672_v20, %v1671_v19 }
 0x681   :  { %4577 = vmatpush1.bf16.msra.mxu0 %v4576_v25  ;;  %v1311_v25 = vld [vmem:[#allocation14] sm:$0xf] }
 0x682   :  { %4579 = vmatprep.subr.bf16.mxu0 %v4578_v26  ;;  %v1327_v26 = vsub.s32 3, %v5441_v47  ;;  %v1316_v28 = vrot.slane %v1311_v25, %v5444_v48  ;;  %v1320_v29 = vrot.slane %v1311_v25, %v5447_v50  ;;  %v1324_v31 = vrot.slane %v1311_v25, %v1323_v27 }
 0x684   :  { %v1328_v30 = vrot.slane %v1311_v25, %v1327_v26 }
 0x685   :  { %4581 = vmatpush1.bf16.msra.mxu0 %v4580_v32 }
 0x686   :  { %4583 = vmatprep.subr.bf16.mxu0 %v4582_v40  ;;  %v1645_v40 = vld [vmem:[%s5940_s9 + $0x80] sm:$0xff] }
 0x689   :  { %4585 = vmatpush1.bf16.msra.mxu0 %v4584_v44  ;;  %v1482_v44 = vld [vmem:[#allocation20] sm:$0xf] }
 0x68a   :  { %1455 = vmatprep.subr.mxu0 %v1310_v49  ;;  %v4586_v49 = vpack.c.bf16 %v1646_v41, %v1645_v40  ;;  %v1677_v41 = vld [vmem:[%s5940_s9 + $0x180] sm:$0xff] }
 0x68d   :  { %1456 = vmatpush1.msra.mxu0 %v1309_v52  ;;  %v1630_v52 = vld [vmem:[%s5940_s9 + $0x8] sm:$0xff] }
 0x68e   :  { %4618 = vmatprep.subr.bf16.mxu0 %v5132_v53 }
 0x72f   :  { %v1202_v61 = vpop.f32.mrb[6].mxu0 }
 0x730   :  { %v1203_v2 = vadd.f32 %v1202_v61, %v1126_v1  ;;  %v1204_v56 = vpop.f32.mrb[7].mxu0  ;;  %v1647_v1 = vld [vmem:[%s5940_s9 + $0x90] sm:$0xff]  ;;  %v4588_v61 = vpack.c.bf16 %v1630_v52, %v1629_v51  ;;  %v1839_v52 = vld [vmem:[#allocation17] sm:$0x1f] }
 0x731   :  { %v1205_v59 = vadd.f32 %v1204_v56, %v1130_v55  ;;  %v1648_v55 = vld [vmem:[%s5940_s9 + $0x98] sm:$0xff]  ;;  %v1631_v56 = vld [vmem:[%s5940_s9 + $0x10] sm:$0xff] }
 0x732   :  { %v1207_v60 = vadd.f32 %v1203_v2, %v927_v54  ;;  %v4590_v2 = vpack.c.bf16 %v1648_v55, %v1647_v1 }
 0x733   :  { %v1208_v57 = vadd.f32 %v1205_v59, %v928_v63  ;;  %v1662_v63 = vld [vmem:[%s5940_s9 + $0x108] sm:$0xff]  ;;  %v1632_v59 = vld [vmem:[%s5940_s9 + $0x18] sm:$0xff] }
 0x734   :  { %v1209_v4 = vmax.f32 %v1207_v60, 0.0  ;;  %v4619_v54 = vpack.c.bf16 %v1662_v63, %v1661_v62  ;;  %v1649_v60 = vld [vmem:[%s5940_s9 + $0xa0] sm:$0xff]  ;;  %v1634_v62 = vld [vmem:[%s5940_s9 + $0x28] sm:$0xff]  ;;  %v1651_v63 = vld [vmem:[%s5940_s9 + $0xb0] sm:$0xff] }
 0x735   :  { %v1210_v3 = vmax.f32 %v1208_v57, 0.0  ;;  %v1650_v57 = vld [vmem:[%s5940_s9 + $0xa8] sm:$0xff]  ;;  %v4596_v7 = vpack.c.bf16 %v1634_v62, %v1633_v5  ;;  %v2175_v5 = vld [vmem:[%s5947_s16] sm:$0xff] }
 0x736   :  { %v2176_v62 = vld [vmem:[%s5947_s16 + $0x8] sm:$0xff] }
 0x737   :  { %3912 = vmatprep.mubr.msk.f32.mxu1 %vm428_vm4, %v1210_v3  ;;  %3913 = vmatprep.mubr.msk.f32.mxu0 %vm428_vm4, %v1210_v3  ;;  %v4592_v3 = vpack.c.bf16 %v1632_v59, %v1631_v56  ;;  %v1929_v56 = vld [vmem:[#allocation21 + $0x20] sm:$0xff]  ;;  %v1931_v59 = vld [vmem:[#allocation21 + $0x30] sm:$0xff]  ;;  %vm2752_vm4 = vcmask 25601  }
 0x738   :  { %1401 = vmatmul.mubr.f32.vlgmr.msra.gmra.mrb[6].mxu1 %v1209_v4  ;;  %1472 = vmatmul.mubr.f32.vlgmr.msra.gmra.mrb[8].mxu0 %v1209_v4  ;;  %v4594_v4 = vpack.c.bf16 %v1650_v57, %v1649_v60  ;;  %v4647_v60 = vpack.c.bf16 %v1931_v59, %v1929_v56  ;;  %v1926_v57 = vld [vmem:[#allocation21 + $0x8] sm:$0xff] }
 0x739   :  { %1551 = vmatprep.mubr.f32.mxu1 %v5129_v0  ;;  %4620 = vmatpush1.bf16.msra.mxu0 %v4619_v54  ;;  %v1652_v54 = vld [vmem:[%s5940_s9 + $0xb8] sm:$0xff] }
 0x73a   :  { %4621 = vmatprep.subr.bf16.mxu0 %v5132_v53  ;;  %v4598_v8 = vpack.c.bf16 %v1652_v54, %v1651_v63  ;;  %v4654_v63 = vpack.c.bf16 %v2176_v62, %v2175_v5 }
 0x73d   :  { %4623 = vmatpush1.bf16.msra.mxu0 %v4622_v9  ;;  %v1635_v9 = vld [vmem:[%s5940_s9 + $0x30] sm:$0xff] }
 0x73e   :  { %4624 = vmatprep.subr.bf16.mxu0 %v5132_v53  ;;  %v4600_v13 = vpack.c.bf16 %v1636_v10, %v1635_v9  ;;  %v1925_v9 = vld [vmem:[#allocation21] sm:$0xff]  ;;  %v1927_v10 = vld [vmem:[#allocation21 + $0x10] sm:$0xff] }
 0x741   :  { %4626 = vmatpush1.bf16.msra.mxu0 %v4625_v12  ;;  %v1654_v12 = vld [vmem:[%s5940_s9 + $0xc8] sm:$0xff] }
 0x742   :  { %4627 = vmatprep.subr.bf16.mxu0 %v5132_v53  ;;  %v4602_v14 = vpack.c.bf16 %v1654_v12, %v1653_v11  ;;  %v3919_v12 = vld [vmem:[#allocation18] ss:$0 sm:$0xff] }
 0x745   :  { %4629 = vmatpush1.bf16.msra.mxu0 %v4628_v15  ;;  %v1637_v15 = vld [vmem:[%s5940_s9 + $0x40] sm:$0xff] }
 0x746   :  { %4630 = vmatprep.subr.bf16.mxu0 %v5132_v53  ;;  %v4604_v19 = vpack.c.bf16 %v1638_v16, %v1637_v15  ;;  %v4651_v16 = vpack.c.bf16 %v1927_v10, %v1925_v9 }
 0x749   :  { %4632 = vmatpush1.bf16.msra.mxu0 %v4631_v18  ;;  %v1656_v18 = vld [vmem:[%s5940_s9 + $0xd8] sm:$0xff] }
 0x74a   :  { %4633 = vmatprep.subr.bf16.mxu0 %v5132_v53  ;;  %v4606_v20 = vpack.c.bf16 %v1656_v18, %v1655_v17 }
 0x74d   :  { %4635 = vmatpush1.bf16.msra.mxu0 %v4634_v21  ;;  %v1639_v21 = vld [vmem:[%s5940_s9 + $0x50] sm:$0xff] }
 0x74e   :  { %4636 = vmatprep.subr.bf16.mxu0 %v5132_v53  ;;  %v4608_v25 = vpack.c.bf16 %v1640_v22, %v1639_v21  ;;  %v2177_v21 = vld [vmem:[%s5947_s16 + $0x10] sm:$0xff]  ;;  %v2178_v22 = vld [vmem:[%s5947_s16 + $0x18] sm:$0xff] }
 0x751   :  { %4638 = vmatpush1.bf16.msra.mxu0 %v4637_v24  ;;  %v1658_v24 = vld [vmem:[%s5940_s9 + $0xe8] sm:$0xff] }
 0x752   :  { %4639 = vmatprep.subr.bf16.mxu0 %v5132_v53 }
 0x80b   :  { %v1402_v32 = vpop.f32.mrb[6].mxu1  ;;  %v1473_v33 = vpop.f32.mrb[8].mxu0 }
 0x80c   :  { %v1403_v34 = vadd.f32 %v1402_v32, %v1316_v28  ;;  %v1404_v35 = vpop.f32.mrb[7].mxu1  ;;  %v1475_v36 = vpop.f32.mrb[9].mxu0  ;;  %v1474_v39 = vadd.f32 %v1473_v33, %v1324_v31  ;;  %v4610_v28 = vpack.c.bf16 %v1658_v24, %v1657_v23  ;;  %v1659_v31 = vld [vmem:[%s5940_s9 + $0xf0] sm:$0xff]  ;;  %v1660_v32 = vld [vmem:[%s5940_s9 + $0xf8] sm:$0xff]  ;;  %v4657_v23 = vpack.c.bf16 %v2178_v22, %v2177_v21  ;;  %v2081_v24 = vld [vmem:[#allocation23] sm:$0x3] }
 0x80d   :  { %v1405_v37 = vadd.f32 %v1404_v35, %v1320_v29  ;;  %v1476_v38 = vadd.f32 %v1475_v36, %v1328_v30  ;;  %v1641_v29 = vld [vmem:[%s5940_s9 + $0x60] sm:$0xff]  ;;  %v1642_v30 = vld [vmem:[%s5940_s9 + $0x68] sm:$0xff]  ;;  %v1643_v35 = vld [vmem:[%s5940_s9 + $0x70] sm:$0xff] }
 0x80e   :  { %v1478_v43 = vmax.f32 %v1403_v34, 0.0  ;;  %v1480_v58 = vmax.f32 %v1474_v39, 0.0  ;;  %v4612_v33 = vpack.c.bf16 %v1642_v30, %v1641_v29  ;;  %v4614_v34 = vpack.c.bf16 %v1660_v32, %v1659_v31  ;;  %v1644_v36 = vld [vmem:[%s5940_s9 + $0x78] sm:$0xff] }
 0x80f   :  { %v1479_v42 = vmax.f32 %v1405_v37, 0.0  ;;  %v1481_v45 = vmax.f32 %v1476_v38, 0.0  ;;  %v4616_v37 = vpack.c.bf16 %v1644_v36, %v1643_v35  ;;  %v1675_v38 = vld [vmem:[%s5940_s9 + $0x170] sm:$0xff]  ;;  %v1676_v39 = vld [vmem:[%s5940_s9 + $0x178] sm:$0xff] }
 0x810   :  { %v4640_v40 = vpack.c.bf16 %v1676_v39, %v1675_v38  ;;  %v5741_v38 = vld [vmem:[#allocation3] sm:$0xf] }
 0x811   :  { %1487 = vmatprep.subr.mxu1 %v1479_v42  ;;  %v1678_v42 = vld [vmem:[%s5940_s9 + $0x188] sm:$0xff]  ;;  %vm2413_vm12 = vcmp.gt.f32.partialorder %v5741_v38, 0.5 }
 0x812   :  { %1488 = vmatpush1.msra.mxu1 %v1478_v43  ;;  %4641 = vmatpush1.bf16.msra.mxu0 %v4640_v40  ;;  %v4643_v43 = vpack.c.bf16 %v1678_v42, %v1677_v41  ;;  %v2414_v39 = vsel %vm2413_vm12, 1, %v5131_v6  ;;  %vm3773_vm12 = vcmask 257027  }
 0x813   :  { %3914 = vmatmul.mubr.msk.f32.vlgmr.msra.gmra.mrb[8].mxu1 %vm1483_vm5, %v1482_v44  ;;  %1558 = vmatprep.subr.mxu1 %v1481_v45  ;;  %v1835_v45 = vpop.permute.xlu0 %1834  ;;  %v2418_v40 = vrot.slane %v2414_v39, %v5444_v48  ;;  %v2766_v41 = vrot.slane %v2414_v39, %v5447_v50  ;;  %v3105_v42 = vrot.slane %v2414_v39, %v1323_v27 }
 0x814   :  { %1559 = vmatpush1.msra.mxu1 %v1480_v58  ;;  %1622 = vmatprep.mubr.f32.mxu1 %v5129_v0 }
 0x815   :  { %4587 = vmatprep.subr.bf16.mxu1 %v4586_v49  ;;  %4642 = vmatprep.subr.bf16.mxu0 %v5132_v53  ;;  %vm2419_vm13 = vcmp.eq.s32.totalorder %v2418_v40, 1  ;;  %vm2767_vm14 = vcmp.eq.s32.totalorder %v2766_v41, 1  ;;  %vm3106_vm0 = vcmp.eq.s32.totalorder %v3105_v42, 1 }
 0x816   :  { %4644 = vmatpush1.bf16.msra.mxu0 %v4643_v43  ;;  %v3444_v43 = vrot.slane %v2414_v39, %v1327_v26 }
 0x817   :  { %3915 = vmatmul.mubr.msk.f32.vlgmr.msra.gmra.mrb[10].mxu1 %vm1483_vm5, %v1482_v44  ;;  %4653 = vmatprep.subr.bf16.mxu0 %v5132_v53  ;;  %v1831_v44 = vand.u32 127, %v272_v46  ;;  %v1930_v46 = vld [vmem:[#allocation21 + $0x28] sm:$0xff]  ;;  %vm3097_vm5 = vcmask 26626  }
 0x818   :  { %4589 = vmatpush3.bf16.msra.mxu1 %v4588_v61  ;;  %v1932_v61 = vld [vmem:[#allocation21 + $0x38] sm:$0xff]  ;;  %vm3445_vm1 = vcmp.eq.s32.totalorder %v3444_v43, 1 }
 0x819   :  { %4591 = vmatprep.subr.bf16.mxu1 %v4590_v2  ;;  %vm1836_vm6 = vcmp.eq.s32.totalorder %v1831_v44, %v1835_v45  ;;  %v4645_v2 = vpack.c.bf16 %v1932_v61, %v1930_v46 }
 0x81a   :  { %v3918_v58 = vsel %vm1836_vm6, 1.0, %v5129_v0  ;;  %vm3436_vm6 = vcmask 27651  }
 0x81c   :  { %4593 = vmatpush3.bf16.msra.mxu1 %v4592_v3  ;;  %v1928_v3 = vld [vmem:[#allocation21 + $0x18] sm:$0xff] }
 0x81d   :  { %4595 = vmatprep.subr.bf16.mxu1 %v4594_v4  ;;  %v4649_v4 = vpack.c.bf16 %v1928_v3, %v1926_v57 }
 0x820   :  { %4597 = vmatpush3.bf16.msra.mxu1 %v4596_v7 }
 0x821   :  { %4599 = vmatprep.subr.bf16.mxu1 %v4598_v8  ;;  %v3916_v8 = vld [vmem:[#allocation15] ss:$0 sm:$0xff] }
 0x824   :  { %4601 = vmatpush3.bf16.msra.mxu1 %v4600_v13 }
 0x825   :  { %4603 = vmatprep.subr.bf16.mxu1 %v4602_v14 }
 0x828   :  { %4605 = vmatpush3.bf16.msra.mxu1 %v4604_v19 }
 0x829   :  { %4607 = vmatprep.subr.bf16.mxu1 %v4606_v20 }
 0x82c   :  { %4609 = vmatpush3.bf16.msra.mxu1 %v4608_v25  ;;  %v2086_v25 = vrot.slane %v2081_v24, %v5444_v48 }
 0x82d   :  { %4611 = vmatprep.subr.bf16.mxu1 %v4610_v28  ;;  %v2090_v28 = vrot.slane %v2081_v24, %v5447_v50 }
 0x830   :  { %4613 = vmatpush3.bf16.msra.mxu1 %v4612_v33 }
 0x831   :  { %4615 = vmatprep.subr.bf16.mxu1 %v4614_v34 }
 0x834   :  { %4617 = vmatpush3.bf16.msra.mxu1 %v4616_v37 }
 0x835   :  { %4052 = vmatprep.subr.mxu1 %v5129_v0 }
 0x8e6   :  { %v1553_v49 = vpop.f32.mrb[8].mxu1 }
 0x8e7   :  { %v1555_v51 = vpop.f32.mrb[9].mxu1 }
 0x8e8   :  { %1754 = vmatprep.mubr.f32.mxu1 %v1555_v51 }
 0x8e9   :  { %1755 = vmatmul.mubr.f32.vlgmr.msra.gmra.mrb[12].mxu1 %v1553_v49 }
 0x8ea   :  { %v1624_v1 = vpop.f32.mrb[10].mxu1  ;;  %4053 = vmatpush3.msk.msra.mxu1 %vm1851_vm7, %v1839_v52  ;;  %4054 = vmatprep.mubr.msk.f32.mxu1 %vm5133_vm9, %v5129_v0  ;;  %vm2408_vm7 = vcmask 24576  }
 0x8eb   :  { %v1626_v55 = vpop.f32.mrb[11].mxu1  ;;  %4646 = vmatprep.subr.bf16.mxu1 %v4645_v2 }
 0x8ec   :  { %3917 = vmatprep.mubr.msk.f32.mxu0 %vm1686_vm8, %v1626_v55 }
 0x8ed   :  { %4055 = vmatmul.mubr.msk.f32.vlgmr.msra.gmra.mrb[14].mxu1 %vm1847_vm10, %v3918_v58  ;;  %1825 = vmatmul.mubr.f32.vlgmr.msra.gmra.mrb[10].mxu0 %v1624_v1  ;;  %vm3434_vm10 = vcmask 256002  }
 0x8ee   :  { %2000 = vmatprep.mubr.f32.mxu1 %v5129_v0  ;;  %4070 = vmatprep.mubr.msk.f32.mxu0 %vm5133_vm9, %v5129_v0 }
 0x8ef   :  { %4648 = vmatpush1.bf16.msra.mxu1 %v4647_v60  ;;  %4655 = vmatpush3.bf16.msra.mxu0 %v4654_v63 }
 0x8f0   :  { %4650 = vmatprep.subr.bf16.mxu1 %v4649_v4  ;;  %4656 = vmatprep.subr.bf16.mxu0 %v5132_v53 }
 0x8f3   :  { %4658 = vmatpush3.bf16.msra.mxu0 %v4657_v23 }
 0x8f4   :  { %4089 = vmatprep.subr.mxu0 %v5129_v0 }
 0x9bc   :  { %v3996_v54 = vpop.f32.mrb[12].mxu1 }
 0x9bd   :  { %v3997_v7 = vpop.f32.mrb[13].mxu1 }
 0x9be   :  { %v3998_v11 = vadd.f32 %v3997_v7, %v3996_v54 }
 0x9c0   :  { %v1921_v13 = vpop.f32.mrb[14].mxu1  ;;  %v1757_v14 = vadd.f32 %v3998_v11, %v3916_v8  ;;  %v1826_v15 = vpop.f32.mrb[10].mxu0 }
 0x9c1   :  { %v1922_v17 = vadd.f32 %v3919_v12, %v1921_v13  ;;  %v4056_v18 = vpop.f32.mrb[15].mxu1  ;;  %v1828_v19 = vpop.f32.mrb[11].mxu0 }
 0x9c2   :  { %v1827_v20 = vadd.f32 %v1826_v15, %v1757_v14 }
 0x9c3   :  { %3922 = vmatmul.mubr.msk.f32.vlgmr.msra.gmra.mrb[16].mxu1 %vm1686_vm8, %v1922_v17 }
 0x9c4   :  { %4652 = vmatpush1.bf16.msra.mxu1 %v4651_v16  ;;  %2074 = vmatprep.mubr.f32.mxu1 %v5129_v0 }
 0x9c5   :  { %4057 = vmatprep.subr.mxu1 %v5129_v0 }
 0x9cb   :  { %3923 = vmatmul.mubr.msk.f32.vlgmr.msra.gmra.mrb[16].mxu1 %vm1686_vm8, %v1827_v20  ;;  %vm2750_vm8 = vcmask 253952  }
 0x9cc   :  { %4059 = vmatprep.mubr.msk.f32.mxu1 %vm5133_vm9, %v5129_v0 }
 0xa9e   :  { %v2076_v29 = vpop.f32.mrb[16].mxu1 }
 0xa9f   :  { %v2093_v30 = vadd.f32 %v2086_v25, %v2076_v29  ;;  %v2078_v31 = vpop.f32.mrb[17].mxu1 }
 0xaa0   :  { %v5721_v32 = vadd.f32 %v2090_v28, %v2078_v31 }
 0xaa1   :  { %2254 = vrot.lane.b32.xlu1 %v2093_v30, %s5115_s23  ;;  %2098 = vrot.lane.b32.xlu0 %v2093_v30, %s5134_s17 }
 0xaa2   :  { %4071 = vmatmul.mubr.msk.f32.vlgmr.msra.gmra.mrb[12].mxu0 %vm2100_vm11, %v5721_v32 }
 0xaa3   :  { %4091 = vmatprep.mubr.msk.f32.mxu0 %vm5133_vm9, %v5129_v0 }
 0xaa5   :  { %2252 = vrot.lane.b32.xlu1 %v2093_v30, %s5135_s5 }
 0xb13   :  { %v2099_v33 = vpop.permute.xlu0 %2098  ;;  %v2255_v34 = vpop.permute.xlu1 %2254 }
 0xb14   :  { %4058 = vmatpush3.xpose.msk.msra.mxu1 %vm2100_vm11, %v2099_v33 }
 0xb15   :  { %4073 = vmatprep.subr.mxu1 %v5129_v0 }
 0xb17   :  { %4060 = vmatmul.mubr.msk.f32.vlgmr.msra.gmra.mrb[18].mxu1 %vm2100_vm11, %v2093_v30  ;;  %v2253_v35 = vpop.permute.xlu1 %2252 }
 0xb18   :  { %4074 = vmatpush3.xpose.msk.msra.mxu1 %vm2100_vm11, %v2255_v34  ;;  %4075 = vmatprep.mubr.msk.f32.mxu1 %vm5133_vm9, %v5129_v0 }
 0xb19   :  { %4659 = vmatprep.subr.bf16.mxu1 %v5132_v53 }
 0xb1b   :  { %4076 = vmatmul.mubr.msk.f32.vlgmr.msra.gmra.mrb[20].mxu1 %vm2100_vm11, %v2253_v35 }
 0xb1c   :  { %4086 = vmatprep.mubr.msk.f32.mxu1 %vm5133_vm9, %v5129_v0 }
 0xb75   :  { %v5739_v36 = vpop.f32.mrb[12].mxu0 }
 0xb76   :  { %v4072_v37 = vpop.f32.mrb[13].mxu0 }
 0xbea   :  { %v2171_v44 = vpop.f32.mrb[18].mxu1 }
 0xbeb   :  { %v4061_v45 = vpop.f32.mrb[19].mxu1  ;;  %v2420_v49 = vsel %vm2419_vm13, %v2171_v44, -1e+30  ;;  %v2768_v51 = vsel %vm2767_vm14, %v2171_v44, -1e+30 }
 0xbec   :  { %v2422_v6 = vsel %vm2421_vm15, %v2420_v49, -inf  ;;  %v3107_v52 = vsel %vm3106_vm0, %v2171_v44, -1e+30  ;;  %v3446_v50 = vsel %vm3445_vm1, %v2171_v44, -1e+30  ;;  %v2769_v1 = vsel %vm2421_vm15, %v2768_v51, -inf }
 0xbed   :  { %2423 = vmax.xlane.f32.xlu0 %v2422_v6  ;;  %v3108_v56 = vsel %vm2421_vm15, %v3107_v52, -inf  ;;  %v3447_v60 = vsel %vm2421_vm15, %v3446_v50, -inf }
 0xbee   :  { %v2326_v27 = vpop.f32.mrb[20].mxu1 }
 0xbef   :  { %v4077_v58 = vpop.f32.mrb[21].mxu1  ;;  %v2588_v47 = vsel %vm2419_vm13, %v2326_v27, -1e+30  ;;  %v2933_v26 = vsel %vm2767_vm14, %v2326_v27, -1e+30  ;;  %vm3869_vm13 = vcmask 35840  }
 0xbf0   :  { %v2589_v55 = vsel %vm2421_vm15, %v2588_v47, -inf  ;;  %v3272_v46 = vsel %vm3106_vm0, %v2326_v27, -1e+30  ;;  %v3611_v61 = vsel %vm3445_vm1, %v2326_v27, -1e+30  ;;  %v2934_v2 = vsel %vm2421_vm15, %v2933_v26, -inf }
 0xbf1   :  { %2770 = vmax.xlane.f32.xlu0 %v2769_v1  ;;  %2590 = vmax.xlane.f32.xlu1 %v2589_v55  ;;  %v3273_v59 = vsel %vm2421_vm15, %v3272_v46, -inf  ;;  %v3612_v57 = vsel %vm2421_vm15, %v3611_v61, -inf }
 0xbf5   :  { %2935 = vmax.xlane.f32.xlu0 %v2934_v2  ;;  %3109 = vmax.xlane.f32.xlu1 %v3108_v56 }
 0xbf9   :  { %3274 = vmax.xlane.f32.xlu0 %v3273_v59  ;;  %3448 = vmax.xlane.f32.xlu1 %v3447_v60 }
 0xbfd   :  { %3613 = vmax.xlane.f32.xlu0 %v3612_v57 }
 0xc7a   :  { %v2424_v3 = vpop.xlane.xlu0 %2423 }
 0xc7b   :  { %v2425_v4 = vsub.f32 %v2420_v49, %v2424_v3  ;;  %v2330_v49 = vld [vmem:[%s5947_s16 + $0x20] sm:$0xff] }
 0xc7d   :  { %v2426_v5 = vmul.f32 1.442695, %v2425_v4 }
 0xc7e   :  { %v2771_v62 = vpop.xlane.xlu0 %2770  ;;  %v2591_v63 = vpop.xlane.xlu1 %2590 }
 0xc7f   :  { %4707 = vpow2.f32 %v2426_v5  ;;  %v2772_v54 = vsub.f32 %v2768_v51, %v2771_v62  ;;  %v2592_v7 = vsub.f32 %v2588_v47, %v2591_v63  ;;  %v2331_v51 = vld [vmem:[%s5947_s16 + $0x28] sm:$0xff]  ;;  %v2780_v5 = vrot.slane %v5741_v38, 1 }
 0xc80   :  { %v4660_v6 = vpack.c.bf16 %v2331_v51, %v2330_v49 }
 0xc81   :  { %v2773_v8 = vmul.f32 1.442695, %v2772_v54  ;;  %v2593_v9 = vmul.f32 1.442695, %v2592_v7 }
 0xc82   :  { %v2936_v10 = vpop.xlane.xlu0 %2935  ;;  %v3110_v11 = vpop.xlane.xlu1 %3109  ;;  %4661 = vmatpush3.bf16.msra.mxu1 %v4660_v6 }
 0xc83   :  { %4709 = vpow2.f32 %v2773_v8  ;;  %v2937_v12 = vsub.f32 %v2933_v26, %v2936_v10  ;;  %v3111_v13 = vsub.f32 %v3107_v52, %v3110_v11  ;;  %4662 = vmatprep.subr.bf16.mxu1 %v5132_v53  ;;  %v2332_v52 = vld [vmem:[%s5947_s16 + $0x30] sm:$0xff] }
 0xc84   :  { %4711 = vpow2.f32 %v2593_v9  ;;  %v3119_v9 = vrot.slane %v5741_v38, 2 }
 0xc85   :  { %v2938_v14 = vmul.f32 1.442695, %v2937_v12  ;;  %v3112_v15 = vmul.f32 1.442695, %v3111_v13 }
 0xc86   :  { %v3275_v16 = vpop.xlane.xlu0 %3274  ;;  %v3449_v17 = vpop.xlane.xlu1 %3448 }
 0xc87   :  { %4713 = vpow2.f32 %v2938_v14  ;;  %v3276_v18 = vsub.f32 %v3272_v46, %v3275_v16  ;;  %v3450_v19 = vsub.f32 %v3446_v50, %v3449_v17  ;;  %v2333_v50 = vld [vmem:[%s5947_s16 + $0x38] sm:$0xff]  ;;  %v3458_v14 = vrot.slane %v5741_v38, 3 }
 0xc88   :  { %4715 = vpow2.f32 %v3112_v15  ;;  %v4663_v27 = vpack.c.bf16 %v2333_v50, %v2332_v52  ;;  %v2753_v16 = vsel %vm2752_vm4, %v5741_v38, 0.0  ;;  %v3098_v17 = vsel %vm3097_vm5, %v5741_v38, 0.0  ;;  %v2096_v52 = vld [vmem:[#allocation24] sm:$0x1] }
 0xc89   :  { %v4708_v20 = vpop.eup %4707  ;;  %v3277_v21 = vmul.f32 1.442695, %v3276_v18  ;;  %v3451_v22 = vmul.f32 1.442695, %v3450_v19  ;;  %v3437_v18 = vsel %vm3436_vm6, %v5741_v38, 0.0  ;;  %v2409_v19 = vsel %vm2408_vm7, %v5741_v38, 0.0 }
 0xc8a   :  { %v3614_v23 = vpop.xlane.xlu0 %3613  ;;  %v2428_v24 = vsel %vm2421_vm15, %v4708_v20, 0.0  ;;  %4664 = vmatpush3.bf16.msra.mxu1 %v4663_v27 }
 0xc8b   :  { %4717 = vpow2.f32 %v3277_v21  ;;  %v3615_v25 = vsub.f32 %v3611_v61, %v3614_v23  ;;  %2429 = vadd.xlane.f32.xlu1 %v2428_v24  ;;  %4099 = vmatprep.subr.mxu1 %v5129_v0 }
 0xc8c   :  { %4719 = vpow2.f32 %v3451_v22 }
 0xc8d   :  { %v5764_v28 = vpop.eup %4709  ;;  %v3616_v29 = vmul.f32 1.442695, %v3615_v25 }
 0xc8e   :  { %v4712_v30 = vpop.eup %4711  ;;  %v2775_v31 = vsel %vm2421_vm15, %v5764_v28, 0.0 }
 0xc8f   :  { %4721 = vpow2.f32 %v3616_v29  ;;  %2776 = vadd.xlane.f32.xlu1 %v2775_v31  ;;  %v2595_v33 = vsel %vm2421_vm15, %v4712_v30, 0.0 }
 0xc90   :  { %2596 = vadd.xlane.f32.xlu0 %v2595_v33 }
 0xc91   :  { %v5769_v34 = vpop.eup %4713 }
 0xc92   :  { %v5771_v35 = vpop.eup %4715  ;;  %v2940_v37 = vsel %vm2421_vm15, %v5769_v34, 0.0 }
 0xc93   :  { %v3114_v39 = vsel %vm2421_vm15, %v5771_v35, 0.0 }
 0xc94   :  { %2941 = vadd.xlane.f32.xlu0 %v2940_v37  ;;  %3115 = vadd.xlane.f32.xlu1 %v3114_v39 }
 0xc95   :  { %v5777_v40 = vpop.eup %4717 }
 0xc96   :  { %v5779_v41 = vpop.eup %4719  ;;  %v3279_v42 = vsel %vm2421_vm15, %v5777_v40, 0.0 }
 0xc97   :  { %v3453_v43 = vsel %vm2421_vm15, %v5779_v41, 0.0 }
 0xc98   :  { %3280 = vadd.xlane.f32.xlu0 %v3279_v42  ;;  %3454 = vadd.xlane.f32.xlu1 %v3453_v43  ;;  %v3777_v42 = vld [vmem:[%s5949_s18 + $0x8] sm:$0xff]  ;;  %v3778_v43 = vld [vmem:[%s5949_s18 + $0x10] sm:$0xff] }
 0xc99   :  { %v5785_v44 = vpop.eup %4721 }
 0xc9a   :  { %v3618_v45 = vsel %vm2421_vm15, %v5785_v44, 0.0 }
 0xc9c   :  { %3619 = vadd.xlane.f32.xlu1 %v3618_v45 }
 0xca0   :  { %2754 = vadd.xlane.f32.xlu1 %v2753_v16 }
 0xca4   :  { %3099 = vadd.xlane.f32.xlu1 %v3098_v17 }
 0xca8   :  { %3438 = vadd.xlane.f32.xlu1 %v3437_v18  ;;  %v3962_v18 = vld [vmem:[#allocation26] ss:$0 sm:$0xff] }
 0xcac   :  { %2410 = vadd.xlane.f32.xlu1 %v2409_v19 }
 0xcae   :  { %2334 = vrot.lane.b32.xlu0 %v5721_v32, %s5135_s5 }
 0xd18   :  { %v2430_v58 = vpop.xlane.xlu1 %2429 }
 0xd19   :  { %4723 = vrcp.f32 %v2430_v58 }
 0xd1c   :  { %v2777_v26 = vpop.xlane.xlu1 %2776 }
 0xd1d   :  { %v2597_v47 = vpop.xlane.xlu0 %2596 }
 0xd1e   :  { %4725 = vrcp.f32 %v2597_v47  ;;  %v2760_v47 = vrot.slane %v2096_v52, %v5444_v48 }
 0xd1f   :  { %4727 = vrcp.f32 %v2777_v26 }
 0xd21   :  { %v2942_v1 = vpop.xlane.xlu0 %2941  ;;  %v3116_v61 = vpop.xlane.xlu1 %3115 }
 0xd22   :  { %4729 = vrcp.f32 %v2942_v1 }
 0xd23   :  { %v4724_v55 = vpop.eup %4723  ;;  %4731 = vrcp.f32 %v3116_v61 }
 0xd24   :  { %v2432_v46 = vmul.f32 %v4724_v55, %v4708_v20 }
 0xd25   :  { %v3281_v2 = vpop.xlane.xlu0 %3280  ;;  %v3455_v57 = vpop.xlane.xlu1 %3454 }
 0xd26   :  { %4090 = vmatpush3.msk.msra.mxu0 %vm2437_vm2, %v2432_v46  ;;  %4733 = vrcp.f32 %v3281_v2 }
 0xd27   :  { %4092 = vmatmul.mubr.msk.f32.vlgmr.msra.gmra.mrb[14].mxu0 %vm2433_vm3, %v5741_v38  ;;  %4094 = vmatprep.subr.mxu0 %v5129_v0  ;;  %4735 = vrcp.f32 %v3455_v57 }
 0xd28   :  { %v4726_v32 = vpop.eup %4725  ;;  %4095 = vmatpush3.msk.msra.mxu0 %vm2437_vm2, %v5739_v36  ;;  %4096 = vmatprep.mubr.msk.f32.mxu0 %vm5133_vm9, %v5129_v0 }
 0xd29   :  { %v2599_v56 = vmul.f32 %v4726_v32, %v4712_v30  ;;  %v2335_v59 = vpop.permute.xlu0 %2334  ;;  %4104 = vmatprep.subr.mxu0 %v5129_v0  ;;  %v4728_v60 = vpop.eup %4727 }
 0xd2a   :  { %4087 = vmatmul.mubr.msk.f32.vlgmr.msra.gmra.mrb[22].mxu1 %vm2100_vm11, %v2335_v59  ;;  %v2779_v3 = vmul.f32 %v4728_v60, %v5764_v28  ;;  %v3620_v63 = vpop.xlane.xlu1 %3619 }
 0xd2b   :  { %4100 = vmatpush3.msk.msra.mxu1 %vm2437_vm2, %v2599_v56  ;;  %4101 = vmatprep.mubr.msk.f32.mxu1 %vm5133_vm9, %v5129_v0  ;;  %4737 = vrcp.f32 %v3620_v63 }
 0xd2c   :  { %4109 = vmatprep.subr.mxu1 %v5129_v0  ;;  %v4730_v4 = vpop.eup %4729 }
 0xd2d   :  { %v2944_v62 = vmul.f32 %v4730_v4, %v5769_v34  ;;  %v4732_v54 = vpop.eup %4731 }
 0xd2e   :  { %4102 = vmatmul.mubr.msk.f32.vlgmr.msra.gmra.mrb[24].mxu1 %vm2433_vm3, %v5741_v38  ;;  %v3118_v7 = vmul.f32 %v4732_v54, %v5771_v35  ;;  %v2755_v49 = vpop.xlane.xlu1 %2754 }
 0xd2f   :  { %4110 = vmatpush3.msk.msra.mxu1 %vm2437_vm2, %v2779_v3  ;;  %4111 = vmatprep.mubr.msk.f32.mxu1 %vm5133_vm9, %v5129_v0  ;;  %v2762_v46 = vmul.f32 %v2760_v47, %v2755_v49 }
 0xd30   :  { %4119 = vmatprep.subr.mxu1 %v5129_v0  ;;  %v4734_v8 = vpop.eup %4733 }
 0xd31   :  { %v3283_v10 = vmul.f32 %v4734_v8, %v5777_v40  ;;  %v4736_v11 = vpop.eup %4735 }
 0xd32   :  { %4112 = vmatmul.mubr.msk.f32.vlgmr.msra.gmra.mrb[26].mxu1 %vm2433_vm3, %v2780_v5  ;;  %v3457_v12 = vmul.f32 %v4736_v11, %v5779_v41  ;;  %v3100_v51 = vpop.xlane.xlu1 %3099 }
 0xd33   :  { %4120 = vmatpush3.msk.msra.mxu1 %vm2437_vm2, %v2944_v62  ;;  %4121 = vmatprep.mubr.msk.f32.mxu1 %vm5133_vm9, %v5129_v0  ;;  %v3101_v3 = vmul.f32 %v3100_v51, %v2760_v47 }
 0xd34   :  { %4129 = vmatprep.subr.mxu1 %v5129_v0 }
 0xd35   :  { %v4738_v13 = vpop.eup %4737 }
 0xd36   :  { %4122 = vmatmul.mubr.msk.f32.vlgmr.msra.gmra.mrb[28].mxu1 %vm2433_vm3, %v2780_v5  ;;  %v3622_v15 = vmul.f32 %v4738_v13, %v5785_v44  ;;  %v3439_v6 = vpop.xlane.xlu1 %3438 }
 0xd37   :  { %4130 = vmatpush3.msk.msra.mxu1 %vm2437_vm2, %v3118_v7  ;;  %4131 = vmatprep.mubr.msk.f32.mxu1 %vm5133_vm9, %v5129_v0 }
 0xd38   :  { %4139 = vmatprep.subr.mxu1 %v5129_v0 }
 0xd3a   :  { %4132 = vmatmul.mubr.msk.f32.vlgmr.msra.gmra.mrb[30].mxu1 %vm2433_vm3, %v3119_v9  ;;  %v2411_v50 = vpop.xlane.xlu1 %2410 }
 0xd3b   :  { %4140 = vmatpush3.msk.msra.mxu1 %vm2437_vm2, %v3283_v10  ;;  %4141 = vmatprep.mubr.msk.f32.mxu1 %vm5133_vm9, %v5129_v0  ;;  %v2412_v27 = vmul.f32 %v2411_v50, %v2096_v52 }
 0xd3c   :  { %4149 = vmatprep.subr.mxu1 %v5129_v0 }
 0xd3e   :  { %4142 = vmatmul.mubr.msk.f32.vlgmr.msra.gmra.mrb[32].mxu1 %vm2433_vm3, %v3119_v9  ;;  %v3440_v9 = vmul.f32 %v3439_v6, %v2760_v47 }
 0xd3f   :  { %4150 = vmatpush3.msk.msra.mxu1 %vm2437_vm2, %v3457_v12  ;;  %4151 = vmatprep.mubr.msk.f32.mxu1 %vm5133_vm9, %v5129_v0 }
 0xd40   :  { %4159 = vmatprep.subr.mxu1 %v5129_v0 }
 0xd42   :  { %4152 = vmatmul.mubr.msk.f32.vlgmr.msra.gmra.mrb[34].mxu1 %vm2433_vm3, %v3458_v14 }
 0xd43   :  { %4160 = vmatpush3.msk.msra.mxu1 %vm2437_vm2, %v3622_v15  ;;  %4161 = vmatprep.mubr.msk.f32.mxu1 %vm5133_vm9, %v5129_v0 }
 0xd44   :  { %4665 = vmatprep.subr.bf16.mxu1 %v5132_v53 }
 0xd46   :  { %4162 = vmatmul.mubr.msk.f32.vlgmr.msra.gmra.mrb[36].mxu1 %vm2433_vm3, %v3458_v14 }
 0xd47   :  { %4177 = vmatprep.mubr.msk.f32.mxu1 %vm5133_vm9, %v5129_v0 }
 0xdfa   :  { %v2507_v20 = vpop.f32.mrb[14].mxu0 }
 0xdfb   :  { %4097 = vmatmul.mubr.msk.f32.vlgmr.msra.gmra.mrb[16].mxu0 %vm2433_vm3, %v2507_v20  ;;  %v4093_v21 = vpop.f32.mrb[15].mxu0 }
 0xdfc   :  { %4106 = vmatprep.mubr.msk.f32.mxu0 %vm5133_vm9, %v5129_v0 }
 0xdfd   :  { %v2404_v22 = vpop.f32.mrb[22].mxu1 }
 0xdfe   :  { %v4088_v23 = vpop.f32.mrb[23].mxu1  ;;  %4105 = vmatpush3.msk.msra.mxu0 %vm2437_vm2, %v2404_v22 }
 0xdff   :  { %4114 = vmatprep.subr.mxu0 %v5129_v0 }
 0xe01   :  { %v2669_v24 = vpop.f32.mrb[24].mxu1 }
 0xe02   :  { %v4103_v25 = vpop.f32.mrb[25].mxu1 }
 0xe03   :  { %4107 = vmatmul.mubr.msk.f32.vlgmr.msra.gmra.mrb[16].mxu0 %vm2433_vm3, %v2669_v24 }
 0xe04   :  { %4115 = vmatpush3.msk.msra.mxu0 %vm2437_vm2, %v5739_v36  ;;  %4116 = vmatprep.mubr.msk.f32.mxu0 %vm5133_vm9, %v5129_v0 }
 0xe05   :  { %v2852_v38 = vpop.f32.mrb[26].mxu1  ;;  %4124 = vmatprep.subr.mxu0 %v5129_v0 }
 0xe06   :  { %v4113_v28 = vpop.f32.mrb[27].mxu1 }
 0xe07   :  { %4117 = vmatmul.mubr.msk.f32.vlgmr.msra.gmra.mrb[18].mxu0 %vm2433_vm3, %v2852_v38 }
 0xe08   :  { %4125 = vmatpush3.msk.msra.mxu0 %vm2437_vm2, %v2404_v22  ;;  %4126 = vmatprep.mubr.msk.f32.mxu0 %vm5133_vm9, %v5129_v0 }
 0xe09   :  { %v3014_v29 = vpop.f32.mrb[28].mxu1  ;;  %4134 = vmatprep.subr.mxu0 %v5129_v0 }
 0xe0a   :  { %v4123_v30 = vpop.f32.mrb[29].mxu1 }
 0xe0b   :  { %4127 = vmatmul.mubr.msk.f32.vlgmr.msra.gmra.mrb[20].mxu0 %vm2433_vm3, %v3014_v29 }
 0xe0c   :  { %4135 = vmatpush3.msk.msra.mxu0 %vm2437_vm2, %v5739_v36  ;;  %4136 = vmatprep.mubr.msk.f32.mxu0 %vm5133_vm9, %v5129_v0 }
 0xe0d   :  { %v3191_v31 = vpop.f32.mrb[30].mxu1  ;;  %4144 = vmatprep.subr.mxu0 %v5129_v0 }
 0xe0e   :  { %v4133_v33 = vpop.f32.mrb[31].mxu1 }
 0xe0f   :  { %4137 = vmatmul.mubr.msk.f32.vlgmr.msra.gmra.mrb[22].mxu0 %vm2433_vm3, %v3191_v31 }
 0xe10   :  { %4145 = vmatpush3.msk.msra.mxu0 %vm2437_vm2, %v2404_v22  ;;  %4146 = vmatprep.mubr.msk.f32.mxu0 %vm5133_vm9, %v5129_v0 }
 0xe11   :  { %v3353_v34 = vpop.f32.mrb[32].mxu1  ;;  %4154 = vmatprep.subr.mxu0 %v5129_v0 }
 0xe12   :  { %v4143_v35 = vpop.f32.mrb[33].mxu1 }
 0xe13   :  { %4147 = vmatmul.mubr.msk.f32.vlgmr.msra.gmra.mrb[24].mxu0 %vm2433_vm3, %v3353_v34 }
 0xe14   :  { %4155 = vmatpush3.msk.msra.mxu0 %vm2437_vm2, %v5739_v36  ;;  %4156 = vmatprep.mubr.msk.f32.mxu0 %vm5133_vm9, %v5129_v0  ;;  %v3776_v36 = vld [vmem:[%s5949_s18] sm:$0xff] }
 0xe15   :  { %v3530_v37 = vpop.f32.mrb[34].mxu1  ;;  %4164 = vmatprep.subr.mxu0 %v5129_v0  ;;  %v4666_v44 = vpack.c.bf16 %v3777_v42, %v3776_v36 }
 0xe16   :  { %v4153_v39 = vpop.f32.mrb[35].mxu1 }
 0xe17   :  { %4157 = vmatmul.mubr.msk.f32.vlgmr.msra.gmra.mrb[26].mxu0 %vm2433_vm3, %v3530_v37  ;;  %4667 = vmatpush3.bf16.msra.mxu1 %v4666_v44 }
 0xe18   :  { %4165 = vmatpush3.msk.msra.mxu0 %vm2437_vm2, %v2404_v22  ;;  %4166 = vmatprep.mubr.msk.f32.mxu0 %vm5133_vm9, %v5129_v0  ;;  %v3779_v0 = vld [vmem:[%s5949_s18 + $0x18] sm:$0xff]  ;;  %vm3095_vm9 = vcmask 254977   ;;  %s5136_s18 = smov 127  }
 0xe19   :  { %v3692_v40 = vpop.f32.mrb[36].mxu1  ;;  %v4669_v45 = vpack.c.bf16 %v3779_v0, %v3778_v43  ;;  %4668 = vmatprep.subr.bf16.mxu1 %v5132_v53 }
 0xe1a   :  { %v4163_v41 = vpop.f32.mrb[37].mxu1 }
 0xe1b   :  { %4167 = vmatmul.mubr.msk.f32.vlgmr.msra.gmra.mrb[28].mxu0 %vm2433_vm3, %v3692_v40  ;;  %4670 = vmatpush3.bf16.msra.mxu1 %v4669_v45 }
 0xed6   :  { %v2745_v58 = vpop.f32.mrb[16].mxu0 }
 0xed7   :  { %v4671_v26 = vadd.f32 %v2745_v58, %v2412_v27  ;;  %v4108_v1 = vpop.f32.mrb[17].mxu0 }
 0xed9   :  { %2751 = vst.msk [vmem:[#allocation2] sm:$0x1] %vm2750_vm8, %v4671_v26 }
 0xeda   :  { %v2925_v55 = vpop.f32.mrb[18].mxu0 }
 0xedb   :  { %v2930_v61 = vrot.slane %v2925_v55, 7  ;;  %v4118_v2 = vpop.f32.mrb[19].mxu0 }
 0xedd   :  { %v2932_v53 = vadd.f32 %v2930_v61, %v2762_v46 }
 0xede   :  { %v3087_v32 = vpop.f32.mrb[20].mxu0 }
 0xedf   :  { %v3092_v56 = vrot.slane %v3087_v32, 7  ;;  %v4128_v59 = vpop.f32.mrb[21].mxu0 }
 0xee1   :  { %v3094_v60 = vadd.f32 %v3092_v56, %v2932_v53 }
 0xee2   :  { %v3264_v57 = vpop.f32.mrb[22].mxu0 }
 0xee3   :  { %3096 = vst.msk [vmem:[#allocation2] sm:$0x2] %vm3095_vm9, %v3094_v60  ;;  %v3269_v4 = vrot.slane %v3264_v57, 6  ;;  %v4138_v5 = vpop.f32.mrb[23].mxu0 }
 0xee5   :  { %v3271_v48 = vadd.f32 %v3269_v4, %v3101_v3 }
 0xee6   :  { %v3426_v62 = vpop.f32.mrb[24].mxu0 }
 0xee7   :  { %v3431_v63 = vrot.slane %v3426_v62, 6  ;;  %v4148_v54 = vpop.f32.mrb[25].mxu0 }
 0xee9   :  { %v3433_v7 = vadd.f32 %v3431_v63, %v3271_v48 }
 0xeea   :  { %v3603_v8 = vpop.f32.mrb[26].mxu0 }
 0xeeb   :  { %3435 = vst.msk [vmem:[#allocation2] sm:$0x4] %vm3434_vm10, %v3433_v7  ;;  %v3608_v10 = vrot.slane %v3603_v8, 5  ;;  %v4158_v11 = vpop.f32.mrb[27].mxu0 }
 0xeed   :  { %v3610_v13 = vadd.f32 %v3608_v10, %v3440_v9 }
 0xeee   :  { %v3765_v12 = vpop.f32.mrb[28].mxu0 }
 0xeef   :  { %v3770_v14 = vrot.slane %v3765_v12, 5  ;;  %v4168_v15 = vpop.f32.mrb[29].mxu0 }
 0xef1   :  { %v3772_v16 = vadd.f32 %v3770_v14, %v3610_v13 }
 0xef3   :  { %3774 = vst.msk [vmem:[#allocation2] sm:$0x8] %vm3773_vm12, %v3772_v16 }
 0xefa   :  { %v3775_v17 = vld [vmem:[#allocation2] sm:$0xf] }
 0xefb   :  { %4178 = vmatmul.mubr.msk.f32.vlgmr.msra.gmra.mrb[38].mxu1 %vm2100_vm11, %v3775_v17 }
 0xfce   :  { %v3856_v19 = vpop.f32.mrb[38].mxu1 }
 0xfcf   :  { %v3857_v20 = vadd.f32 %v3962_v18, %v3856_v19  ;;  %v4179_v21 = vpop.f32.mrb[39].mxu1 }
 0xfd1   :  { %3866 = vrot.lane.b32.xlu1 %v3857_v20, %s5136_s18 }
 0xfd5   :  { %3862 = vperm.xlu1 %4706, %v3857_v20  }
0x1043   :  { %v3867_v22 = vpop.permute.xlu1 %3866 }
0x1044   :  { %v3870_v23 = vsel %vm3869_vm13, %v3867_v22, 0.0 }
0x1045   :  { %3871 = vadd.xlane.f32.xlu0 %v3870_v23 }
0x1054   :  { %v3863_v24 = vpop.permute.xlu1 %3862 }
0x1055   :  { %v3865_v38 = vadd.f32 %v3863_v24, %v3857_v20 }
0x10d2   :  { %v3872_v25 = vpop.xlane.xlu0 %3871 }
0x10d3   :  { %v3874_v28 = vmul.f32 0.2, %v3872_v25 }
0x10d5   :  { %v3875_v29 = vsub.f32 %v3865_v38, %v3874_v28 }
0x10d7   :  { %3877 = vrot.lane.b32.xlu1 %v3875_v29, %s5136_s18 }
0x1149   :  { %v3878_v30 = vpop.permute.xlu1 %3877 }
0x114a   :  { %3880 = vst.msk [vmem:[#allocation27] sm:$0xf] %vm3869_vm13, %v3878_v30 }
0x114b   :  { %5080 = shalt.err (!%p5077_p12)
}
0x114c   :  { %s5969_s12 = sld [smem:[#allocation42_spill]] }
0x1152   :  { %s5081_s20 = scalar_lea.hbm %s5969_s12, 64 }
0x1153   :  { %p5082_p13 = scmp.ne.s32.totalorder %s5969_s12, %s5081_s20  ;;  %p5085_p0 = scmp.lt.u32.totalorder %s5081_s20, %s5969_s12 }
0x1155   :  { %p5087_p1 = pnand %p5085_p0, %p5082_p13 }
0x1157   :  { %5090 = shalt.err (!%p5087_p1)
}
0x1158   :  { %3890 = dma.vmem_to_hbm [thread:$0]  %s3888_s10, 64, %s5969_s12, [#allocation5]  }
0x1159   :  { %5107 = dma.done.wait [#allocation5], 64  }
0x115a   :  { %5108 = vsyncadd [#allocation5], 4294967232 }
0x115b   :  { %3894 = vsyncpa [#allocation4], 1 }
0x115c   :  { %3895 = vsyncpa [#allocation7], 1 }
0x115d   :  { %3896 = vsyncpa [#allocation10], 1 }
0x115e   :  { %3897 = vsyncpa [#allocation13], 1 }
0x115f   :  { %3898 = vsyncpa [#allocation16], 1 }
0x1160   :  { %3899 = vsyncpa [#allocation19], 1 }
0x1161   :  { %3900 = vsyncpa [#allocation22], 1 }
0x1162   :  { %3901 = vsyncpa [#allocation25], 1 }
0x1163   :  { %3902 = vsyncpa [#allocation5], 1 }

</bundles_post_ra>
